<compile_context>
chip_gen: v7x
topology: tpu7x:2x2x1
jax: 0.10.0
libtpu: 0.0.40
codegen_flags: <defaults>
</compile_context>

<pallas_src>
import functools
import math

import numpy as np
import jax
import jax.numpy as jnp
from jax.experimental import pallas as pl

# ----------------------- configuration (small synthetic DLASegGNN) ----------
CHANNELS = [8, 16, 32, 64]          # base.channels
DOWN_RATIO = 2
FIRST_LEVEL = int(np.log2(DOWN_RATIO))   # 1
LAST_LEVEL = 3
HEADS = {"hm": 2, "wh": 2}
HEAD_CONV = 32
FINAL_KERNEL = 1
OUT_CHANNEL = CHANNELS[FIRST_LEVEL]      # 16
NUM_GNN_LAYERS = 1
BN_EPS = 1e-5


# ----------------------- Pallas kernels -------------------------------------
def _flat_conv_kernel(x_ref, w_ref, s_ref, b_ref, o_ref, *, offs, rows, relu):
    """Fused KxK conv via in-kernel shifted slices of the row-flattened padded
    image (no HBM im2col), + folded BatchNorm scale/bias (+ReLU).

    x_ref: (rows + max_off, F) f32, w_ref: (T, F, Cout) bf16,
    s_ref/b_ref: (1, Cout) f32, o_ref: (rows, Cout) f32.
    """
    acc = None
    for t, off in enumerate(offs):
        lhs = x_ref[pl.ds(off, rows), :].astype(jnp.bfloat16)
        part = jnp.dot(lhs, w_ref[t], preferred_element_type=jnp.float32)
        acc = part if acc is None else acc + part
    out = acc * s_ref[...] + b_ref[...]
    if relu:
        out = jnp.maximum(out, 0.0)
    o_ref[...] = out


def _fused_heads_kernel(x_ref, w1_ref, b1_ref, w2_ref, b2_ref, o_ref, *, offs, rows):
    """Both detection heads in one kernel: shared 3x3 conv (Cout = 32+32),
    ReLU in VMEM, block-diagonal 1x1 conv -> single (rows, 4) store."""
    acc = None
    for t, off in enumerate(offs):
        lhs = x_ref[pl.ds(off, rows), :].astype(jnp.bfloat16)
        part = jnp.dot(lhs, w1_ref[t], preferred_element_type=jnp.float32)
        acc = part if acc is None else acc + part
    hid = jnp.maximum(acc + b1_ref[...], 0.0)
    o_ref[...] = (jnp.dot(hid.astype(jnp.bfloat16), w2_ref[...],
                          preferred_element_type=jnp.float32) + b2_ref[...])


def _up2x_add_kernel(u_ref, w_ref, skip_ref, o_ref, *, h, w):
    """Depthwise ConvTranspose2d(C, C, 4, stride=2, padding=1, groups=C)
    (bilinear fill_up_weights) fused with the IDAUp skip addition.

    u_ref: (N, h+2, w+2, C) zero-padded proj output, w_ref: (4, 4, C),
    skip_ref/o_ref: (4, N, h, w, C) phase-stacked (phase index = 2*a + b)."""
    for a in range(2):
        for b in range(2):
            acc = skip_ref[2 * a + b]
            for p in range(2):
                for q in range(2):
                    ky = 3 - a - 2 * p
                    kx = 3 - b - 2 * q
                    acc = acc + u_ref[:, a + p:a + p + h, b + q:b + q + w, :] * w_ref[ky, kx]
            o_ref[2 * a + b] = acc


def _gap_kernel(x_ref, o_ref, *, inv_hw):
    # AdaptiveAvgPool2d(1): x_ref (N, H, W, C) -> o_ref (N, C), whole batch at once.
    o_ref[...] = jnp.sum(jnp.sum(x_ref[...], axis=2), axis=1) * inv_hw


def _graphconv_kernel(a_ref, x_ref, wr_ref, ws_ref, b_ref, o_ref):
    # torch_geometric GraphConv (aggr='add'):
    #   out = (A @ X) @ W_rel^T + b_rel + X @ W_root^T
    xb = x_ref[...].astype(jnp.bfloat16)
    aggr = jnp.dot(a_ref[...], xb, preferred_element_type=jnp.float32)
    o_ref[...] = (jnp.dot(aggr.astype(jnp.bfloat16), wr_ref[...],
                          preferred_element_type=jnp.float32)
                  + jnp.dot(xb, ws_ref[...], preferred_element_type=jnp.float32)
                  + b_ref[...])


# ----------------------- kernel wrappers -------------------------------------
def _flatten_for_conv(x_nhwc, stride):
    """Pad (and space-to-depth for stride 2), then flatten rows so the kernel
    can gather the KxK taps as shifted slices of one VMEM block."""
    N, H, W, Cin = x_nhwc.shape
    xp = jnp.pad(x_nhwc, ((0, 0), (1, 1), (1, 1), (0, 0)))
    if stride == 1:
        Hp, Wp, K = H + 2, W + 2, 3
        Ho, Wo = H, W
    else:
        assert H % 2 == 0 and W % 2 == 0
        Hp, Wp, K = (H + 2) // 2, (W + 2) // 2, 2
        Ho, Wo = H // 2, W // 2
        # stride-2 3x3 conv == stride-1 2x2 conv on the 2x2 space-to-depth input
        xp = xp.reshape(N, Hp, 2, Wp, 2, Cin).transpose(0, 1, 3, 2, 4, 5)
        xp = xp.reshape(N, Hp, Wp, 4 * Cin)
    F = xp.shape[-1]
    offs = tuple(dy * Wp + dx for dy in range(K) for dx in range(K))
    rows = N * Hp * Wp
    xf = jnp.pad(xp.reshape(rows, F), ((0, offs[-1]), (0, 0)))
    return xf, offs, rows, (N, Hp, Wp, Ho, Wo)


def deform_conv_block(x, p):
    """DeformConv stand-in: 3x3 conv (stride baked into params) + folded
    eval-mode BN + ReLU.  One grid-free pallas_call for the whole batch."""
    xf, offs, rows, (N, Hp, Wp, Ho, Wo) = _flatten_for_conv(x, p["stride"])
    Cout = p["wt"].shape[-1]
    out = pl.pallas_call(
        functools.partial(_flat_conv_kernel, offs=offs, rows=rows, relu=True),
        out_shape=jax.ShapeDtypeStruct((rows, Cout), jnp.float32),
    )(xf, p["wt"], p["scale"], p["bias"])
    return out.reshape(N, Hp, Wp, Cout)[:, :Ho, :Wo, :]


def fused_heads_forward(x, hp):
    """Both heads (3x3 conv -> ReLU -> 1x1 conv) in one kernel; returns NCHW."""
    xf, offs, rows, (N, Hp, Wp, Ho, Wo) = _flatten_for_conv(x, 1)
    Ctot = hp["w2"].shape[-1]
    out = pl.pallas_call(
        functools.partial(_fused_heads_kernel, offs=offs, rows=rows),
        out_shape=jax.ShapeDtypeStruct((rows, Ctot), jnp.float32),
    )(xf, hp["w1"], hp["b1"], hp["w2"], hp["b2"])
    out = out.reshape(N, Hp, Wp, Ctot)[:, :Ho, :Wo, :]
    return {head: jnp.transpose(out[..., lo:hi], (0, 3, 1, 2))
            for head, (lo, hi) in hp["slices"].items()}


def conv_transpose_up2x_add(u, w_up, skip):
    """Bilinear 2x depthwise transposed conv fused with the IDAUp skip add.
    u: (N, h, w, C), skip: (N, 2h, 2w, C) -> (N, 2h, 2w, C)."""
    N, h, w, C = u.shape
    up_pad = jnp.pad(u, ((0, 0), (1, 1), (1, 1), (0, 0)))
    skip5 = skip.reshape(N, h, 2, w, 2, C).transpose(2, 4, 0, 1, 3, 5)
    skip5 = skip5.reshape(4, N, h, w, C)
    out = pl.pallas_call(
        functools.partial(_up2x_add_kernel, h=h, w=w),
        out_shape=jax.ShapeDtypeStruct((4, N, h, w, C), jnp.float32),
    )(up_pad, w_up, skip5)
    out = out.reshape(2, 2, N, h, w, C).transpose(2, 3, 0, 4, 1, 5)
    return out.reshape(N, 2 * h, 2 * w, C)


def global_avg_pool(x):
    """AdaptiveAvgPool2d(1) over NHWC -> (N, C); single grid-free reduction."""
    N, H, W, C = x.shape
    return pl.pallas_call(
        functools.partial(_gap_kernel, inv_hw=1.0 / float(H * W)),
        out_shape=jax.ShapeDtypeStruct((N, C), jnp.float32),
    )(x)


def graph_conv(adj, x, gp):
    Nn, C = x.shape
    # TODO(synk): at realistic node counts the dense (Nn, Nn) adjacency must be
    # row-tiled (or replaced by a segment-sum gather) to stay inside VMEM
    # (v7x: 64 MiB); fine for the ~131-node synthetic graph here.
    return pl.pallas_call(
        _graphconv_kernel,
        out_shape=jax.ShapeDtypeStruct((Nn, C), jnp.float32),
    )(adj.astype(jnp.bfloat16), x, gp["w_rel_t"], gp["w_root_t"], gp["b_rel"])


# ----------------------- deterministic parameter construction ---------------
class KeyGen:
    def __init__(self, seed):
        self.key = jax.random.PRNGKey(seed)

    def __call__(self):
        self.key, k = jax.random.split(self.key)
        return k


def _conv_weight(kg, k, cin, cout):
    return jax.random.normal(kg(), (k, k, cin, cout), jnp.float32) / math.sqrt(k * k * cin)


def _deform_conv_params(kg, cin, cout, stride=1):
    # DCN(3x3) stand-in: plain 3x3 conv; eval-mode BN (gamma=1, beta=0, mean=0,
    # var=1) + ReLU folded.  Weights pre-packed into per-tap matmul layout.
    w = _conv_weight(kg, 3, cin, cout)
    b = jax.random.normal(kg(), (cout,), jnp.float32) * 0.01
    bn_scale = 1.0 / math.sqrt(1.0 + BN_EPS)
    scale = jnp.full((1, cout), bn_scale, jnp.float32)
    bias = scale * b.reshape(1, cout)
    if stride == 1:
        wt = w.reshape(9, cin, cout)
    else:
        # space-to-depth weight remap: (3,3,Cin,Cout) -> (4 taps, 4*Cin, Cout)
        wp = jnp.pad(w, ((0, 1), (0, 1), (0, 0), (0, 0)))
        wt = wp.reshape(2, 2, 2, 2, cin, cout).transpose(0, 2, 1, 3, 4, 5)
        wt = wt.reshape(4, 4 * cin, cout)
    return dict(wt=wt.astype(jnp.bfloat16), scale=scale, bias=bias, stride=stride)


def _bilinear_up_weight(c):
    # fill_up_weights for ConvTranspose2d(c, c, 4, stride=2, padding=1, groups=c)
    f = 2
    cc = (2 * f - 1 - f % 2) / (2.0 * f)
    k = np.zeros((4, 4), np.float32)
    for i in range(4):
        for j in range(4):
            k[i, j] = (1 - abs(i / f - cc)) * (1 - abs(j / f - cc))
    return jnp.asarray(np.repeat(k[:, :, None], c, axis=2))


def _ida_up_params(kg, o, channels_list, up_f):
    p = {}
    for i in range(1, len(channels_list)):
        c = channels_list[i]
        f = int(up_f[i])
        assert f == 2, "only 2x bilinear upsample needed for this config"
        p[f"proj_{i}"] = _deform_conv_params(kg, c, o)
        p[f"node_{i}"] = _deform_conv_params(kg, o, o)
        p[f"up_{i}"] = _bilinear_up_weight(o)
    return p


def _dla_up_params(kg, channels, scales):
    channels = list(channels)
    in_channels = list(channels)
    scales = np.array(scales, dtype=int)
    p = {}
    for i in range(len(channels) - 1):
        j = -i - 2
        p[f"ida_{i}"] = _ida_up_params(kg, channels[j], in_channels[j:], scales[j:] // scales[j])
        scales[j + 1:] = scales[j]
        in_channels[j + 1:] = [channels[j] for _ in channels[j + 1:]]
    return p


def _fused_head_params(kg, cin, head_conv, heads, final_kernel):
    assert final_kernel == 1
    total_out = sum(heads.values())
    total_mid = head_conv * len(heads)
    w1_list, b1_list, b2_list = [], [], []
    w2 = jnp.zeros((total_mid, total_out), jnp.float32)
    slices = {}
    mid_off = out_off = 0
    for head, classes in heads.items():
        w1 = _conv_weight(kg, 3, cin, head_conv)
        w2h = _conv_weight(kg, final_kernel, head_conv, classes).reshape(head_conv, classes)
        if "hm" in head:
            b1 = jax.random.normal(kg(), (head_conv,), jnp.float32) * 0.01
            b2 = jnp.full((classes,), -2.19, jnp.float32)
        else:  # fill_fc_weights: all conv biases zeroed
            b1 = jnp.zeros((head_conv,), jnp.float32)
            b2 = jnp.zeros((classes,), jnp.float32)
        w1_list.append(w1)
        b1_list.append(b1)
        b2_list.append(b2)
        w2 = w2.at[mid_off:mid_off + head_conv, out_off:out_off + classes].set(w2h)
        slices[head] = (out_off, out_off + classes)
        mid_off += head_conv
        out_off += classes
    w1cat = jnp.concatenate(w1_list, axis=-1)          # (3, 3, cin, total_mid)
    return dict(
        w1=w1cat.reshape(9, cin, total_mid).astype(jnp.bfloat16),
        b1=jnp.concatenate(b1_list).reshape(1, total_mid),
        w2=w2.astype(jnp.bfloat16),
        b2=jnp.concatenate(b2_list).reshape(1, total_out),
        slices=slices)


def _gnn_params(kg, c):
    w_rel = jax.random.normal(kg(), (c, c), jnp.float32) / math.sqrt(c)
    w_root = jax.random.normal(kg(), (c, c), jnp.float32) / math.sqrt(c)
    return dict(w_rel_t=w_rel.T.astype(jnp.bfloat16),
                w_root_t=w_root.T.astype(jnp.bfloat16),
                b_rel=jnp.zeros((1, c), jnp.float32))


def build_params(seed=0):
    kg = KeyGen(seed)
    params = {}
    base = []
    prev = 3
    for li, c in enumerate(CHANNELS):    # simplified DLA base: conv+BN+ReLU per level
        base.append(_deform_conv_params(kg, prev, c, stride=1 if li == 0 else 2))
        prev = c
    params["base"] = base
    scales = [2 ** i for i in range(len(CHANNELS[FIRST_LEVEL:]))]
    params["dla_up"] = _dla_up_params(kg, CHANNELS[FIRST_LEVEL:], scales)
    params["ida_up"] = _ida_up_params(
        kg, OUT_CHANNEL, CHANNELS[FIRST_LEVEL:LAST_LEVEL],
        [2 ** i for i in range(LAST_LEVEL - FIRST_LEVEL)])
    params["heads"] = _fused_head_params(kg, CHANNELS[FIRST_LEVEL], HEAD_CONV, HEADS, FINAL_KERNEL)
    params["gnn"] = [_gnn_params(kg, CHANNELS[FIRST_LEVEL]) for _ in range(NUM_GNN_LAYERS)]
    return params


# ----------------------- forward pass ----------------------------------------
def base_forward(base_params, x):
    feats = []
    cur = x
    for p in base_params:
        cur = deform_conv_block(cur, p)   # stride-2 levels handled inside
        feats.append(cur)
    return feats


def ida_up_forward(p, layers, startp, endp):
    for i in range(startp + 1, endp):
        idx = i - startp
        u = deform_conv_block(layers[i], p[f"proj_{idx}"])
        # upsample(proj(x)) + layers[i-1], fused in one kernel
        layers[i] = conv_transpose_up2x_add(u, p[f"up_{idx}"], layers[i - 1])
        layers[i] = deform_conv_block(layers[i], p[f"node_{idx}"])


def dla_up_forward(p, layers_in, startp):
    layers = list(layers_in)
    out = [layers[-1]]
    for i in range(len(layers) - startp - 1):
        ida_up_forward(p[f"ida_{i}"], layers, len(layers) - i - 2, len(layers))
        out.insert(0, layers[-1])
    return out


def backbone_forward(params, x_nhwc):
    feats = base_forward(params["base"], x_nhwc)
    out = dla_up_forward(params["dla_up"], feats, FIRST_LEVEL)
    y = [out[i] for i in range(LAST_LEVEL - FIRST_LEVEL)]
    ida_up_forward(params["ida_up"], y, 0, len(y))
    return y


def crop_features_forward(params, p_crops_nchw, p_crops_lengths):
    pc = jnp.transpose(p_crops_nchw, (0, 2, 3, 1)).astype(jnp.float32)
    y_crops = backbone_forward(params, pc)[-1]
    y_crops = global_avg_pool(y_crops)            # (total_crops, C)
    out = []
    for i in range(len(p_crops_lengths)):
        start = 0 if i - 1 < 0 else p_crops_lengths[i - 1]
        out.append(y_crops[start:p_crops_lengths[i]])
    return out


def build_graph_batch(y_nhwc, y_p_crops_list, edge_index_list):
    N, H, W, C = y_nhwc.shape
    nodes, edges, center_inds = [], [], []
    offset = 0
    for i in range(N):
        crops_i = y_p_crops_list[i]
        pix = y_nhwc[i].reshape(H * W, C)          # row-major, matches torch .reshape(C,-1).T
        nodes.append(jnp.concatenate([crops_i, pix], axis=0))
        edges.append(edge_index_list[i] + offset)
        center_inds.append(offset + crops_i.shape[0] + jnp.arange(H * W))
        offset += crops_i.shape[0] + H * W
    return (jnp.concatenate(nodes, axis=0),
            jnp.concatenate(edges, axis=1),
            jnp.concatenate(center_inds, axis=0))


def dla_seg_gnn_forward(params, x_nchw, p_crops_nchw, p_crops_lengths, edge_index):
    x = jnp.transpose(x_nchw, (0, 2, 3, 1)).astype(jnp.float32)   # NCHW -> NHWC
    y = backbone_forward(params, x)[-1]                            # (N, H, W, C)
    N, H, W, C = y.shape

    y_p_crops_list = crop_features_forward(params, p_crops_nchw, p_crops_lengths)
    gnn_x, ei, center_inds = build_graph_batch(y, y_p_crops_list, edge_index)
    Nn = gnn_x.shape[0]
    # dense adjacency: A[dst, src] accumulates edges (source_to_target message flow)
    adj = jnp.zeros((Nn, Nn), jnp.float32).at[ei[1], ei[0]].add(1.0)

    gnn_feat = gnn_x
    for gp in params["gnn"]:
        gnn_feat = graph_conv(adj, gnn_feat, gp)   # use_residual=False

    center_feats = gnn_feat[center_inds].reshape(N, H, W, C)
    return [fused_heads_forward(center_feats, params["heads"])]


# ----------------------- main -------------------------------------------------
if __name__ == "__main__":
    params = build_params(seed=0)

    ikg = KeyGen(0)
    N, IM, CROP = 2, 16, 8
    x = jax.random.normal(ikg(), (N, 3, IM, IM), jnp.float32)
    total_crops = 3
    p_crops = jax.random.normal(ikg(), (total_crops, 3, CROP, CROP), jnp.float32)
    p_crops_lengths = [2, 3]                        # cumulative, per PyTorch usage

    H = W = IM // DOWN_RATIO                        # 8 x 8 feature map
    n_nodes = [2 + H * W, 1 + H * W]
    edge_index = []
    for nn_i in n_nodes:
        src = jax.random.randint(ikg(), (12,), 0, nn_i, dtype=jnp.int32)
        dst = jax.random.randint(ikg(), (12,), 0, nn_i, dtype=jnp.int32)
        edge_index.append(jnp.stack([src, dst], axis=0))

    outs = dla_seg_gnn_forward(params, x, p_crops, p_crops_lengths, edge_index)
    for head, v in outs[0].items():
        jax.block_until_ready(v)
        assert v.shape == (N, HEADS[head], H, W), (head, v.shape)
    print("KERNEL_OK")
</pallas_src>

<mosaic_0001>
module attributes {stable_mosaic.version = 11 : i64} {
  func.func @_flat_conv_kernel(%arg0: memref<686x3xf32, #tpu.memory_space<vmem>>, %arg1: memref<9x3x8xbf16, #tpu.memory_space<vmem>>, %arg2: memref<1x8xf32, #tpu.memory_space<vmem>>, %arg3: memref<1x8xf32, #tpu.memory_space<vmem>>, %arg4: memref<648x8xf32, #tpu.memory_space<vmem>>) attributes {dimension_semantics = [], scalar_prefetch = 0 : i64, scratch_operands = 0 : i64, tpu.core_type = #tpu.core_type<tc>} {
    %c0 = arith.constant 0 : index
    %c0_0 = arith.constant 0 : index
    %0 = vector.load %arg0[%c0, %c0_0] : memref<686x3xf32, #tpu.memory_space<vmem>>, vector<648x3xf32>
    %1 = arith.truncf %0 : vector<648x3xf32> to vector<648x3xbf16>
    %c0_1 = arith.constant 0 : index
    %c0_2 = arith.constant 0 : index
    %c0_3 = arith.constant 0 : index
    %2 = vector.load %arg1[%c0_1, %c0_2, %c0_3] : memref<9x3x8xbf16, #tpu.memory_space<vmem>>, vector<1x3x8xbf16>
    %3 = vector.shape_cast %2 : vector<1x3x8xbf16> to vector<3x8xbf16>
    %cst = arith.constant dense<0.000000e+00> : vector<648x8xf32>
    %4 = tpu.matmul %1, %3, %cst {dimension_numbers = #tpu.dot_dimension_numbers<[1], [0], [0], [1], [0, 0, 1, 1], [], []>} : vector<648x3xbf16>, vector<3x8xbf16>, vector<648x8xf32> -> vector<648x8xf32>
    %c1 = arith.constant 1 : index
    %c0_4 = arith.constant 0 : index
    %5 = vector.load %arg0[%c1, %c0_4] : memref<686x3xf32, #tpu.memory_space<vmem>>, vector<648x3xf32>
    %6 = arith.truncf %5 : vector<648x3xf32> to vector<648x3xbf16>
    %c1_5 = arith.constant 1 : index
    %c0_6 = arith.constant 0 : index
    %c0_7 = arith.constant 0 : index
    %7 = vector.load %arg1[%c1_5, %c0_6, %c0_7] : memref<9x3x8xbf16, #tpu.memory_space<vmem>>, vector<1x3x8xbf16>
    %8 = vector.shape_cast %7 : vector<1x3x8xbf16> to vector<3x8xbf16>
    %cst_8 = arith.constant dense<0.000000e+00> : vector<648x8xf32>
    %9 = tpu.matmul %6, %8, %cst_8 {dimension_numbers = #tpu.dot_dimension_numbers<[1], [0], [0], [1], [0, 0, 1, 1], [], []>} : vector<648x3xbf16>, vector<3x8xbf16>, vector<648x8xf32> -> vector<648x8xf32>
    %10 = arith.addf %4, %9 : vector<648x8xf32>
    %c2 = arith.constant 2 : index
    %c0_9 = arith.constant 0 : index
    %11 = vector.load %arg0[%c2, %c0_9] : memref<686x3xf32, #tpu.memory_space<vmem>>, vector<648x3xf32>
    %12 = arith.truncf %11 : vector<648x3xf32> to vector<648x3xbf16>
    %c2_10 = arith.constant 2 : index
    %c0_11 = arith.constant 0 : index
    %c0_12 = arith.constant 0 : index
    %13 = vector.load %arg1[%c2_10, %c0_11, %c0_12] : memref<9x3x8xbf16, #tpu.memory_space<vmem>>, vector<1x3x8xbf16>
    %14 = vector.shape_cast %13 : vector<1x3x8xbf16> to vector<3x8xbf16>
    %cst_13 = arith.constant dense<0.000000e+00> : vector<648x8xf32>
    %15 = tpu.matmul %12, %14, %cst_13 {dimension_numbers = #tpu.dot_dimension_numbers<[1], [0], [0], [1], [0, 0, 1, 1], [], []>} : vector<648x3xbf16>, vector<3x8xbf16>, vector<648x8xf32> -> vector<648x8xf32>
    %16 = arith.addf %10, %15 : vector<648x8xf32>
    %c18 = arith.constant 18 : index
    %c0_14 = arith.constant 0 : index
    %17 = vector.load %arg0[%c18, %c0_14] : memref<686x3xf32, #tpu.memory_space<vmem>>, vector<648x3xf32>
    %18 = arith.truncf %17 : vector<648x3xf32> to vector<648x3xbf16>
    %c3 = arith.constant 3 : index
    %c0_15 = arith.constant 0 : index
    %c0_16 = arith.constant 0 : index
    %19 = vector.load %arg1[%c3, %c0_15, %c0_16] : memref<9x3x8xbf16, #tpu.memory_space<vmem>>, vector<1x3x8xbf16>
    %20 = vector.shape_cast %19 : vector<1x3x8xbf16> to vector<3x8xbf16>
    %cst_17 = arith.constant dense<0.000000e+00> : vector<648x8xf32>
    %21 = tpu.matmul %18, %20, %cst_17 {dimension_numbers = #tpu.dot_dimension_numbers<[1], [0], [0], [1], [0, 0, 1, 1], [], []>} : vector<648x3xbf16>, vector<3x8xbf16>, vector<648x8xf32> -> vector<648x8xf32>
    %22 = arith.addf %16, %21 : vector<648x8xf32>
    %c19 = arith.constant 19 : index
    %c0_18 = arith.constant 0 : index
    %23 = vector.load %arg0[%c19, %c0_18] : memref<686x3xf32, #tpu.memory_space<vmem>>, vector<648x3xf32>
    %24 = arith.truncf %23 : vector<648x3xf32> to vector<648x3xbf16>
    %c4 = arith.constant 4 : index
    %c0_19 = arith.constant 0 : index
    %c0_20 = arith.constant 0 : index
    %25 = vector.load %arg1[%c4, %c0_19, %c0_20] : memref<9x3x8xbf16, #tpu.memory_space<vmem>>, vector<1x3x8xbf16>
    %26 = vector.shape_cast %25 : vector<1x3x8xbf16> to vector<3x8xbf16>
    %cst_21 = arith.constant dense<0.000000e+00> : vector<648x8xf32>
    %27 = tpu.matmul %24, %26, %cst_21 {dimension_numbers = #tpu.dot_dimension_numbers<[1], [0], [0], [1], [0, 0, 1, 1], [], []>} : vector<648x3xbf16>, vector<3x8xbf16>, vector<648x8xf32> -> vector<648x8xf32>
    %28 = arith.addf %22, %27 : vector<648x8xf32>
    %c20 = arith.constant 20 : index
    %c0_22 = arith.constant 0 : index
    %29 = vector.load %arg0[%c20, %c0_22] : memref<686x3xf32, #tpu.memory_space<vmem>>, vector<648x3xf32>
    %30 = arith.truncf %29 : vector<648x3xf32> to vector<648x3xbf16>
    %c5 = arith.constant 5 : index
    %c0_23 = arith.constant 0 : index
    %c0_24 = arith.constant 0 : index
    %31 = vector.load %arg1[%c5, %c0_23, %c0_24] : memref<9x3x8xbf16, #tpu.memory_space<vmem>>, vector<1x3x8xbf16>
    %32 = vector.shape_cast %31 : vector<1x3x8xbf16> to vector<3x8xbf16>
    %cst_25 = arith.constant dense<0.000000e+00> : vector<648x8xf32>
    %33 = tpu.matmul %30, %32, %cst_25 {dimension_numbers = #tpu.dot_dimension_numbers<[1], [0], [0], [1], [0, 0, 1, 1], [], []>} : vector<648x3xbf16>, vector<3x8xbf16>, vector<648x8xf32> -> vector<648x8xf32>
    %34 = arith.addf %28, %33 : vector<648x8xf32>
    %c36 = arith.constant 36 : index
    %c0_26 = arith.constant 0 : index
    %35 = vector.load %arg0[%c36, %c0_26] : memref<686x3xf32, #tpu.memory_space<vmem>>, vector<648x3xf32>
    %36 = arith.truncf %35 : vector<648x3xf32> to vector<648x3xbf16>
    %c6 = arith.constant 6 : index
    %c0_27 = arith.constant 0 : index
    %c0_28 = arith.constant 0 : index
    %37 = vector.load %arg1[%c6, %c0_27, %c0_28] : memref<9x3x8xbf16, #tpu.memory_space<vmem>>, vector<1x3x8xbf16>
    %38 = vector.shape_cast %37 : vector<1x3x8xbf16> to vector<3x8xbf16>
    %cst_29 = arith.constant dense<0.000000e+00> : vector<648x8xf32>
    %39 = tpu.matmul %36, %38, %cst_29 {dimension_numbers = #tpu.dot_dimension_numbers<[1], [0], [0], [1], [0, 0, 1, 1], [], []>} : vector<648x3xbf16>, vector<3x8xbf16>, vector<648x8xf32> -> vector<648x8xf32>
    %40 = arith.addf %34, %39 : vector<648x8xf32>
    %c37 = arith.constant 37 : index
    %c0_30 = arith.constant 0 : index
    %41 = vector.load %arg0[%c37, %c0_30] : memref<686x3xf32, #tpu.memory_space<vmem>>, vector<648x3xf32>
    %42 = arith.truncf %41 : vector<648x3xf32> to vector<648x3xbf16>
    %c7 = arith.constant 7 : index
    %c0_31 = arith.constant 0 : index
    %c0_32 = arith.constant 0 : index
    %43 = vector.load %arg1[%c7, %c0_31, %c0_32] : memref<9x3x8xbf16, #tpu.memory_space<vmem>>, vector<1x3x8xbf16>
    %44 = vector.shape_cast %43 : vector<1x3x8xbf16> to vector<3x8xbf16>
    %cst_33 = arith.constant dense<0.000000e+00> : vector<648x8xf32>
    %45 = tpu.matmul %42, %44, %cst_33 {dimension_numbers = #tpu.dot_dimension_numbers<[1], [0], [0], [1], [0, 0, 1, 1], [], []>} : vector<648x3xbf16>, vector<3x8xbf16>, vector<648x8xf32> -> vector<648x8xf32>
    %46 = arith.addf %40, %45 : vector<648x8xf32>
    %c38 = arith.constant 38 : index
    %c0_34 = arith.constant 0 : index
    %47 = vector.load %arg0[%c38, %c0_34] : memref<686x3xf32, #tpu.memory_space<vmem>>, vector<648x3xf32>
    %48 = arith.truncf %47 : vector<648x3xf32> to vector<648x3xbf16>
    %c8 = arith.constant 8 : index
    %c0_35 = arith.constant 0 : index
    %c0_36 = arith.constant 0 : index
    %49 = vector.load %arg1[%c8, %c0_35, %c0_36] : memref<9x3x8xbf16, #tpu.memory_space<vmem>>, vector<1x3x8xbf16>
    %50 = vector.shape_cast %49 : vector<1x3x8xbf16> to vector<3x8xbf16>
    %cst_37 = arith.constant dense<0.000000e+00> : vector<648x8xf32>
    %51 = tpu.matmul %48, %50, %cst_37 {dimension_numbers = #tpu.dot_dimension_numbers<[1], [0], [0], [1], [0, 0, 1, 1], [], []>} : vector<648x3xbf16>, vector<3x8xbf16>, vector<648x8xf32> -> vector<648x8xf32>
    %52 = arith.addf %46, %51 : vector<648x8xf32>
    %c0_38 = arith.constant 0 : index
    %c0_39 = arith.constant 0 : index
    %53 = vector.load %arg2[%c0_38, %c0_39] : memref<1x8xf32, #tpu.memory_space<vmem>>, vector<1x8xf32>
    %54 = vector.broadcast %53 : vector<1x8xf32> to vector<648x8xf32>
    %55 = arith.mulf %52, %54 : vector<648x8xf32>
    %c0_40 = arith.constant 0 : index
    %c0_41 = arith.constant 0 : index
    %56 = vector.load %arg3[%c0_40, %c0_41] : memref<1x8xf32, #tpu.memory_space<vmem>>, vector<1x8xf32>
    %57 = vector.broadcast %56 : vector<1x8xf32> to vector<648x8xf32>
    %58 = arith.addf %55, %57 : vector<648x8xf32>
    %cst_42 = arith.constant 0.000000e+00 : f32
    %59 = vector.broadcast %cst_42 : f32 to vector<648x8xf32>
    %60 = arith.maximumf %58, %59 : vector<648x8xf32>
    %c0_43 = arith.constant 0 : index
    %c0_44 = arith.constant 0 : index
    %61 = vector.load %arg4[%c0_43, %c0_44] : memref<648x8xf32, #tpu.memory_space<vmem>>, vector<648x8xf32>
    tpu.vector_store %arg4[%c0_43, %c0_44], %60 {strides = array<i32>} : memref<648x8xf32, #tpu.memory_space<vmem>>, vector<648x8xf32>,
    return
  }
}

</mosaic_0001>

<bundles_post_ra>
// kernel: tpu_custom_call.1
= control target key start
LH: loop header
LB: loop body
LE: loop exit
PB: predicated region body
PF: predicated region fallthrough
CT: control target
= control target key end

     0   :  { %vm389_vm0 = vcmask 1040384   ;;  %vm390_vm1 = vcmask 1041408   ;;  %v9909_v0 = vmov 0.0   ;;  %v9910_v2 = vmov 65535   ;;  %s13763_s1 = inlined_call_operand.vmem [shape: bf16[9,3,8], index: 1, kind: input, shape index: {}]   ;;  %s13764_s0 = inlined_call_operand.vmem [shape: f32[686,3], index: 0, kind: input, shape index: {}]   ;;  %s13765_s2 = inlined_call_operand.vmem [shape: f32[1,8], index: 2, kind: input, shape index: {}]   ;;  %s13766_s3 = inlined_call_operand.vmem [shape: f32[1,8], index: 3, kind: input, shape index: {}]   ;;  %s13767_s4 = inlined_call_operand.vmem [shape: f32[648,8], index: 4, kind: output, shape index: {}]  }
   0x1   :  { %7179 = vmatprep.subr.bf16.mxu1 %v9909_v0  ;;  %7843 = vmatprep.subr.bf16.mxu0 %v9909_v0  ;;  %v6422_v1 = vld [vmem:[%s13763_s1 + $0x2] sm:$0x3]  ;;  %v391_v3 = vsel %vm389_vm0, 4294967295, %v9910_v2  ;;  %v6589_v4 = vld [vmem:[%s13763_s1 + $0x8] sm:$0x3]  ;;  %vm9911_vm2 = vmmov 0  }
   0x2   :  { %v9945_v5 = vsel %vm390_vm1, %v391_v3, 0  ;;  %7181 = vmatprep.mubr.msk.bf16.mxu1 %vm9911_vm2, %v9909_v0  ;;  %7845 = vmatprep.mubr.msk.bf16.mxu0 %vm9911_vm2, %v9909_v0  ;;  %v141_v6 = vld [vmem:[%s13764_s0 + $0x1] sm:$0xff]  ;;  %v142_v7 = vld [vmem:[%s13764_s0 + $0x9] sm:$0xff]  ;;  %v2624_v8 = vld [vmem:[%s13764_s0 + $0x13] sm:$0xff]  ;;  %vm265_vm3 = vcmask 23552   ;;  %vm6336_vm4 = vcmask 64512  }
   0x3   :  { %v394_v9 = vand.u32 %v6422_v1, %v9945_v5  ;;  %v9962_v10 = vand.u32 %v6589_v4, %v9945_v5  ;;  %v2625_v11 = vld [vmem:[%s13764_s0 + $0x1b] sm:$0xff]  ;;  %v6631_v12 = vld [vmem:[%s13763_s1 + $0xa] sm:$0x3]  ;;  %v222_v13 = vpack.c.bf16 %v142_v7, %v141_v6  ;;  %v143_v18 = vld [vmem:[%s13764_s0 + $0x11] sm:$0xff] }
   0x4   :  { %v2705_v14 = vpack.c.bf16 %v2625_v11, %v2624_v8  ;;  %v3563_v15 = vand.u32 %v6631_v12, %v9945_v5  ;;  %v140_v16 = vld [vmem:[%s13763_s1] sm:$0x3]  ;;  %v2626_v20 = vld [vmem:[%s13764_s0 + $0x23] sm:$0xff]  ;;  %v2627_v21 = vld [vmem:[%s13764_s0 + $0x2b] sm:$0xff] }
   0x5   :  { %7180 = vmatpush3.bf16.msra.mxu1 %v394_v9  ;;  %7844 = vmatpush3.bf16.msra.mxu0 %v9962_v10  ;;  %v880_v17 = vand.u32 %v9945_v5, %v140_v16  ;;  %v144_v19 = vld [vmem:[%s13764_s0 + $0x19] sm:$0xff]  ;;  %v2706_v23 = vpack.c.bf16 %v2627_v21, %v2626_v20  ;;  %v145_v24 = vld [vmem:[%s13764_s0 + $0x21] sm:$0xff]  ;;  %v146_v25 = vld [vmem:[%s13764_s0 + $0x29] sm:$0xff] }
   0x6   :  { %8009 = vmatprep.subr.bf16.mxu0 %v9909_v0  ;;  %7345 = vmatprep.subr.bf16.mxu1 %v9909_v0  ;;  %v223_v22 = vpack.c.bf16 %v144_v19, %v143_v18  ;;  %v2628_v26 = vld [vmem:[%s13764_s0 + $0x33] sm:$0xff]  ;;  %v2629_v27 = vld [vmem:[%s13764_s0 + $0x3b] sm:$0xff]  ;;  %v224_v28 = vpack.c.bf16 %v146_v25, %v145_v24  ;;  %v2630_v32 = vld [vmem:[%s13764_s0 + $0x43] sm:$0xff] }
   0x7   :  { %v2707_v29 = vpack.c.bf16 %v2629_v27, %v2628_v26  ;;  %v147_v30 = vld [vmem:[%s13764_s0 + $0x31] sm:$0xff]  ;;  %v148_v31 = vld [vmem:[%s13764_s0 + $0x39] sm:$0xff]  ;;  %v149_v36 = vld [vmem:[%s13764_s0 + $0x41] sm:$0xff] }
   0x8   :  { %7182 = vmatmul.mubr.msk.bf16.vlgmr.msra.gmra.mrb[0].mxu1 %vm265_vm3, %v222_v13  ;;  %7846 = vmatmul.mubr.msk.bf16.vlgmr.msra.gmra.mrb[0].mxu0 %vm265_vm3, %v2705_v14  ;;  %v2631_v33 = vld [vmem:[%s13764_s0 + $0x4b] sm:$0xff]  ;;  %v225_v34 = vpack.c.bf16 %v148_v31, %v147_v30  ;;  %v2632_v38 = vld [vmem:[%s13764_s0 + $0x53] sm:$0xff]  ;;  %v2633_v39 = vld [vmem:[%s13764_s0 + $0x5b] sm:$0xff] }
   0x9   :  { %8010 = vmatpush3.bf16.msra.mxu0 %v3563_v15  ;;  %7185 = vmatprep.mubr.msk.bf16.mxu1 %vm9911_vm2, %v9909_v0  ;;  %v2708_v35 = vpack.c.bf16 %v2631_v33, %v2630_v32  ;;  %v150_v37 = vld [vmem:[%s13764_s0 + $0x49] sm:$0xff]  ;;  %v2709_v41 = vpack.c.bf16 %v2633_v39, %v2632_v38  ;;  %v151_v42 = vld [vmem:[%s13764_s0 + $0x51] sm:$0xff]  ;;  %v152_v43 = vld [vmem:[%s13764_s0 + $0x59] sm:$0xff] }
   0xa   :  { %7849 = vmatprep.mubr.msk.bf16.mxu0 %vm9911_vm2, %v9909_v0  ;;  %7346 = vmatpush3.bf16.msra.mxu1 %v880_v17  ;;  %v226_v40 = vpack.c.bf16 %v150_v37, %v149_v36  ;;  %v2634_v44 = vld [vmem:[%s13764_s0 + $0x63] sm:$0xff]  ;;  %v2635_v45 = vld [vmem:[%s13764_s0 + $0x6b] sm:$0xff]  ;;  %v227_v46 = vpack.c.bf16 %v152_v43, %v151_v42  ;;  %v2636_v50 = vld [vmem:[%s13764_s0 + $0x73] sm:$0xff] }
   0xb   :  { %8175 = vmatprep.subr.bf16.mxu0 %v9909_v0  ;;  %7511 = vmatprep.subr.bf16.mxu1 %v9909_v0  ;;  %v2710_v47 = vpack.c.bf16 %v2635_v45, %v2634_v44  ;;  %v153_v48 = vld [vmem:[%s13764_s0 + $0x61] sm:$0xff]  ;;  %v154_v49 = vld [vmem:[%s13764_s0 + $0x69] sm:$0xff]  ;;  %v155_v54 = vld [vmem:[%s13764_s0 + $0x71] sm:$0xff] }
   0xc   :  { %v2637_v51 = vld [vmem:[%s13764_s0 + $0x7b] sm:$0xff]  ;;  %v228_v52 = vpack.c.bf16 %v154_v49, %v153_v48  ;;  %v2638_v56 = vld [vmem:[%s13764_s0 + $0x83] sm:$0xff]  ;;  %v2639_v57 = vld [vmem:[%s13764_s0 + $0x8b] sm:$0xff] }
   0xd   :  { %v2711_v53 = vpack.c.bf16 %v2637_v51, %v2636_v50  ;;  %v156_v55 = vld [vmem:[%s13764_s0 + $0x79] sm:$0xff]  ;;  %v2712_v59 = vpack.c.bf16 %v2639_v57, %v2638_v56  ;;  %v157_v60 = vld [vmem:[%s13764_s0 + $0x81] sm:$0xff]  ;;  %v158_v61 = vld [vmem:[%s13764_s0 + $0x89] sm:$0xff] }
   0xe   :  { %v229_v58 = vpack.c.bf16 %v156_v55, %v155_v54  ;;  %v2640_v62 = vld [vmem:[%s13764_s0 + $0x93] sm:$0xff]  ;;  %v2641_v63 = vld [vmem:[%s13764_s0 + $0x9b] sm:$0xff]  ;;  %v230_v1 = vpack.c.bf16 %v158_v61, %v157_v60  ;;  %v2642_v6 = vld [vmem:[%s13764_s0 + $0xa3] sm:$0xff] }
   0xf   :  { %v2713_v2 = vpack.c.bf16 %v2641_v63, %v2640_v62  ;;  %v159_v3 = vld [vmem:[%s13764_s0 + $0x91] sm:$0xff]  ;;  %v160_v4 = vld [vmem:[%s13764_s0 + $0x99] sm:$0xff]  ;;  %v161_v11 = vld [vmem:[%s13764_s0 + $0xa1] sm:$0xff] }
  0x10   :  { %7186 = vmatmul.mubr.msk.bf16.gmra.mrb[4].mxu1 %vm265_vm3, %v223_v22  ;;  %7850 = vmatmul.mubr.msk.bf16.gmra.mrb[4].mxu0 %vm265_vm3, %v2706_v23  ;;  %v2643_v7 = vld [vmem:[%s13764_s0 + $0xab] sm:$0xff]  ;;  %v231_v8 = vpack.c.bf16 %v160_v4, %v159_v3  ;;  %v2644_v13 = vld [vmem:[%s13764_s0 + $0xb3] sm:$0xff]  ;;  %v2645_v14 = vld [vmem:[%s13764_s0 + $0xbb] sm:$0xff] }
  0x11   :  { %7189 = vmatprep.mubr.msk.bf16.mxu1 %vm9911_vm2, %v9909_v0  ;;  %7853 = vmatprep.mubr.msk.bf16.mxu0 %vm9911_vm2, %v9909_v0  ;;  %v2714_v9 = vpack.c.bf16 %v2643_v7, %v2642_v6  ;;  %v162_v12 = vld [vmem:[%s13764_s0 + $0xa9] sm:$0xff]  ;;  %v2715_v16 = vpack.c.bf16 %v2645_v14, %v2644_v13  ;;  %v163_v17 = vld [vmem:[%s13764_s0 + $0xb1] sm:$0xff]  ;;  %v164_v18 = vld [vmem:[%s13764_s0 + $0xb9] sm:$0xff] }
  0x12   :  { %v232_v15 = vpack.c.bf16 %v162_v12, %v161_v11  ;;  %v2646_v19 = vld [vmem:[%s13764_s0 + $0xc3] sm:$0xff]  ;;  %v2647_v20 = vld [vmem:[%s13764_s0 + $0xcb] sm:$0xff]  ;;  %v233_v21 = vpack.c.bf16 %v164_v18, %v163_v17  ;;  %v2648_v25 = vld [vmem:[%s13764_s0 + $0xd3] sm:$0xff] }
  0x13   :  { %v2716_v22 = vpack.c.bf16 %v2647_v20, %v2646_v19  ;;  %v165_v23 = vld [vmem:[%s13764_s0 + $0xc1] sm:$0xff]  ;;  %v166_v24 = vld [vmem:[%s13764_s0 + $0xc9] sm:$0xff]  ;;  %v168_v30 = vld [vmem:[%s13764_s0 + $0xd9] sm:$0xff] }
  0x14   :  { %v2649_v26 = vld [vmem:[%s13764_s0 + $0xdb] sm:$0xff]  ;;  %v234_v27 = vpack.c.bf16 %v166_v24, %v165_v23  ;;  %v2650_v31 = vld [vmem:[%s13764_s0 + $0xe3] sm:$0xff]  ;;  %v2651_v32 = vld [vmem:[%s13764_s0 + $0xeb] sm:$0xff] }
  0x15   :  { %v170_v36 = vld [vmem:[%s13764_s0 + $0xe9] sm:$0xff]  ;;  %v2652_v37 = vld [vmem:[%s13764_s0 + $0xf3] sm:$0xff]  ;;  %v2653_v38 = vld [vmem:[%s13764_s0 + $0xfb] sm:$0xff] }
  0x16   :  { %v172_v42 = vld [vmem:[%s13764_s0 + $0xf9] sm:$0xff]  ;;  %v2654_v43 = vld [vmem:[%s13764_s0 + $0x103] sm:$0xff]  ;;  %v2655_v44 = vld [vmem:[%s13764_s0 + $0x10b] sm:$0xff] }
  0x17   :  { %v174_v48 = vld [vmem:[%s13764_s0 + $0x109] sm:$0xff]  ;;  %v2656_v49 = vld [vmem:[%s13764_s0 + $0x113] sm:$0xff]  ;;  %v2657_v50 = vld [vmem:[%s13764_s0 + $0x11b] sm:$0xff] }
  0x18   :  { %7190 = vmatmul.mubr.msk.bf16.gmra.mrb[8].mxu1 %vm265_vm3, %v224_v28  ;;  %7854 = vmatmul.mubr.msk.bf16.gmra.mrb[8].mxu0 %vm265_vm3, %v2707_v29  ;;  %v2717_v28 = vpack.c.bf16 %v2649_v26, %v2648_v25  ;;  %v167_v29 = vld [vmem:[%s13764_s0 + $0xd1] sm:$0xff]  ;;  %v176_v54 = vld [vmem:[%s13764_s0 + $0x119] sm:$0xff]  ;;  %v2658_v55 = vld [vmem:[%s13764_s0 + $0x123] sm:$0xff] }
  0x19   :  { %7193 = vmatprep.mubr.msk.bf16.mxu1 %vm9911_vm2, %v9909_v0  ;;  %7857 = vmatprep.mubr.msk.bf16.mxu0 %vm9911_vm2, %v9909_v0  ;;  %v235_v33 = vpack.c.bf16 %v168_v30, %v167_v29  ;;  %v2659_v56 = vld [vmem:[%s13764_s0 + $0x12b] sm:$0xff]  ;;  %v2660_v61 = vld [vmem:[%s13764_s0 + $0x133] sm:$0xff]  ;;  %v2661_v62 = vld [vmem:[%s13764_s0 + $0x13b] sm:$0xff] }
  0x1a   :  { %v178_v60 = vld [vmem:[%s13764_s0 + $0x129] sm:$0xff]  ;;  %v180_v3 = vld [vmem:[%s13764_s0 + $0x139] sm:$0xff]  ;;  %v185_v24 = vld [vmem:[%s13764_s0 + $0x161] sm:$0xff] }
  0x1b   :  { %v2662_v4 = vld [vmem:[%s13764_s0 + $0x143] sm:$0xff]  ;;  %v2663_v6 = vld [vmem:[%s13764_s0 + $0x14b] sm:$0xff]  ;;  %v2664_v12 = vld [vmem:[%s13764_s0 + $0x153] sm:$0xff] }
  0x1c   :  { %v182_v11 = vld [vmem:[%s13764_s0 + $0x149] sm:$0xff]  ;;  %v2665_v13 = vld [vmem:[%s13764_s0 + $0x15b] sm:$0xff]  ;;  %v187_v30 = vld [vmem:[%s13764_s0 + $0x171] sm:$0xff] }
  0x1d   :  { %v184_v17 = vld [vmem:[%s13764_s0 + $0x159] sm:$0xff]  ;;  %v6673_v20 = vld [vmem:[%s13763_s1 + $0xc] sm:$0x3]  ;;  %v3317_v26 = vld [vmem:[%s13764_s0 + $0x24] sm:$0xff] }
  0x1e   :  { %v3315_v18 = vld [vmem:[%s13764_s0 + $0x14] sm:$0xff]  ;;  %v3316_v19 = vld [vmem:[%s13764_s0 + $0x1c] sm:$0xff]  ;;  %v4254_v23 = vand.u32 %v6673_v20, %v9945_v5  ;;  %v186_v25 = vld [vmem:[%s13764_s0 + $0x169] sm:$0xff] }
  0x1f   :  { %v3336_v20 = vld [vmem:[%s13764_s0 + $0xbc] sm:$0xff] }
  0x20   :  { %7194 = vmatmul.mubr.msk.bf16.gmra.mrb[12].mxu1 %vm265_vm3, %v225_v34  ;;  %7858 = vmatmul.mubr.msk.bf16.gmra.mrb[12].mxu0 %vm265_vm3, %v2708_v35  ;;  %v2718_v34 = vpack.c.bf16 %v2651_v32, %v2650_v31  ;;  %v169_v35 = vld [vmem:[%s13764_s0 + $0xe1] sm:$0xff]  ;;  %v188_v31 = vld [vmem:[%s13764_s0 + $0x179] sm:$0xff] }
  0x21   :  { %7197 = vmatprep.mubr.msk.bf16.mxu1 %vm9911_vm2, %v9909_v0  ;;  %7861 = vmatprep.mubr.msk.bf16.mxu0 %vm9911_vm2, %v9909_v0  ;;  %v236_v39 = vpack.c.bf16 %v170_v36, %v169_v35  ;;  %v3319_v32 = vld [vmem:[%s13764_s0 + $0x34] sm:$0xff]  ;;  %v189_v36 = vld [vmem:[%s13764_s0 + $0x181] sm:$0xff] }
  0x28   :  { %7198 = vmatmul.mubr.msk.bf16.gmra.mrb[16].mxu1 %vm265_vm3, %v226_v40  ;;  %7862 = vmatmul.mubr.msk.bf16.gmra.mrb[16].mxu0 %vm265_vm3, %v2709_v41  ;;  %v2719_v40 = vpack.c.bf16 %v2653_v38, %v2652_v37  ;;  %v171_v41 = vld [vmem:[%s13764_s0 + $0xf1] sm:$0xff]  ;;  %v190_v37 = vld [vmem:[%s13764_s0 + $0x189] sm:$0xff] }
  0x29   :  { %7201 = vmatprep.mubr.msk.bf16.mxu1 %vm9911_vm2, %v9909_v0  ;;  %7865 = vmatprep.mubr.msk.bf16.mxu0 %vm9911_vm2, %v9909_v0  ;;  %v237_v45 = vpack.c.bf16 %v172_v42, %v171_v41  ;;  %v3321_v38 = vld [vmem:[%s13764_s0 + $0x44] sm:$0xff]  ;;  %v191_v42 = vld [vmem:[%s13764_s0 + $0x191] sm:$0xff] }
  0x30   :  { %7202 = vmatmul.mubr.msk.bf16.gmra.mrb[20].mxu1 %vm265_vm3, %v227_v46  ;;  %7866 = vmatmul.mubr.msk.bf16.gmra.mrb[20].mxu0 %vm265_vm3, %v2710_v47  ;;  %v2720_v46 = vpack.c.bf16 %v2655_v44, %v2654_v43  ;;  %v173_v47 = vld [vmem:[%s13764_s0 + $0x101] sm:$0xff]  ;;  %v192_v43 = vld [vmem:[%s13764_s0 + $0x199] sm:$0xff] }
  0x31   :  { %7205 = vmatprep.mubr.msk.bf16.mxu1 %vm9911_vm2, %v9909_v0  ;;  %7869 = vmatprep.mubr.msk.bf16.mxu0 %vm9911_vm2, %v9909_v0  ;;  %v238_v51 = vpack.c.bf16 %v174_v48, %v173_v47  ;;  %v3323_v44 = vld [vmem:[%s13764_s0 + $0x54] sm:$0xff]  ;;  %v193_v48 = vld [vmem:[%s13764_s0 + $0x1a1] sm:$0xff] }
  0x38   :  { %7206 = vmatmul.mubr.msk.bf16.gmra.mrb[24].mxu1 %vm265_vm3, %v228_v52  ;;  %7870 = vmatmul.mubr.msk.bf16.gmra.mrb[24].mxu0 %vm265_vm3, %v2711_v53  ;;  %v2721_v52 = vpack.c.bf16 %v2657_v50, %v2656_v49  ;;  %v175_v53 = vld [vmem:[%s13764_s0 + $0x111] sm:$0xff]  ;;  %v194_v49 = vld [vmem:[%s13764_s0 + $0x1a9] sm:$0xff] }
  0x39   :  { %7209 = vmatprep.mubr.msk.bf16.mxu1 %vm9911_vm2, %v9909_v0  ;;  %7873 = vmatprep.mubr.msk.bf16.mxu0 %vm9911_vm2, %v9909_v0  ;;  %v239_v57 = vpack.c.bf16 %v176_v54, %v175_v53  ;;  %v3325_v50 = vld [vmem:[%s13764_s0 + $0x64] sm:$0xff]  ;;  %v195_v54 = vld [vmem:[%s13764_s0 + $0x1b1] sm:$0xff] }
  0x40   :  { %7210 = vmatmul.mubr.msk.bf16.gmra.mrb[28].mxu1 %vm265_vm3, %v229_v58  ;;  %7874 = vmatmul.mubr.msk.bf16.gmra.mrb[28].mxu0 %vm265_vm3, %v2712_v59  ;;  %v2722_v58 = vpack.c.bf16 %v2659_v56, %v2658_v55  ;;  %v177_v59 = vld [vmem:[%s13764_s0 + $0x121] sm:$0xff]  ;;  %v196_v55 = vld [vmem:[%s13764_s0 + $0x1b9] sm:$0xff] }
  0x41   :  { %7213 = vmatprep.mubr.msk.bf16.mxu1 %vm9911_vm2, %v9909_v0  ;;  %7877 = vmatprep.mubr.msk.bf16.mxu0 %vm9911_vm2, %v9909_v0  ;;  %v240_v63 = vpack.c.bf16 %v178_v60, %v177_v59  ;;  %v3327_v56 = vld [vmem:[%s13764_s0 + $0x74] sm:$0xff]  ;;  %v197_v60 = vld [vmem:[%s13764_s0 + $0x1c1] sm:$0xff] }
  0x48   :  { %7214 = vmatmul.mubr.msk.bf16.gmra.mrb[32].mxu1 %vm265_vm3, %v230_v1  ;;  %7878 = vmatmul.mubr.msk.bf16.gmra.mrb[32].mxu0 %vm265_vm3, %v2713_v2  ;;  %v2723_v1 = vpack.c.bf16 %v2661_v62, %v2660_v61  ;;  %v179_v2 = vld [vmem:[%s13764_s0 + $0x131] sm:$0xff]  ;;  %v198_v61 = vld [vmem:[%s13764_s0 + $0x1c9] sm:$0xff] }
  0x49   :  { %7217 = vmatprep.mubr.msk.bf16.mxu1 %vm9911_vm2, %v9909_v0  ;;  %7881 = vmatprep.mubr.msk.bf16.mxu0 %vm9911_vm2, %v9909_v0  ;;  %v241_v7 = vpack.c.bf16 %v180_v3, %v179_v2  ;;  %v3329_v62 = vld [vmem:[%s13764_s0 + $0x84] sm:$0xff]  ;;  %v199_v3 = vld [vmem:[%s13764_s0 + $0x1d1] sm:$0xff] }
  0x50   :  { %7218 = vmatmul.mubr.msk.bf16.gmra.mrb[36].mxu1 %vm265_vm3, %v231_v8  ;;  %7882 = vmatmul.mubr.msk.bf16.gmra.mrb[36].mxu0 %vm265_vm3, %v2714_v9  ;;  %v2724_v8 = vpack.c.bf16 %v2663_v6, %v2662_v4  ;;  %v181_v9 = vld [vmem:[%s13764_s0 + $0x141] sm:$0xff]  ;;  %v200_v4 = vld [vmem:[%s13764_s0 + $0x1d9] sm:$0xff] }
  0x51   :  { %7221 = vmatprep.mubr.msk.bf16.mxu1 %vm9911_vm2, %v9909_v0  ;;  %7885 = vmatprep.mubr.msk.bf16.mxu0 %vm9911_vm2, %v9909_v0  ;;  %v242_v14 = vpack.c.bf16 %v182_v11, %v181_v9  ;;  %v3331_v6 = vld [vmem:[%s13764_s0 + $0x94] sm:$0xff]  ;;  %v201_v11 = vld [vmem:[%s13764_s0 + $0x1e1] sm:$0xff] }
  0x58   :  { %7222 = vmatmul.mubr.msk.bf16.gmra.mrb[40].mxu1 %vm265_vm3, %v232_v15  ;;  %7886 = vmatmul.mubr.msk.bf16.gmra.mrb[40].mxu0 %vm265_vm3, %v2715_v16  ;;  %v2725_v15 = vpack.c.bf16 %v2665_v13, %v2664_v12  ;;  %v183_v16 = vld [vmem:[%s13764_s0 + $0x151] sm:$0xff]  ;;  %v202_v12 = vld [vmem:[%s13764_s0 + $0x1e9] sm:$0xff] }
  0x59   :  { %7225 = vmatprep.mubr.msk.bf16.mxu1 %vm9911_vm2, %v9909_v0  ;;  %7889 = vmatprep.mubr.msk.bf16.mxu0 %vm9911_vm2, %v9909_v0  ;;  %v3333_v13 = vld [vmem:[%s13764_s0 + $0xa4] sm:$0xff] }
  0x60   :  { %7226 = vmatmul.mubr.msk.bf16.gmra.mrb[44].mxu1 %vm265_vm3, %v233_v21  ;;  %7890 = vmatmul.mubr.msk.bf16.gmra.mrb[44].mxu0 %vm265_vm3, %v2716_v22  ;;  %v243_v21 = vpack.c.bf16 %v184_v17, %v183_v16  ;;  %v3396_v22 = vpack.c.bf16 %v3316_v19, %v3315_v18  ;;  %v203_v17 = vld [vmem:[%s13764_s0 + $0x1f1] sm:$0xff]  ;;  %v204_v18 = vld [vmem:[%s13764_s0 + $0x1f9] sm:$0xff] }
  0x61   :  { %7229 = vmatprep.mubr.msk.bf16.mxu1 %vm9911_vm2, %v9909_v0  ;;  %7893 = vmatprep.mubr.msk.bf16.mxu0 %vm9911_vm2, %v9909_v0  ;;  %v3335_v19 = vld [vmem:[%s13764_s0 + $0xb4] sm:$0xff] }
  0x68   :  { %7230 = vmatmul.mubr.msk.bf16.gmra.mrb[48].mxu1 %vm265_vm3, %v234_v27  ;;  %7894 = vmatmul.mubr.msk.bf16.gmra.mrb[48].mxu0 %vm265_vm3, %v2717_v28  ;;  %v3318_v27 = vld [vmem:[%s13764_s0 + $0x2c] sm:$0xff]  ;;  %v244_v28 = vpack.c.bf16 %v186_v25, %v185_v24  ;;  %v3337_v25 = vld [vmem:[%s13764_s0 + $0xc4] sm:$0xff] }
  0x69   :  { %7233 = vmatprep.mubr.msk.bf16.mxu1 %vm9911_vm2, %v9909_v0  ;;  %7897 = vmatprep.mubr.msk.bf16.mxu0 %vm9911_vm2, %v9909_v0  ;;  %v10381_v29 = vpack.c.bf16 %v3318_v27, %v3317_v26  ;;  %v206_v24 = vld [vmem:[%s13764_s0 + $0x209] sm:$0xff] }
  0x6a   :  { %v3338_v26 = vld [vmem:[%s13764_s0 + $0xcc] sm:$0xff] }
  0x70   :  { %7234 = vmatmul.mubr.msk.bf16.gmra.mrb[52].mxu1 %vm265_vm3, %v235_v33  ;;  %7898 = vmatmul.mubr.msk.bf16.gmra.mrb[52].mxu0 %vm265_vm3, %v2718_v34  ;;  %v3320_v33 = vld [vmem:[%s13764_s0 + $0x3c] sm:$0xff]  ;;  %v245_v34 = vpack.c.bf16 %v188_v31, %v187_v30  ;;  %v207_v30 = vld [vmem:[%s13764_s0 + $0x211] sm:$0xff] }
  0x71   :  { %7237 = vmatprep.mubr.msk.bf16.mxu1 %vm9911_vm2, %v9909_v0  ;;  %7901 = vmatprep.mubr.msk.bf16.mxu0 %vm9911_vm2, %v9909_v0  ;;  %v10402_v35 = vpack.c.bf16 %v3320_v33, %v3319_v32  ;;  %v208_v31 = vld [vmem:[%s13764_s0 + $0x219] sm:$0xff] }
  0x72   :  { %v3339_v32 = vld [vmem:[%s13764_s0 + $0xd4] sm:$0xff]  ;;  %v3340_v33 = vld [vmem:[%s13764_s0 + $0xdc] sm:$0xff] }
  0x78   :  { %7238 = vmatmul.mubr.msk.bf16.gmra.mrb[56].mxu1 %vm265_vm3, %v236_v39  ;;  %7902 = vmatmul.mubr.msk.bf16.gmra.mrb[56].mxu0 %vm265_vm3, %v2719_v40  ;;  %v3322_v39 = vld [vmem:[%s13764_s0 + $0x4c] sm:$0xff]  ;;  %v246_v40 = vpack.c.bf16 %v190_v37, %v189_v36  ;;  %v10612_v36 = vpack.c.bf16 %v3340_v33, %v3339_v32  ;;  %v209_v37 = vld [vmem:[%s13764_s0 + $0x221] sm:$0xff] }
  0x79   :  { %7241 = vmatprep.mubr.msk.bf16.mxu1 %vm9911_vm2, %v9909_v0  ;;  %7905 = vmatprep.mubr.msk.bf16.mxu0 %vm9911_vm2, %v9909_v0  ;;  %v10423_v41 = vpack.c.bf16 %v3322_v39, %v3321_v38  ;;  %v210_v38 = vld [vmem:[%s13764_s0 + $0x229] sm:$0xff] }
  0x7a   :  { %v3341_v39 = vld [vmem:[%s13764_s0 + $0xe4] sm:$0xff] }
  0x80   :  { %7242 = vmatmul.mubr.msk.bf16.gmra.mrb[60].mxu1 %vm265_vm3, %v237_v45  ;;  %7906 = vmatmul.mubr.msk.bf16.gmra.mrb[60].mxu0 %vm265_vm3, %v2720_v46  ;;  %v3324_v45 = vld [vmem:[%s13764_s0 + $0x5c] sm:$0xff]  ;;  %v247_v46 = vpack.c.bf16 %v192_v43, %v191_v42  ;;  %v256_v42 = vpack.c.bf16 %v210_v38, %v209_v37  ;;  %v20_v37 = vld [vmem:[%s13764_s0 + $0x10] sm:$0xff] }
  0x81   :  { %7245 = vmatprep.mubr.msk.bf16.mxu1 %vm9911_vm2, %v9909_v0  ;;  %7909 = vmatprep.mubr.msk.bf16.mxu0 %vm9911_vm2, %v9909_v0  ;;  %v10444_v47 = vpack.c.bf16 %v3324_v45, %v3323_v44  ;;  %v211_v44 = vld [vmem:[%s13764_s0 + $0x231] sm:$0xff]  ;;  %v212_v45 = vld [vmem:[%s13764_s0 + $0x239] sm:$0xff] }
  0x82   :  { %v21_v38 = vld [vmem:[%s13764_s0 + $0x18] sm:$0xff] }
  0x88   :  { %7246 = vmatmul.mubr.msk.bf16.gmra.mrb[64].mxu1 %vm265_vm3, %v238_v51  ;;  %7910 = vmatmul.mubr.msk.bf16.gmra.mrb[64].mxu0 %vm265_vm3, %v2721_v52  ;;  %v3326_v51 = vld [vmem:[%s13764_s0 + $0x6c] sm:$0xff]  ;;  %v248_v52 = vpack.c.bf16 %v194_v49, %v193_v48  ;;  %v3344_v48 = vld [vmem:[%s13764_s0 + $0xfc] sm:$0xff]  ;;  %v257_v49 = vpack.c.bf16 %v212_v45, %v211_v44 }
  0x89   :  { %7249 = vmatprep.mubr.msk.bf16.mxu1 %vm9911_vm2, %v9909_v0  ;;  %7913 = vmatprep.mubr.msk.bf16.mxu0 %vm9911_vm2, %v9909_v0  ;;  %v10465_v53 = vpack.c.bf16 %v3326_v51, %v3325_v50  ;;  %v213_v51 = vld [vmem:[%s13764_s0 + $0x241] sm:$0xff] }
  0x8a   :  { %v22_v45 = vld [vmem:[%s13764_s0 + $0x20] sm:$0xff] }
  0x90   :  { %7250 = vmatmul.mubr.msk.bf16.gmra.mrb[68].mxu1 %vm265_vm3, %v239_v57  ;;  %7914 = vmatmul.mubr.msk.bf16.gmra.mrb[68].mxu0 %vm265_vm3, %v2722_v58  ;;  %v3328_v57 = vld [vmem:[%s13764_s0 + $0x7c] sm:$0xff]  ;;  %v249_v58 = vpack.c.bf16 %v196_v55, %v195_v54  ;;  %v3345_v54 = vld [vmem:[%s13764_s0 + $0x104] sm:$0xff]  ;;  %v3346_v55 = vld [vmem:[%s13764_s0 + $0x10c] sm:$0xff] }
  0x91   :  { %7253 = vmatprep.mubr.msk.bf16.mxu1 %vm9911_vm2, %v9909_v0  ;;  %7917 = vmatprep.mubr.msk.bf16.mxu0 %vm9911_vm2, %v9909_v0  ;;  %v10486_v59 = vpack.c.bf16 %v3328_v57, %v3327_v56  ;;  %v10675_v57 = vpack.c.bf16 %v3346_v55, %v3345_v54  ;;  %v24_v54 = vld [vmem:[%s13764_s0 + $0x30] sm:$0xff]  ;;  %v25_v55 = vld [vmem:[%s13764_s0 + $0x38] sm:$0xff] }
  0x98   :  { %7254 = vmatmul.mubr.msk.bf16.gmra.mrb[72].mxu1 %vm265_vm3, %v240_v63  ;;  %7918 = vmatmul.mubr.msk.bf16.gmra.mrb[72].mxu0 %vm265_vm3, %v2723_v1  ;;  %v3330_v63 = vld [vmem:[%s13764_s0 + $0x8c] sm:$0xff]  ;;  %v250_v1 = vpack.c.bf16 %v198_v61, %v197_v60  ;;  %v216_v60 = vld [vmem:[%s13764_s0 + $0x259] sm:$0xff] }
  0x99   :  { %7257 = vmatprep.mubr.msk.bf16.mxu1 %vm9911_vm2, %v9909_v0  ;;  %7921 = vmatprep.mubr.msk.bf16.mxu0 %vm9911_vm2, %v9909_v0  ;;  %v10507_v2 = vpack.c.bf16 %v3330_v63, %v3329_v62  ;;  %v3347_v61 = vld [vmem:[%s13764_s0 + $0x114] sm:$0xff]  ;;  %v3348_v62 = vld [vmem:[%s13764_s0 + $0x11c] sm:$0xff] }
  0xa0   :  { %7258 = vmatmul.mubr.msk.bf16.gmra.mrb[76].mxu1 %vm265_vm3, %v241_v7  ;;  %7922 = vmatmul.mubr.msk.bf16.gmra.mrb[76].mxu0 %vm265_vm3, %v2724_v8  ;;  %v3332_v7 = vld [vmem:[%s13764_s0 + $0x9c] sm:$0xff]  ;;  %v251_v8 = vpack.c.bf16 %v200_v4, %v199_v3  ;;  %v218_v4 = vld [vmem:[%s13764_s0 + $0x269] sm:$0xff] }
  0xa1   :  { %7261 = vmatprep.mubr.msk.bf16.mxu1 %vm9911_vm2, %v9909_v0  ;;  %7925 = vmatprep.mubr.msk.bf16.mxu0 %vm9911_vm2, %v9909_v0  ;;  %v10528_v9 = vpack.c.bf16 %v3332_v7, %v3331_v6  ;;  %v217_v3 = vld [vmem:[%s13764_s0 + $0x261] sm:$0xff]  ;;  %v3350_v7 = vld [vmem:[%s13764_s0 + $0x12c] sm:$0xff] }
  0xa2   :  { %v3349_v6 = vld [vmem:[%s13764_s0 + $0x124] sm:$0xff] }
  0xa8   :  { %7262 = vmatmul.mubr.msk.bf16.gmra.mrb[80].mxu1 %vm265_vm3, %v242_v14  ;;  %7926 = vmatmul.mubr.msk.bf16.gmra.mrb[80].mxu0 %vm265_vm3, %v2725_v15  ;;  %v3334_v14 = vld [vmem:[%s13764_s0 + $0xac] sm:$0xff]  ;;  %v252_v15 = vpack.c.bf16 %v202_v12, %v201_v11  ;;  %v10717_v11 = vpack.c.bf16 %v3350_v7, %v3349_v6 }
  0xa9   :  { %7265 = vmatprep.mubr.msk.bf16.mxu1 %vm9911_vm2, %v9909_v0  ;;  %8011 = vmatprep.mubr.msk.bf16.mxu0 %vm9911_vm2, %v9909_v0  ;;  %v10549_v16 = vpack.c.bf16 %v3334_v14, %v3333_v13  ;;  %v219_v12 = vld [vmem:[%s13764_s0 + $0x271] sm:$0xff]  ;;  %v220_v13 = vld [vmem:[%s13764_s0 + $0x279] sm:$0xff] }
  0xaa   :  { %v3351_v14 = vld [vmem:[%s13764_s0 + $0x134] sm:$0xff] }
  0xb0   :  { %7266 = vmatmul.mubr.msk.bf16.gmra.mrb[84].mxu1 %vm265_vm3, %v243_v21  ;;  %8012 = vmatmul.mubr.msk.bf16.vlgmr.msra.gmra.mrb[0].mxu0 %vm265_vm3, %v3396_v22  ;;  %v253_v21 = vpack.c.bf16 %v204_v18, %v203_v17  ;;  %v10570_v22 = vpack.c.bf16 %v3336_v20, %v3335_v19  ;;  %v261_v17 = vpack.c.bf16 %v220_v13, %v219_v12  ;;  %v221_v19 = vld [vmem:[%s13764_s0 + $0x281] sm:$0xff]  ;;  %v29_v12 = vld [vmem:[%s13764_s0 + $0x58] sm:$0xff] }
  0xb1   :  { %8176 = vmatpush3.bf16.msra.mxu0 %v4254_v23  ;;  %7269 = vmatprep.mubr.msk.bf16.mxu1 %vm9911_vm2, %v9909_v0  ;;  %v205_v23 = vld [vmem:[%s13764_s0 + $0x201] sm:$0xff] }
  0xb2   :  { %8015 = vmatprep.mubr.msk.bf16.mxu0 %vm9911_vm2, %v9909_v0  ;;  %8341 = vmatprep.subr.bf16.mxu0 %v9909_v0  ;;  %v254_v27 = vpack.c.bf16 %v206_v24, %v205_v23  ;;  %v3353_v20 = vld [vmem:[%s13764_s0 + $0x144] sm:$0xff]  ;;  %v262_v23 = vpack.c.bf16 %v221_v19, %v221_v19 }
  0xb3   :  { %v3365_v13 = vld [vmem:[%s13764_s0 + $0x1a4] sm:$0xff] }
  0xb4   :  { %v30_v19 = vld [vmem:[%s13764_s0 + $0x60] sm:$0xff] }
  0xb8   :  { %7270 = vmatmul.mubr.msk.bf16.gmra.mrb[88].mxu1 %vm265_vm3, %v244_v28  ;;  %8016 = vmatmul.mubr.msk.bf16.gmra.mrb[4].mxu0 %vm265_vm3, %v10381_v29  ;;  %v10591_v28 = vpack.c.bf16 %v3338_v26, %v3337_v25  ;;  %v18_v25 = vld [vmem:[%s13764_s0] sm:$0xff]  ;;  %v19_v26 = vld [vmem:[%s13764_s0 + $0x8] sm:$0xff] }
  0xb9   :  { %7273 = vmatprep.mubr.msk.bf16.mxu1 %vm9911_vm2, %v9909_v0  ;;  %8019 = vmatprep.mubr.msk.bf16.mxu0 %vm9911_vm2, %v9909_v0  ;;  %v99_v32 = vpack.c.bf16 %v19_v26, %v18_v25 }
  0xc0   :  { %7274 = vmatmul.mubr.msk.bf16.gmra.mrb[92].mxu1 %vm265_vm3, %v245_v34  ;;  %8020 = vmatmul.mubr.msk.bf16.gmra.mrb[8].mxu0 %vm265_vm3, %v10402_v35  ;;  %v255_v34 = vpack.c.bf16 %v208_v31, %v207_v30  ;;  %v3356_v30 = vld [vmem:[%s13764_s0 + $0x15c] sm:$0xff]  ;;  %v6505_v31 = vld [vmem:[%s13763_s1 + $0x4] sm:$0x3] }
  0xc1   :  { %7277 = vmatprep.mubr.msk.bf16.mxu1 %vm9911_vm2, %v9909_v0  ;;  %8023 = vmatprep.mubr.msk.bf16.mxu0 %vm9911_vm2, %v9909_v0 }
  0xc8   :  { %7278 = vmatmul.mubr.msk.bf16.gmra.mrb[96].mxu1 %vm265_vm3, %v246_v40  ;;  %8024 = vmatmul.mubr.msk.bf16.gmra.mrb[12].mxu0 %vm265_vm3, %v10423_v41  ;;  %v3342_v40 = vld [vmem:[%s13764_s0 + $0xec] sm:$0xff] }
  0xc9   :  { %7281 = vmatprep.mubr.msk.bf16.mxu1 %vm9911_vm2, %v9909_v0  ;;  %8027 = vmatprep.mubr.msk.bf16.mxu0 %vm9911_vm2, %v9909_v0  ;;  %v10633_v43 = vpack.c.bf16 %v3342_v40, %v3341_v39  ;;  %v3357_v39 = vld [vmem:[%s13764_s0 + $0x164] sm:$0xff]  ;;  %v3358_v40 = vld [vmem:[%s13764_s0 + $0x16c] sm:$0xff] }
  0xca   :  { %v10803_v44 = vpack.c.bf16 %v3358_v40, %v3357_v39  ;;  %v35_v39 = vld [vmem:[%s13764_s0 + $0x88] sm:$0xff]  ;;  %v3371_v40 = vld [vmem:[%s13764_s0 + $0x1d4] sm:$0xff] }
  0xd0   :  { %7282 = vmatmul.mubr.msk.bf16.gmra.mrb[100].mxu1 %vm265_vm3, %v247_v46  ;;  %8028 = vmatmul.mubr.msk.bf16.gmra.mrb[16].mxu0 %vm265_vm3, %v10444_v47  ;;  %v3343_v46 = vld [vmem:[%s13764_s0 + $0xf4] sm:$0xff] }
  0xd1   :  { %7285 = vmatprep.mubr.msk.bf16.mxu1 %vm9911_vm2, %v9909_v0  ;;  %8031 = vmatprep.mubr.msk.bf16.mxu0 %vm9911_vm2, %v9909_v0  ;;  %v10654_v50 = vpack.c.bf16 %v3344_v48, %v3343_v46  ;;  %v23_v46 = vld [vmem:[%s13764_s0 + $0x28] sm:$0xff]  ;;  %v3359_v48 = vld [vmem:[%s13764_s0 + $0x174] sm:$0xff] }
  0xd8   :  { %7286 = vmatmul.mubr.msk.bf16.gmra.mrb[104].mxu1 %vm265_vm3, %v248_v52  ;;  %8032 = vmatmul.mubr.msk.bf16.gmra.mrb[20].mxu0 %vm265_vm3, %v10465_v53  ;;  %v214_v52 = vld [vmem:[%s13764_s0 + $0x249] sm:$0xff] }
  0xd9   :  { %7289 = vmatprep.mubr.msk.bf16.mxu1 %vm9911_vm2, %v9909_v0  ;;  %8035 = vmatprep.mubr.msk.bf16.mxu0 %vm9911_vm2, %v9909_v0  ;;  %v258_v56 = vpack.c.bf16 %v214_v52, %v213_v51  ;;  %v101_v51 = vpack.c.bf16 %v23_v46, %v22_v45 }
  0xe0   :  { %7290 = vmatmul.mubr.msk.bf16.gmra.mrb[108].mxu1 %vm265_vm3, %v249_v58  ;;  %8036 = vmatmul.mubr.msk.bf16.gmra.mrb[24].mxu0 %vm265_vm3, %v10486_v59  ;;  %v215_v58 = vld [vmem:[%s13764_s0 + $0x251] sm:$0xff] }
  0xe1   :  { %7293 = vmatprep.mubr.msk.bf16.mxu1 %vm9911_vm2, %v9909_v0  ;;  %8039 = vmatprep.mubr.msk.bf16.mxu0 %vm9911_vm2, %v9909_v0  ;;  %v259_v63 = vpack.c.bf16 %v216_v60, %v215_v58  ;;  %v3362_v58 = vld [vmem:[%s13764_s0 + $0x18c] sm:$0xff]  ;;  %v102_v60 = vpack.c.bf16 %v25_v55, %v24_v54 }
  0xe2   :  { %v3374_v54 = vld [vmem:[%s13764_s0 + $0x1ec] sm:$0xff] }
  0xe8   :  { %7294 = vmatmul.mubr.msk.bf16.gmra.mrb[112].mxu1 %vm265_vm3, %v250_v1  ;;  %8040 = vmatmul.mubr.msk.bf16.gmra.mrb[28].mxu0 %vm265_vm3, %v10507_v2  ;;  %v10696_v1 = vpack.c.bf16 %v3348_v62, %v3347_v61  ;;  %v26_v62 = vld [vmem:[%s13764_s0 + $0x40] sm:$0xff] }
  0xe9   :  { %7297 = vmatprep.mubr.msk.bf16.mxu1 %vm9911_vm2, %v9909_v0  ;;  %8043 = vmatprep.mubr.msk.bf16.mxu0 %vm9911_vm2, %v9909_v0 }
  0xf0   :  { %7298 = vmatmul.mubr.msk.bf16.gmra.mrb[116].mxu1 %vm265_vm3, %v251_v8  ;;  %8044 = vmatmul.mubr.msk.bf16.gmra.mrb[32].mxu0 %vm265_vm3, %v10528_v9  ;;  %v260_v8 = vpack.c.bf16 %v218_v4, %v217_v3  ;;  %v3363_v3 = vld [vmem:[%s13764_s0 + $0x194] sm:$0xff]  ;;  %v3364_v4 = vld [vmem:[%s13764_s0 + $0x19c] sm:$0xff] }
  0xf1   :  { %7301 = vmatprep.mubr.msk.bf16.mxu1 %vm9911_vm2, %v9909_v0  ;;  %8047 = vmatprep.mubr.msk.bf16.mxu0 %vm9911_vm2, %v9909_v0  ;;  %v10866_v7 = vpack.c.bf16 %v3364_v4, %v3363_v3 }
  0xf8   :  { %7302 = vmatmul.mubr.msk.bf16.gmra.mrb[120].mxu1 %vm265_vm3, %v252_v15  ;;  %8048 = vmatmul.mubr.msk.bf16.gmra.mrb[36].mxu0 %vm265_vm3, %v10549_v16  ;;  %v3352_v15 = vld [vmem:[%s13764_s0 + $0x13c] sm:$0xff] }
  0xf9   :  { %7305 = vmatprep.mubr.msk.bf16.mxu1 %vm9911_vm2, %v9909_v0  ;;  %8051 = vmatprep.mubr.msk.bf16.mxu0 %vm9911_vm2, %v9909_v0  ;;  %v10738_v18 = vpack.c.bf16 %v3352_v15, %v3351_v14  ;;  %v3366_v14 = vld [vmem:[%s13764_s0 + $0x1ac] sm:$0xff] }
 0x100   :  { %7306 = vmatmul.mubr.msk.bf16.gmra.mrb[124].mxu1 %vm265_vm3, %v253_v21  ;;  %8052 = vmatmul.mubr.msk.bf16.gmra.mrb[40].mxu0 %vm265_vm3, %v10570_v22  ;;  %v3354_v21 = vld [vmem:[%s13764_s0 + $0x14c] sm:$0xff] }
 0x101   :  { %7309 = vmatprep.mubr.msk.bf16.mxu1 %vm9911_vm2, %v9909_v0  ;;  %8055 = vmatprep.mubr.msk.bf16.mxu0 %vm9911_vm2, %v9909_v0  ;;  %v10756_v24 = vpack.c.bf16 %v3354_v21, %v3353_v20  ;;  %v31_v20 = vld [vmem:[%s13764_s0 + $0x68] sm:$0xff]  ;;  %v3367_v21 = vld [vmem:[%s13764_s0 + $0x1b4] sm:$0xff] }
 0x102   :  { %v105_v25 = vpack.c.bf16 %v31_v20, %v30_v19  ;;  %v42_v19 = vld [vmem:[%s13764_s0 + $0xc0] sm:$0xff]  ;;  %v43_v20 = vld [vmem:[%s13764_s0 + $0xc8] sm:$0xff] }
 0x108   :  { %7310 = vmatmul.mubr.msk.bf16.gmra.mrb[128].mxu1 %vm265_vm3, %v254_v27  ;;  %8056 = vmatmul.mubr.msk.bf16.gmra.mrb[44].mxu0 %vm265_vm3, %v10591_v28  ;;  %v3355_v27 = vld [vmem:[%s13764_s0 + $0x154] sm:$0xff] }
 0x109   :  { %7313 = vmatprep.mubr.msk.bf16.mxu1 %vm9911_vm2, %v9909_v0  ;;  %8059 = vmatprep.mubr.msk.bf16.mxu0 %vm9911_vm2, %v9909_v0  ;;  %v10780_v33 = vpack.c.bf16 %v3356_v30, %v3355_v27  ;;  %v32_v27 = vld [vmem:[%s13764_s0 + $0x70] sm:$0xff]  ;;  %v33_v30 = vld [vmem:[%s13764_s0 + $0x78] sm:$0xff] }
 0x110   :  { %7314 = vmatmul.mubr.msk.bf16.gmra.mrb[132].mxu1 %vm265_vm3, %v255_v34  ;;  %8060 = vmatmul.mubr.msk.bf16.gmra.mrb[48].mxu0 %vm265_vm3, %v10612_v36  ;;  %v1490_v34 = vand.u32 %v6505_v31, %v9945_v5  ;;  %v3369_v31 = vld [vmem:[%s13764_s0 + $0x1c4] sm:$0xff] }
 0x111   :  { %7317 = vmatprep.mubr.msk.bf16.mxu1 %vm9911_vm2, %v9909_v0  ;;  %8063 = vmatprep.mubr.msk.bf16.mxu0 %vm9911_vm2, %v9909_v0 }
 0x118   :  { %7318 = vmatmul.mubr.msk.bf16.gmra.mrb[136].mxu1 %vm265_vm3, %v256_v42  ;;  %8064 = vmatmul.mubr.msk.bf16.gmra.mrb[52].mxu0 %vm265_vm3, %v10633_v43  ;;  %v100_v42 = vpack.c.bf16 %v21_v38, %v20_v37  ;;  %v34_v38 = vld [vmem:[%s13764_s0 + $0x80] sm:$0xff] }
 0x119   :  { %7321 = vmatprep.mubr.msk.bf16.mxu1 %vm9911_vm2, %v9909_v0  ;;  %8067 = vmatprep.mubr.msk.bf16.mxu0 %vm9911_vm2, %v9909_v0  ;;  %v107_v45 = vpack.c.bf16 %v35_v39, %v34_v38 }
 0x120   :  { %7322 = vmatmul.mubr.msk.bf16.gmra.mrb[140].mxu1 %vm265_vm3, %v257_v49  ;;  %8068 = vmatmul.mubr.msk.bf16.gmra.mrb[56].mxu0 %vm265_vm3, %v10654_v50  ;;  %v3360_v49 = vld [vmem:[%s13764_s0 + $0x17c] sm:$0xff] }
 0x121   :  { %7325 = vmatprep.mubr.msk.bf16.mxu1 %vm9911_vm2, %v9909_v0  ;;  %8071 = vmatprep.mubr.msk.bf16.mxu0 %vm9911_vm2, %v9909_v0  ;;  %v10824_v52 = vpack.c.bf16 %v3360_v49, %v3359_v48  ;;  %v36_v48 = vld [vmem:[%s13764_s0 + $0x90] sm:$0xff]  ;;  %v37_v49 = vld [vmem:[%s13764_s0 + $0x98] sm:$0xff] }
 0x122   :  { %v108_v55 = vpack.c.bf16 %v37_v49, %v36_v48  ;;  %v3384_v48 = vld [vmem:[%s13764_s0 + $0x23c] sm:$0xff] }
 0x128   :  { %7326 = vmatmul.mubr.msk.bf16.gmra.mrb[144].mxu1 %vm265_vm3, %v258_v56  ;;  %8072 = vmatmul.mubr.msk.bf16.gmra.mrb[60].mxu0 %vm265_vm3, %v10675_v57  ;;  %v3361_v56 = vld [vmem:[%s13764_s0 + $0x184] sm:$0xff] }
 0x129   :  { %7329 = vmatprep.mubr.msk.bf16.mxu1 %vm9911_vm2, %v9909_v0  ;;  %8075 = vmatprep.mubr.msk.bf16.mxu0 %vm9911_vm2, %v9909_v0  ;;  %v10845_v61 = vpack.c.bf16 %v3362_v58, %v3361_v56  ;;  %v38_v58 = vld [vmem:[%s13764_s0 + $0xa0] sm:$0xff] }
 0x130   :  { %7330 = vmatmul.mubr.msk.bf16.gmra.mrb[148].mxu1 %vm265_vm3, %v259_v63  ;;  %8076 = vmatmul.mubr.msk.bf16.gmra.mrb[64].mxu0 %vm265_vm3, %v10696_v1  ;;  %v27_v63 = vld [vmem:[%s13764_s0 + $0x48] sm:$0xff] }
 0x131   :  { %7333 = vmatprep.mubr.msk.bf16.mxu1 %vm9911_vm2, %v9909_v0  ;;  %8079 = vmatprep.mubr.msk.bf16.mxu0 %vm9911_vm2, %v9909_v0  ;;  %v103_v6 = vpack.c.bf16 %v27_v63, %v26_v62  ;;  %v3375_v62 = vld [vmem:[%s13764_s0 + $0x1f4] sm:$0xff]  ;;  %v3376_v63 = vld [vmem:[%s13764_s0 + $0x1fc] sm:$0xff] }
 0x132   :  { %v10992_v4 = vpack.c.bf16 %v3376_v63, %v3375_v62 }
 0x138   :  { %7334 = vmatmul.mubr.msk.bf16.gmra.mrb[152].mxu1 %vm265_vm3, %v260_v8  ;;  %8080 = vmatmul.mubr.msk.bf16.gmra.mrb[68].mxu0 %vm265_vm3, %v10717_v11  ;;  %v28_v8 = vld [vmem:[%s13764_s0 + $0x50] sm:$0xff] }
 0x139   :  { %7337 = vmatprep.mubr.msk.bf16.mxu1 %vm9911_vm2, %v9909_v0  ;;  %8083 = vmatprep.mubr.msk.bf16.mxu0 %vm9911_vm2, %v9909_v0  ;;  %v104_v15 = vpack.c.bf16 %v29_v12, %v28_v8  ;;  %v41_v8 = vld [vmem:[%s13764_s0 + $0xb8] sm:$0xff]  ;;  %v3377_v12 = vld [vmem:[%s13764_s0 + $0x204] sm:$0xff] }
 0x140   :  { %7338 = vmatmul.mubr.msk.bf16.gmra.mrb[156].mxu1 %vm265_vm3, %v261_v17  ;;  %8084 = vmatmul.mubr.msk.bf16.gmra.mrb[72].mxu0 %vm265_vm3, %v10738_v18  ;;  %v10887_v17 = vpack.c.bf16 %v3366_v14, %v3365_v13  ;;  %v3378_v13 = vld [vmem:[%s13764_s0 + $0x20c] sm:$0xff] }
 0x141   :  { %7341 = vmatprep.mubr.msk.bf16.mxu1 %vm9911_vm2, %v9909_v0  ;;  %8087 = vmatprep.mubr.msk.bf16.mxu0 %vm9911_vm2, %v9909_v0 }
 0x148   :  { %7342 = vmatmul.mubr.msk.bf16.gmra.mrb[160].mxu1 %vm265_vm3, %v262_v23  ;;  %8088 = vmatmul.mubr.msk.bf16.gmra.mrb[76].mxu0 %vm265_vm3, %v10756_v24  ;;  %v3368_v23 = vld [vmem:[%s13764_s0 + $0x1bc] sm:$0xff] }
 0x149   :  { %7347 = vmatprep.mubr.msk.bf16.mxu1 %vm9911_vm2, %v9909_v0  ;;  %8091 = vmatprep.mubr.msk.bf16.mxu0 %vm9911_vm2, %v9909_v0  ;;  %v10908_v26 = vpack.c.bf16 %v3368_v23, %v3367_v21  ;;  %v3379_v21 = vld [vmem:[%s13764_s0 + $0x214] sm:$0xff]  ;;  %v3380_v23 = vld [vmem:[%s13764_s0 + $0x21c] sm:$0xff] }
 0x150   :  { %7348 = vmatmul.mubr.msk.bf16.vlgmr.msra.gmra.mrb[0].mxu1 %vm265_vm3, %v99_v32  ;;  %8092 = vmatmul.mubr.msk.bf16.gmra.mrb[80].mxu0 %vm265_vm3, %v10780_v33  ;;  %v3370_v32 = vld [vmem:[%s13764_s0 + $0x1cc] sm:$0xff] }
 0x151   :  { %7351 = vmatprep.mubr.msk.bf16.mxu1 %vm9911_vm2, %v9909_v0  ;;  %8095 = vmatprep.mubr.msk.bf16.mxu0 %vm9911_vm2, %v9909_v0  ;;  %v10929_v37 = vpack.c.bf16 %v3370_v32, %v3369_v31  ;;  %v45_v31 = vld [vmem:[%s13764_s0 + $0xd8] sm:$0xff]  ;;  %v3381_v32 = vld [vmem:[%s13764_s0 + $0x224] sm:$0xff] }
 0x152   :  { %7512 = vmatpush3.bf16.msra.mxu1 %v1490_v34  ;;  %v106_v34 = vpack.c.bf16 %v33_v30, %v32_v27  ;;  %v11034_v27 = vpack.c.bf16 %v3380_v23, %v3379_v21  ;;  %v44_v30 = vld [vmem:[%s13764_s0 + $0xd0] sm:$0xff]  ;;  %v3389_v21 = vld [vmem:[%s13764_s0 + $0x264] sm:$0xff] }
 0x153   :  { %7677 = vmatprep.subr.bf16.mxu1 %v9909_v0  ;;  %v112_v38 = vpack.c.bf16 %v45_v31, %v44_v30  ;;  %v3390_v23 = vld [vmem:[%s13764_s0 + $0x26c] sm:$0xff]  ;;  %v54_v31 = vld [vmem:[%s13764_s0 + $0x120] sm:$0xff] }
 0x154   :  { %v11139_v30 = vpack.c.bf16 %v3390_v23, %v3389_v21  ;;  %v62_v23 = vld [vmem:[%s13764_s0 + $0x160] sm:$0xff] }
 0x158   :  { %7352 = vmatmul.mubr.msk.bf16.gmra.mrb[4].mxu1 %vm265_vm3, %v100_v42  ;;  %8096 = vmatmul.mubr.msk.bf16.gmra.mrb[84].mxu0 %vm265_vm3, %v10803_v44  ;;  %v3372_v42 = vld [vmem:[%s13764_s0 + $0x1dc] sm:$0xff] }
 0x159   :  { %7355 = vmatprep.mubr.msk.bf16.mxu1 %vm9911_vm2, %v9909_v0  ;;  %8099 = vmatprep.mubr.msk.bf16.mxu0 %vm9911_vm2, %v9909_v0  ;;  %v10950_v46 = vpack.c.bf16 %v3372_v42, %v3371_v40  ;;  %v46_v40 = vld [vmem:[%s13764_s0 + $0xe0] sm:$0xff]  ;;  %v47_v42 = vld [vmem:[%s13764_s0 + $0xe8] sm:$0xff] }
 0x15a   :  { %v113_v49 = vpack.c.bf16 %v47_v42, %v46_v40 }
 0x160   :  { %7356 = vmatmul.mubr.msk.bf16.gmra.mrb[8].mxu1 %vm265_vm3, %v101_v51  ;;  %8100 = vmatmul.mubr.msk.bf16.gmra.mrb[88].mxu0 %vm265_vm3, %v10824_v52  ;;  %v3373_v51 = vld [vmem:[%s13764_s0 + $0x1e4] sm:$0xff] }
 0x161   :  { %7359 = vmatprep.mubr.msk.bf16.mxu1 %vm9911_vm2, %v9909_v0  ;;  %8103 = vmatprep.mubr.msk.bf16.mxu0 %vm9911_vm2, %v9909_v0  ;;  %v10971_v56 = vpack.c.bf16 %v3374_v54, %v3373_v51  ;;  %v48_v54 = vld [vmem:[%s13764_s0 + $0xf0] sm:$0xff] }
 0x168   :  { %7360 = vmatmul.mubr.msk.bf16.gmra.mrb[12].mxu1 %vm265_vm3, %v102_v60  ;;  %8104 = vmatmul.mubr.msk.bf16.gmra.mrb[92].mxu0 %vm265_vm3, %v10845_v61  ;;  %v39_v60 = vld [vmem:[%s13764_s0 + $0xa8] sm:$0xff] }
 0x169   :  { %7363 = vmatprep.mubr.msk.bf16.mxu1 %vm9911_vm2, %v9909_v0  ;;  %8107 = vmatprep.mubr.msk.bf16.mxu0 %vm9911_vm2, %v9909_v0  ;;  %v109_v3 = vpack.c.bf16 %v39_v60, %v38_v58  ;;  %v3385_v58 = vld [vmem:[%s13764_s0 + $0x244] sm:$0xff]  ;;  %v3386_v60 = vld [vmem:[%s13764_s0 + $0x24c] sm:$0xff] }
 0x16a   :  { %v11097_v63 = vpack.c.bf16 %v3386_v60, %v3385_v58  ;;  %v58_v60 = vld [vmem:[%s13764_s0 + $0x140] sm:$0xff] }
 0x170   :  { %7364 = vmatmul.mubr.msk.bf16.gmra.mrb[16].mxu1 %vm265_vm3, %v103_v6  ;;  %8108 = vmatmul.mubr.msk.bf16.gmra.mrb[96].mxu0 %vm265_vm3, %v10866_v7  ;;  %v40_v6 = vld [vmem:[%s13764_s0 + $0xb0] sm:$0xff] }
 0x171   :  { %7367 = vmatprep.mubr.msk.bf16.mxu1 %vm9911_vm2, %v9909_v0  ;;  %8111 = vmatprep.mubr.msk.bf16.mxu0 %vm9911_vm2, %v9909_v0  ;;  %v110_v14 = vpack.c.bf16 %v41_v8, %v40_v6  ;;  %v51_v6 = vld [vmem:[%s13764_s0 + $0x108] sm:$0xff]  ;;  %v3387_v8 = vld [vmem:[%s13764_s0 + $0x254] sm:$0xff] }
 0x178   :  { %7368 = vmatmul.mubr.msk.bf16.gmra.mrb[20].mxu1 %vm265_vm3, %v104_v15  ;;  %8112 = vmatmul.mubr.msk.bf16.gmra.mrb[100].mxu0 %vm265_vm3, %v10887_v17  ;;  %v11013_v15 = vpack.c.bf16 %v3378_v13, %v3377_v12  ;;  %v3388_v12 = vld [vmem:[%s13764_s0 + $0x25c] sm:$0xff] }
 0x179   :  { %7371 = vmatprep.mubr.msk.bf16.mxu1 %vm9911_vm2, %v9909_v0  ;;  %8115 = vmatprep.mubr.msk.bf16.mxu0 %vm9911_vm2, %v9909_v0 }
 0x180   :  { %7372 = vmatmul.mubr.msk.bf16.gmra.mrb[24].mxu1 %vm265_vm3, %v105_v25  ;;  %8116 = vmatmul.mubr.msk.bf16.gmra.mrb[104].mxu0 %vm265_vm3, %v10908_v26  ;;  %v111_v25 = vpack.c.bf16 %v43_v20, %v42_v19  ;;  %v52_v19 = vld [vmem:[%s13764_s0 + $0x110] sm:$0xff]  ;;  %v53_v20 = vld [vmem:[%s13764_s0 + $0x118] sm:$0xff] }
 0x181   :  { %7375 = vmatprep.mubr.msk.bf16.mxu1 %vm9911_vm2, %v9909_v0  ;;  %8119 = vmatprep.mubr.msk.bf16.mxu0 %vm9911_vm2, %v9909_v0 }
 0x188   :  { %7376 = vmatmul.mubr.msk.bf16.gmra.mrb[28].mxu1 %vm265_vm3, %v106_v34  ;;  %8120 = vmatmul.mubr.msk.bf16.gmra.mrb[108].mxu0 %vm265_vm3, %v10929_v37  ;;  %v3382_v34 = vld [vmem:[%s13764_s0 + $0x22c] sm:$0xff] }
 0x189   :  { %7379 = vmatprep.mubr.msk.bf16.mxu1 %vm9911_vm2, %v9909_v0  ;;  %8123 = vmatprep.mubr.msk.bf16.mxu0 %vm9911_vm2, %v9909_v0  ;;  %v11055_v39 = vpack.c.bf16 %v3382_v34, %v3381_v32  ;;  %v55_v32 = vld [vmem:[%s13764_s0 + $0x128] sm:$0xff]  ;;  %v3391_v34 = vld [vmem:[%s13764_s0 + $0x274] sm:$0xff] }
 0x18a   :  { %v117_v40 = vpack.c.bf16 %v55_v32, %v54_v31  ;;  %v65_v32 = vld [vmem:[%s13764_s0 + $0x178] sm:$0xff] }
 0x190   :  { %7380 = vmatmul.mubr.msk.bf16.gmra.mrb[32].mxu1 %vm265_vm3, %v107_v45  ;;  %8124 = vmatmul.mubr.msk.bf16.gmra.mrb[112].mxu0 %vm265_vm3, %v10950_v46  ;;  %v3383_v45 = vld [vmem:[%s13764_s0 + $0x234] sm:$0xff] }
 0x191   :  { %7383 = vmatprep.mubr.msk.bf16.mxu1 %vm9911_vm2, %v9909_v0  ;;  %8127 = vmatprep.mubr.msk.bf16.mxu0 %vm9911_vm2, %v9909_v0  ;;  %v11076_v51 = vpack.c.bf16 %v3384_v48, %v3383_v45  ;;  %v56_v45 = vld [vmem:[%s13764_s0 + $0x130] sm:$0xff]  ;;  %v57_v48 = vld [vmem:[%s13764_s0 + $0x138] sm:$0xff] }
 0x198   :  { %7384 = vmatmul.mubr.msk.bf16.gmra.mrb[36].mxu1 %vm265_vm3, %v108_v55  ;;  %8128 = vmatmul.mubr.msk.bf16.gmra.mrb[116].mxu0 %vm265_vm3, %v10971_v56  ;;  %v49_v55 = vld [vmem:[%s13764_s0 + $0xf8] sm:$0xff] }
 0x199   :  { %7387 = vmatprep.mubr.msk.bf16.mxu1 %vm9911_vm2, %v9909_v0  ;;  %8131 = vmatprep.mubr.msk.bf16.mxu0 %vm9911_vm2, %v9909_v0  ;;  %v114_v62 = vpack.c.bf16 %v49_v55, %v48_v54  ;;  %v3394_v54 = vld [vmem:[%s13764_s0 + $0x28c] sm:$0xff]  ;;  %v118_v55 = vpack.c.bf16 %v57_v48, %v56_v45  ;;  %v69_v45 = vld [vmem:[%s13764_s0 + $0x198] sm:$0xff] }
 0x1a0   :  { %7388 = vmatmul.mubr.msk.bf16.gmra.mrb[40].mxu1 %vm265_vm3, %v109_v3  ;;  %8132 = vmatmul.mubr.msk.bf16.gmra.mrb[120].mxu0 %vm265_vm3, %v10992_v4  ;;  %v50_v3 = vld [vmem:[%s13764_s0 + $0x100] sm:$0xff] }
 0x1a1   :  { %7391 = vmatprep.mubr.msk.bf16.mxu1 %vm9911_vm2, %v9909_v0  ;;  %8135 = vmatprep.mubr.msk.bf16.mxu0 %vm9911_vm2, %v9909_v0  ;;  %v115_v13 = vpack.c.bf16 %v51_v6, %v50_v3  ;;  %v11199_v3 = vld [vmem:[%s13764_s0 + $0x294] sm:$0xff] }
 0x1a8   :  { %7392 = vmatmul.mubr.msk.bf16.gmra.mrb[44].mxu1 %vm265_vm3, %v110_v14  ;;  %8136 = vmatmul.mubr.msk.bf16.gmra.mrb[124].mxu0 %vm265_vm3, %v11013_v15  ;;  %v11118_v14 = vpack.c.bf16 %v3388_v12, %v3387_v8  ;;  %v3436_v8 = vpack.c.bf16 %v11199_v3, %v11199_v3  ;;  %v60_v12 = vld [vmem:[%s13764_s0 + $0x150] sm:$0xff] }
 0x1a9   :  { %7395 = vmatprep.mubr.msk.bf16.mxu1 %vm9911_vm2, %v9909_v0  ;;  %8139 = vmatprep.mubr.msk.bf16.mxu0 %vm9911_vm2, %v9909_v0 }
 0x1b0   :  { %7396 = vmatmul.mubr.msk.bf16.gmra.mrb[48].mxu1 %vm265_vm3, %v111_v25  ;;  %8140 = vmatmul.mubr.msk.bf16.gmra.mrb[128].mxu0 %vm265_vm3, %v11034_v27  ;;  %v116_v25 = vpack.c.bf16 %v53_v20, %v52_v19  ;;  %v6715_v19 = vld [vmem:[%s13763_s1 + $0xe] sm:$0x3] }
 0x1b1   :  { %7399 = vmatprep.mubr.msk.bf16.mxu1 %vm9911_vm2, %v9909_v0  ;;  %8143 = vmatprep.mubr.msk.bf16.mxu0 %vm9911_vm2, %v9909_v0  ;;  %v4945_v21 = vand.u32 %v6715_v19, %v9945_v5 }
 0x1b8   :  { %7400 = vmatmul.mubr.msk.bf16.gmra.mrb[52].mxu1 %vm265_vm3, %v112_v38  ;;  %8144 = vmatmul.mubr.msk.bf16.gmra.mrb[132].mxu0 %vm265_vm3, %v11055_v39  ;;  %v3392_v38 = vld [vmem:[%s13764_s0 + $0x27c] sm:$0xff] }
 0x1b9   :  { %7403 = vmatprep.mubr.msk.bf16.mxu1 %vm9911_vm2, %v9909_v0  ;;  %8147 = vmatprep.mubr.msk.bf16.mxu0 %vm9911_vm2, %v9909_v0  ;;  %v11160_v42 = vpack.c.bf16 %v3392_v38, %v3391_v34  ;;  %v67_v38 = vld [vmem:[%s13764_s0 + $0x188] sm:$0xff] }
 0x1c0   :  { %7404 = vmatmul.mubr.msk.bf16.gmra.mrb[56].mxu1 %vm265_vm3, %v113_v49  ;;  %8148 = vmatmul.mubr.msk.bf16.gmra.mrb[136].mxu0 %vm265_vm3, %v11076_v51  ;;  %v3393_v49 = vld [vmem:[%s13764_s0 + $0x284] sm:$0xff] }
 0x1c1   :  { %7407 = vmatprep.mubr.msk.bf16.mxu1 %vm9911_vm2, %v9909_v0  ;;  %8151 = vmatprep.mubr.msk.bf16.mxu0 %vm9911_vm2, %v9909_v0  ;;  %v11181_v58 = vpack.c.bf16 %v3394_v54, %v3393_v49  ;;  %v71_v49 = vld [vmem:[%s13764_s0 + $0x1a8] sm:$0xff] }
 0x1c8   :  { %7408 = vmatmul.mubr.msk.bf16.gmra.mrb[60].mxu1 %vm265_vm3, %v114_v62  ;;  %8152 = vmatmul.mubr.msk.bf16.gmra.mrb[140].mxu0 %vm265_vm3, %v11097_v63  ;;  %v59_v62 = vld [vmem:[%s13764_s0 + $0x148] sm:$0xff] }
 0x1c9   :  { %7411 = vmatprep.mubr.msk.bf16.mxu1 %vm9911_vm2, %v9909_v0  ;;  %8155 = vmatprep.mubr.msk.bf16.mxu0 %vm9911_vm2, %v9909_v0  ;;  %v119_v6 = vpack.c.bf16 %v59_v62, %v58_v60  ;;  %v75_v62 = vld [vmem:[%s13764_s0 + $0x1c8] sm:$0xff] }
 0x1d0   :  { %7412 = vmatmul.mubr.msk.bf16.gmra.mrb[64].mxu1 %vm265_vm3, %v115_v13  ;;  %8156 = vmatmul.mubr.msk.bf16.gmra.mrb[144].mxu0 %vm265_vm3, %v11118_v14  ;;  %v61_v13 = vld [vmem:[%s13764_s0 + $0x158] sm:$0xff] }
 0x1d1   :  { %7415 = vmatprep.mubr.msk.bf16.mxu1 %vm9911_vm2, %v9909_v0  ;;  %8159 = vmatprep.mubr.msk.bf16.mxu0 %vm9911_vm2, %v9909_v0  ;;  %v120_v20 = vpack.c.bf16 %v61_v13, %v60_v12  ;;  %v79_v13 = vld [vmem:[%s13764_s0 + $0x1e8] sm:$0xff] }
 0x1d8   :  { %7416 = vmatmul.mubr.msk.bf16.gmra.mrb[68].mxu1 %vm265_vm3, %v116_v25  ;;  %8160 = vmatmul.mubr.msk.bf16.gmra.mrb[148].mxu0 %vm265_vm3, %v11139_v30  ;;  %v63_v25 = vld [vmem:[%s13764_s0 + $0x168] sm:$0xff] }
 0x1d9   :  { %7419 = vmatprep.mubr.msk.bf16.mxu1 %vm9911_vm2, %v9909_v0  ;;  %8163 = vmatprep.mubr.msk.bf16.mxu0 %vm9911_vm2, %v9909_v0  ;;  %v121_v31 = vpack.c.bf16 %v63_v25, %v62_v23  ;;  %v83_v23 = vld [vmem:[%s13764_s0 + $0x208] sm:$0xff] }
 0x1e0   :  { %7420 = vmatmul.mubr.msk.bf16.gmra.mrb[72].mxu1 %vm265_vm3, %v117_v40  ;;  %8164 = vmatmul.mubr.msk.bf16.gmra.mrb[152].mxu0 %vm265_vm3, %v11160_v42 }
 0x1e1   :  { %7423 = vmatprep.mubr.msk.bf16.mxu1 %vm9911_vm2, %v9909_v0  ;;  %8167 = vmatprep.mubr.msk.bf16.mxu0 %vm9911_vm2, %v9909_v0 }
 0x1e8   :  { %7424 = vmatmul.mubr.msk.bf16.gmra.mrb[76].mxu1 %vm265_vm3, %v118_v55  ;;  %8168 = vmatmul.mubr.msk.bf16.gmra.mrb[156].mxu0 %vm265_vm3, %v11181_v58  ;;  %v73_v55 = vld [vmem:[%s13764_s0 + $0x1b8] sm:$0xff] }
 0x1e9   :  { %7427 = vmatprep.mubr.msk.bf16.mxu1 %vm9911_vm2, %v9909_v0  ;;  %8171 = vmatprep.mubr.msk.bf16.mxu0 %vm9911_vm2, %v9909_v0 }
 0x1f0   :  { %7428 = vmatmul.mubr.msk.bf16.gmra.mrb[80].mxu1 %vm265_vm3, %v119_v6  ;;  %8172 = vmatmul.mubr.msk.bf16.gmra.mrb[160].mxu0 %vm265_vm3, %v3436_v8  ;;  %v77_v8 = vld [vmem:[%s13764_s0 + $0x1d8] sm:$0xff] }
 0x1f1   :  { %7431 = vmatprep.mubr.msk.bf16.mxu1 %vm9911_vm2, %v9909_v0  ;;  %8177 = vmatprep.mubr.msk.bf16.mxu0 %vm9911_vm2, %v9909_v0 }
 0x1f8   :  { %7432 = vmatmul.mubr.msk.bf16.gmra.mrb[84].mxu1 %vm265_vm3, %v120_v20  ;;  %8178 = vmatmul.mubr.msk.bf16.vlgmr.msra.gmra.mrb[0].mxu0 %vm265_vm3, %v10381_v29  ;;  %v64_v29 = vld [vmem:[%s13764_s0 + $0x170] sm:$0xff]  ;;  %v81_v20 = vld [vmem:[%s13764_s0 + $0x1f8] sm:$0xff] }
 0x1f9   :  { %8342 = vmatpush3.bf16.msra.mxu0 %v4945_v21  ;;  %7435 = vmatprep.mubr.msk.bf16.mxu1 %vm9911_vm2, %v9909_v0  ;;  %v122_v34 = vpack.c.bf16 %v65_v32, %v64_v29  ;;  %v87_v32 = vld [vmem:[%s13764_s0 + $0x228] sm:$0xff] }
 0x1fa   :  { %8181 = vmatprep.mubr.msk.bf16.mxu0 %vm9911_vm2, %v9909_v0  ;;  %8507 = vmatprep.subr.bf16.mxu0 %v9909_v0 }
 0x200   :  { %7436 = vmatmul.mubr.msk.bf16.gmra.mrb[88].mxu1 %vm265_vm3, %v121_v31  ;;  %8182 = vmatmul.mubr.msk.bf16.gmra.mrb[4].mxu0 %vm265_vm3, %v10402_v35  ;;  %v66_v35 = vld [vmem:[%s13764_s0 + $0x180] sm:$0xff]  ;;  %v85_v31 = vld [vmem:[%s13764_s0 + $0x218] sm:$0xff] }
 0x201   :  { %7439 = vmatprep.mubr.msk.bf16.mxu1 %vm9911_vm2, %v9909_v0  ;;  %8185 = vmatprep.mubr.msk.bf16.mxu0 %vm9911_vm2, %v9909_v0  ;;  %v123_v40 = vpack.c.bf16 %v67_v38, %v66_v35  ;;  %v89_v35 = vld [vmem:[%s13764_s0 + $0x238] sm:$0xff] }
 0x208   :  { %7440 = vmatmul.mubr.msk.bf16.gmra.mrb[92].mxu1 %vm265_vm3, %v122_v34  ;;  %8186 = vmatmul.mubr.msk.bf16.gmra.mrb[8].mxu0 %vm265_vm3, %v10423_v41  ;;  %v68_v41 = vld [vmem:[%s13764_s0 + $0x190] sm:$0xff] }
 0x209   :  { %7443 = vmatprep.mubr.msk.bf16.mxu1 %vm9911_vm2, %v9909_v0  ;;  %8189 = vmatprep.mubr.msk.bf16.mxu0 %vm9911_vm2, %v9909_v0  ;;  %v124_v48 = vpack.c.bf16 %v69_v45, %v68_v41  ;;  %v93_v45 = vld [vmem:[%s13764_s0 + $0x258] sm:$0xff] }
 0x210   :  { %7444 = vmatmul.mubr.msk.bf16.gmra.mrb[96].mxu1 %vm265_vm3, %v123_v40  ;;  %8190 = vmatmul.mubr.msk.bf16.gmra.mrb[12].mxu0 %vm265_vm3, %v10444_v47  ;;  %v70_v47 = vld [vmem:[%s13764_s0 + $0x1a0] sm:$0xff]  ;;  %v91_v40 = vld [vmem:[%s13764_s0 + $0x248] sm:$0xff] }
 0x211   :  { %7447 = vmatprep.mubr.msk.bf16.mxu1 %vm9911_vm2, %v9909_v0  ;;  %8193 = vmatprep.mubr.msk.bf16.mxu0 %vm9911_vm2, %v9909_v0  ;;  %v125_v54 = vpack.c.bf16 %v71_v49, %v70_v47  ;;  %v95_v47 = vld [vmem:[%s13764_s0 + $0x268] sm:$0xff] }
 0x218   :  { %7448 = vmatmul.mubr.msk.bf16.gmra.mrb[100].mxu1 %vm265_vm3, %v124_v48  ;;  %8194 = vmatmul.mubr.msk.bf16.gmra.mrb[16].mxu0 %vm265_vm3, %v10465_v53  ;;  %v72_v53 = vld [vmem:[%s13764_s0 + $0x1b0] sm:$0xff] }
 0x219   :  { %7451 = vmatprep.mubr.msk.bf16.mxu1 %vm9911_vm2, %v9909_v0  ;;  %8197 = vmatprep.mubr.msk.bf16.mxu0 %vm9911_vm2, %v9909_v0  ;;  %v126_v60 = vpack.c.bf16 %v73_v55, %v72_v53 }
 0x220   :  { %7452 = vmatmul.mubr.msk.bf16.gmra.mrb[104].mxu1 %vm265_vm3, %v125_v54  ;;  %8198 = vmatmul.mubr.msk.bf16.gmra.mrb[20].mxu0 %vm265_vm3, %v10486_v59  ;;  %v74_v59 = vld [vmem:[%s13764_s0 + $0x1c0] sm:$0xff]  ;;  %v97_v54 = vld [vmem:[%s13764_s0 + $0x278] sm:$0xff] }
 0x221   :  { %7455 = vmatprep.mubr.msk.bf16.mxu1 %vm9911_vm2, %v9909_v0  ;;  %8201 = vmatprep.mubr.msk.bf16.mxu0 %vm9911_vm2, %v9909_v0  ;;  %v127_v6 = vpack.c.bf16 %v75_v62, %v74_v59  ;;  %v6547_v59 = vld [vmem:[%s13763_s1 + $0x6] sm:$0x3] }
 0x228   :  { %7456 = vmatmul.mubr.msk.bf16.gmra.mrb[108].mxu1 %vm265_vm3, %v126_v60  ;;  %8202 = vmatmul.mubr.msk.bf16.gmra.mrb[24].mxu0 %vm265_vm3, %v10507_v2  ;;  %v76_v2 = vld [vmem:[%s13764_s0 + $0x1d0] sm:$0xff] }
 0x229   :  { %7459 = vmatprep.mubr.msk.bf16.mxu1 %vm9911_vm2, %v9909_v0  ;;  %8205 = vmatprep.mubr.msk.bf16.mxu0 %vm9911_vm2, %v9909_v0  ;;  %v128_v12 = vpack.c.bf16 %v77_v8, %v76_v2  ;;  %v1243_v60 = vld [vmem:[%s13764_s0 + $0xa] sm:$0xff]  ;;  %v1245_v2 = vld [vmem:[%s13764_s0 + $0x1a] sm:$0xff] }
 0x230   :  { %7460 = vmatmul.mubr.msk.bf16.gmra.mrb[112].mxu1 %vm265_vm3, %v127_v6  ;;  %8206 = vmatmul.mubr.msk.bf16.gmra.mrb[28].mxu0 %vm265_vm3, %v10528_v9  ;;  %v78_v9 = vld [vmem:[%s13764_s0 + $0x1e0] sm:$0xff]  ;;  %v1244_v6 = vld [vmem:[%s13764_s0 + $0x12] sm:$0xff] }
 0x231   :  { %7463 = vmatprep.mubr.msk.bf16.mxu1 %vm9911_vm2, %v9909_v0  ;;  %8209 = vmatprep.mubr.msk.bf16.mxu0 %vm9911_vm2, %v9909_v0  ;;  %v129_v19 = vpack.c.bf16 %v79_v13, %v78_v9  ;;  %v11495_v8 = vpack.c.bf16 %v1245_v2, %v1244_v6  ;;  %v1249_v13 = vld [vmem:[%s13764_s0 + $0x3a] sm:$0xff]  ;;  %v1283_v6 = vld [vmem:[%s13764_s0 + $0x14a] sm:$0xff] }
 0x238   :  { %7464 = vmatmul.mubr.msk.bf16.gmra.mrb[116].mxu1 %vm265_vm3, %v128_v12  ;;  %8210 = vmatmul.mubr.msk.bf16.gmra.mrb[32].mxu0 %vm265_vm3, %v10549_v16  ;;  %v80_v16 = vld [vmem:[%s13764_s0 + $0x1f0] sm:$0xff] }
 0x239   :  { %7467 = vmatprep.mubr.msk.bf16.mxu1 %vm9911_vm2, %v9909_v0  ;;  %8213 = vmatprep.mubr.msk.bf16.mxu0 %vm9911_vm2, %v9909_v0  ;;  %v130_v21 = vpack.c.bf16 %v81_v20, %v80_v16  ;;  %v1247_v12 = vld [vmem:[%s13764_s0 + $0x2a] sm:$0xff] }
 0x23a   :  { %v1251_v16 = vld [vmem:[%s13764_s0 + $0x4a] sm:$0xff] }
 0x240   :  { %7468 = vmatmul.mubr.msk.bf16.gmra.mrb[120].mxu1 %vm265_vm3, %v129_v19  ;;  %8214 = vmatmul.mubr.msk.bf16.gmra.mrb[36].mxu0 %vm265_vm3, %v10570_v22  ;;  %v82_v22 = vld [vmem:[%s13764_s0 + $0x200] sm:$0xff] }
 0x241   :  { %7471 = vmatprep.mubr.msk.bf16.mxu1 %vm9911_vm2, %v9909_v0  ;;  %8217 = vmatprep.mubr.msk.bf16.mxu0 %vm9911_vm2, %v9909_v0  ;;  %v131_v25 = vpack.c.bf16 %v83_v23, %v82_v22  ;;  %v1255_v23 = vld [vmem:[%s13764_s0 + $0x6a] sm:$0xff] }
 0x248   :  { %7472 = vmatmul.mubr.msk.bf16.gmra.mrb[124].mxu1 %vm265_vm3, %v130_v21  ;;  %8218 = vmatmul.mubr.msk.bf16.gmra.mrb[40].mxu0 %vm265_vm3, %v10591_v28  ;;  %v84_v28 = vld [vmem:[%s13764_s0 + $0x210] sm:$0xff]  ;;  %v1253_v21 = vld [vmem:[%s13764_s0 + $0x5a] sm:$0xff] }
 0x249   :  { %7475 = vmatprep.mubr.msk.bf16.mxu1 %vm9911_vm2, %v9909_v0  ;;  %8221 = vmatprep.mubr.msk.bf16.mxu0 %vm9911_vm2, %v9909_v0  ;;  %v132_v29 = vpack.c.bf16 %v85_v31, %v84_v28  ;;  %v1257_v28 = vld [vmem:[%s13764_s0 + $0x7a] sm:$0xff] }
 0x250   :  { %7476 = vmatmul.mubr.msk.bf16.gmra.mrb[128].mxu1 %vm265_vm3, %v131_v25  ;;  %8222 = vmatmul.mubr.msk.bf16.gmra.mrb[44].mxu0 %vm265_vm3, %v10612_v36  ;;  %v86_v36 = vld [vmem:[%s13764_s0 + $0x220] sm:$0xff] }
 0x251   :  { %7479 = vmatprep.mubr.msk.bf16.mxu1 %vm9911_vm2, %v9909_v0  ;;  %8225 = vmatprep.mubr.msk.bf16.mxu0 %vm9911_vm2, %v9909_v0  ;;  %v133_v34 = vpack.c.bf16 %v87_v32, %v86_v36  ;;  %v1261_v32 = vld [vmem:[%s13764_s0 + $0x9a] sm:$0xff] }
 0x258   :  { %7480 = vmatmul.mubr.msk.bf16.gmra.mrb[132].mxu1 %vm265_vm3, %v132_v29  ;;  %8226 = vmatmul.mubr.msk.bf16.gmra.mrb[48].mxu0 %vm265_vm3, %v10633_v43  ;;  %v88_v43 = vld [vmem:[%s13764_s0 + $0x230] sm:$0xff] }
 0x259   :  { %7483 = vmatprep.mubr.msk.bf16.mxu1 %vm9911_vm2, %v9909_v0  ;;  %8229 = vmatprep.mubr.msk.bf16.mxu0 %vm9911_vm2, %v9909_v0  ;;  %v134_v38 = vpack.c.bf16 %v89_v35, %v88_v43  ;;  %v1259_v29 = vld [vmem:[%s13764_s0 + $0x8a] sm:$0xff] }
 0x25a   :  { %v1263_v43 = vld [vmem:[%s13764_s0 + $0xaa] sm:$0xff] }
 0x260   :  { %7484 = vmatmul.mubr.msk.bf16.gmra.mrb[136].mxu1 %vm265_vm3, %v133_v34  ;;  %8230 = vmatmul.mubr.msk.bf16.gmra.mrb[52].mxu0 %vm265_vm3, %v10654_v50  ;;  %v90_v50 = vld [vmem:[%s13764_s0 + $0x240] sm:$0xff] }
 0x261   :  { %7487 = vmatprep.mubr.msk.bf16.mxu1 %vm9911_vm2, %v9909_v0  ;;  %8233 = vmatprep.mubr.msk.bf16.mxu0 %vm9911_vm2, %v9909_v0  ;;  %v135_v41 = vpack.c.bf16 %v91_v40, %v90_v50  ;;  %v1267_v40 = vld [vmem:[%s13764_s0 + $0xca] sm:$0xff] }
 0x268   :  { %7488 = vmatmul.mubr.msk.bf16.gmra.mrb[140].mxu1 %vm265_vm3, %v134_v38  ;;  %8234 = vmatmul.mubr.msk.bf16.gmra.mrb[56].mxu0 %vm265_vm3, %v10675_v57  ;;  %v92_v57 = vld [vmem:[%s13764_s0 + $0x250] sm:$0xff]  ;;  %v1265_v38 = vld [vmem:[%s13764_s0 + $0xba] sm:$0xff] }
 0x269   :  { %7491 = vmatprep.mubr.msk.bf16.mxu1 %vm9911_vm2, %v9909_v0  ;;  %8237 = vmatprep.mubr.msk.bf16.mxu0 %vm9911_vm2, %v9909_v0  ;;  %v136_v48 = vpack.c.bf16 %v93_v45, %v92_v57  ;;  %v1269_v57 = vld [vmem:[%s13764_s0 + $0xda] sm:$0xff] }
 0x270   :  { %7492 = vmatmul.mubr.msk.bf16.gmra.mrb[144].mxu1 %vm265_vm3, %v135_v41  ;;  %8238 = vmatmul.mubr.msk.bf16.gmra.mrb[60].mxu0 %vm265_vm3, %v10696_v1  ;;  %v94_v1 = vld [vmem:[%s13764_s0 + $0x260] sm:$0xff] }
 0x271   :  { %7495 = vmatprep.mubr.msk.bf16.mxu1 %vm9911_vm2, %v9909_v0  ;;  %8241 = vmatprep.mubr.msk.bf16.mxu0 %vm9911_vm2, %v9909_v0  ;;  %v137_v49 = vpack.c.bf16 %v95_v47, %v94_v1  ;;  %v1273_v47 = vld [vmem:[%s13764_s0 + $0xfa] sm:$0xff] }
 0x278   :  { %7496 = vmatmul.mubr.msk.bf16.gmra.mrb[148].mxu1 %vm265_vm3, %v136_v48  ;;  %8242 = vmatmul.mubr.msk.bf16.gmra.mrb[64].mxu0 %vm265_vm3, %v10717_v11  ;;  %v96_v11 = vld [vmem:[%s13764_s0 + $0x270] sm:$0xff] }
 0x279   :  { %7499 = vmatprep.mubr.msk.bf16.mxu1 %vm9911_vm2, %v9909_v0  ;;  %8245 = vmatprep.mubr.msk.bf16.mxu0 %vm9911_vm2, %v9909_v0  ;;  %v138_v53 = vpack.c.bf16 %v97_v54, %v96_v11  ;;  %v1271_v48 = vld [vmem:[%s13764_s0 + $0xea] sm:$0xff] }
 0x27a   :  { %v1275_v11 = vld [vmem:[%s13764_s0 + $0x10a] sm:$0xff] }
 0x280   :  { %7500 = vmatmul.mubr.msk.bf16.gmra.mrb[152].mxu1 %vm265_vm3, %v137_v49  ;;  %8246 = vmatmul.mubr.msk.bf16.gmra.mrb[68].mxu0 %vm265_vm3, %v10738_v18  ;;  %v98_v18 = vld [vmem:[%s13764_s0 + $0x280] sm:$0xff] }
 0x281   :  { %7503 = vmatprep.mubr.msk.bf16.mxu1 %vm9911_vm2, %v9909_v0  ;;  %8249 = vmatprep.mubr.msk.bf16.mxu0 %vm9911_vm2, %v9909_v0  ;;  %v139_v55 = vpack.c.bf16 %v98_v18, %v98_v18 }
 0x288   :  { %7504 = vmatmul.mubr.msk.bf16.gmra.mrb[156].mxu1 %vm265_vm3, %v138_v53  ;;  %8250 = vmatmul.mubr.msk.bf16.gmra.mrb[72].mxu0 %vm265_vm3, %v10756_v24  ;;  %v1242_v24 = vld [vmem:[%s13764_s0 + $0x2] sm:$0xff]  ;;  %v1277_v53 = vld [vmem:[%s13764_s0 + $0x11a] sm:$0xff] }
 0x289   :  { %7507 = vmatprep.mubr.msk.bf16.mxu1 %vm9911_vm2, %v9909_v0  ;;  %8253 = vmatprep.mubr.msk.bf16.mxu0 %vm9911_vm2, %v9909_v0  ;;  %v1323_v62 = vpack.c.bf16 %v1243_v60, %v1242_v24  ;;  %v1281_v60 = vld [vmem:[%s13764_s0 + $0x13a] sm:$0xff] }
 0x290   :  { %7508 = vmatmul.mubr.msk.bf16.gmra.mrb[160].mxu1 %vm265_vm3, %v139_v55  ;;  %8254 = vmatmul.mubr.msk.bf16.gmra.mrb[76].mxu0 %vm265_vm3, %v10780_v33  ;;  %v2181_v33 = vand.u32 %v6547_v59, %v9945_v5  ;;  %v1279_v55 = vld [vmem:[%s13764_s0 + $0x12a] sm:$0xff]  ;;  %v4085_v59 = vld [vmem:[%s13764_s0 + $0x29c] sm:$0xff] }
 0x291   :  { %7513 = vmatprep.mubr.msk.bf16.mxu1 %vm9911_vm2, %v9909_v0  ;;  %8257 = vmatprep.mubr.msk.bf16.mxu0 %vm9911_vm2, %v9909_v0 }
 0x298   :  { %7514 = vmatmul.mubr.msk.bf16.vlgmr.msra.gmra.mrb[0].mxu1 %vm265_vm3, %v1323_v62  ;;  %8258 = vmatmul.mubr.msk.bf16.gmra.mrb[80].mxu0 %vm265_vm3, %v10803_v44  ;;  %v1246_v44 = vld [vmem:[%s13764_s0 + $0x22] sm:$0xff] }
 0x299   :  { %7517 = vmatprep.mubr.msk.bf16.mxu1 %vm9911_vm2, %v9909_v0  ;;  %8261 = vmatprep.mubr.msk.bf16.mxu0 %vm9911_vm2, %v9909_v0  ;;  %v11511_v9 = vpack.c.bf16 %v1247_v12, %v1246_v44  ;;  %v1284_v12 = vld [vmem:[%s13764_s0 + $0x152] sm:$0xff] }
 0x29a   :  { %7678 = vmatpush3.bf16.msra.mxu1 %v2181_v33  ;;  %v1282_v33 = vld [vmem:[%s13764_s0 + $0x142] sm:$0xff] }
 0x29b   :  { %8673 = vmatprep.subr.bf16.mxu1 %v9909_v0  ;;  %v11805_v2 = vpack.c.bf16 %v1283_v6, %v1282_v33  ;;  %v1296_v33 = vld [vmem:[%s13764_s0 + $0x1b2] sm:$0xff]  ;;  %v1297_v6 = vld [vmem:[%s13764_s0 + $0x1ba] sm:$0xff] }
 0x2a0   :  { %7518 = vmatmul.mubr.msk.bf16.gmra.mrb[4].mxu1 %vm265_vm3, %v11495_v8  ;;  %8262 = vmatmul.mubr.msk.bf16.gmra.mrb[84].mxu0 %vm265_vm3, %v10824_v52  ;;  %v1248_v52 = vld [vmem:[%s13764_s0 + $0x32] sm:$0xff] }
 0x2a1   :  { %7521 = vmatprep.mubr.msk.bf16.mxu1 %vm9911_vm2, %v9909_v0  ;;  %8265 = vmatprep.mubr.msk.bf16.mxu0 %vm9911_vm2, %v9909_v0  ;;  %v11527_v19 = vpack.c.bf16 %v1249_v13, %v1248_v52  ;;  %v1285_v52 = vld [vmem:[%s13764_s0 + $0x15a] sm:$0xff]  ;;  %v4697_v13 = vld [vmem:[%s13764_s0 + $0x25] sm:$0xff] }
 0x2a8   :  { %7522 = vmatmul.mubr.msk.bf16.gmra.mrb[8].mxu1 %vm265_vm3, %v11511_v9  ;;  %8266 = vmatmul.mubr.msk.bf16.gmra.mrb[88].mxu0 %vm265_vm3, %v10845_v61  ;;  %v1250_v61 = vld [vmem:[%s13764_s0 + $0x42] sm:$0xff] }
 0x2a9   :  { %7525 = vmatprep.mubr.msk.bf16.mxu1 %vm9911_vm2, %v9909_v0  ;;  %8269 = vmatprep.mubr.msk.bf16.mxu0 %vm9911_vm2, %v9909_v0  ;;  %v11543_v20 = vpack.c.bf16 %v1251_v16, %v1250_v61  ;;  %v4698_v61 = vld [vmem:[%s13764_s0 + $0x2d] sm:$0xff] }
 0x2aa   :  { %v6757_v16 = vld [vmem:[%s13763_s1 + $0x10] sm:$0x3] }
 0x2b0   :  { %7526 = vmatmul.mubr.msk.bf16.gmra.mrb[12].mxu1 %vm265_vm3, %v11527_v19  ;;  %8270 = vmatmul.mubr.msk.bf16.gmra.mrb[92].mxu0 %vm265_vm3, %v10866_v7  ;;  %v1252_v7 = vld [vmem:[%s13764_s0 + $0x52] sm:$0xff] }
 0x2b1   :  { %7529 = vmatprep.mubr.msk.bf16.mxu1 %vm9911_vm2, %v9909_v0  ;;  %8273 = vmatprep.mubr.msk.bf16.mxu0 %vm9911_vm2, %v9909_v0  ;;  %v11559_v22 = vpack.c.bf16 %v1253_v21, %v1252_v7  ;;  %v11829_v7 = vpack.c.bf16 %v1285_v52, %v1284_v12  ;;  %v4778_v21 = vpack.c.bf16 %v4698_v61, %v4697_v13  ;;  %v1298_v13 = vld [vmem:[%s13764_s0 + $0x1c2] sm:$0xff]  ;;  %v1299_v61 = vld [vmem:[%s13764_s0 + $0x1ca] sm:$0xff] }
 0x2b2   :  { %v11956_v12 = vpack.c.bf16 %v1297_v6, %v1296_v33  ;;  %v1308_v33 = vld [vmem:[%s13764_s0 + $0x212] sm:$0xff]  ;;  %v1309_v6 = vld [vmem:[%s13764_s0 + $0x21a] sm:$0xff] }
 0x2b8   :  { %7530 = vmatmul.mubr.msk.bf16.gmra.mrb[16].mxu1 %vm265_vm3, %v11543_v20  ;;  %8274 = vmatmul.mubr.msk.bf16.gmra.mrb[96].mxu0 %vm265_vm3, %v10887_v17  ;;  %v1254_v17 = vld [vmem:[%s13764_s0 + $0x62] sm:$0xff] }
 0x2b9   :  { %7533 = vmatprep.mubr.msk.bf16.mxu1 %vm9911_vm2, %v9909_v0  ;;  %8277 = vmatprep.mubr.msk.bf16.mxu0 %vm9911_vm2, %v9909_v0  ;;  %v11575_v25 = vpack.c.bf16 %v1255_v23, %v1254_v17  ;;  %v5636_v17 = vand.u32 %v6757_v16, %v9945_v5  ;;  %v1286_v23 = vld [vmem:[%s13764_s0 + $0x162] sm:$0xff]  ;;  %v4699_v5 = vld [vmem:[%s13764_s0 + $0x35] sm:$0xff] }
 0x2ba   :  { %v4711_v16 = vld [vmem:[%s13764_s0 + $0x95] sm:$0xff] }
 0x2c0   :  { %7534 = vmatmul.mubr.msk.bf16.gmra.mrb[20].mxu1 %vm265_vm3, %v11559_v22  ;;  %8278 = vmatmul.mubr.msk.bf16.gmra.mrb[100].mxu0 %vm265_vm3, %v10908_v26  ;;  %v1256_v26 = vld [vmem:[%s13764_s0 + $0x72] sm:$0xff] }
 0x2c1   :  { %7537 = vmatprep.mubr.msk.bf16.mxu1 %vm9911_vm2, %v9909_v0  ;;  %8281 = vmatprep.mubr.msk.bf16.mxu0 %vm9911_vm2, %v9909_v0  ;;  %v11591_v31 = vpack.c.bf16 %v1257_v28, %v1256_v26  ;;  %v1287_v26 = vld [vmem:[%s13764_s0 + $0x16a] sm:$0xff]  ;;  %v4700_v28 = vld [vmem:[%s13764_s0 + $0x3d] sm:$0xff] }
 0x2c8   :  { %7538 = vmatmul.mubr.msk.bf16.gmra.mrb[24].mxu1 %vm265_vm3, %v11575_v25  ;;  %8282 = vmatmul.mubr.msk.bf16.gmra.mrb[104].mxu0 %vm265_vm3, %v10929_v37  ;;  %v1258_v37 = vld [vmem:[%s13764_s0 + $0x82] sm:$0xff] }
 0x2c9   :  { %7541 = vmatprep.mubr.msk.bf16.mxu1 %vm9911_vm2, %v9909_v0  ;;  %8285 = vmatprep.mubr.msk.bf16.mxu0 %vm9911_vm2, %v9909_v0  ;;  %v11607_v36 = vpack.c.bf16 %v1259_v29, %v1258_v37  ;;  %v11851_v37 = vpack.c.bf16 %v1287_v26, %v1286_v23  ;;  %v4779_v29 = vpack.c.bf16 %v4700_v28, %v4699_v5  ;;  %v1300_v26 = vld [vmem:[%s13764_s0 + $0x1d2] sm:$0xff]  ;;  %v1301_v5 = vld [vmem:[%s13764_s0 + $0x1da] sm:$0xff]  ;;  %v4713_v28 = vld [vmem:[%s13764_s0 + $0xa5] sm:$0xff] }
 0x2d0   :  { %7542 = vmatmul.mubr.msk.bf16.gmra.mrb[28].mxu1 %vm265_vm3, %v11591_v31  ;;  %8286 = vmatmul.mubr.msk.bf16.gmra.mrb[108].mxu0 %vm265_vm3, %v10950_v46  ;;  %v1260_v46 = vld [vmem:[%s13764_s0 + $0x92] sm:$0xff] }
 0x2d1   :  { %7545 = vmatprep.mubr.msk.bf16.mxu1 %vm9911_vm2, %v9909_v0  ;;  %8289 = vmatprep.mubr.msk.bf16.mxu0 %vm9911_vm2, %v9909_v0  ;;  %v11623_v34 = vpack.c.bf16 %v1261_v32, %v1260_v46  ;;  %v1288_v46 = vld [vmem:[%s13764_s0 + $0x172] sm:$0xff]  ;;  %v1289_v32 = vld [vmem:[%s13764_s0 + $0x17a] sm:$0xff] }
 0x2d8   :  { %7546 = vmatmul.mubr.msk.bf16.gmra.mrb[32].mxu1 %vm265_vm3, %v11607_v36  ;;  %8290 = vmatmul.mubr.msk.bf16.gmra.mrb[112].mxu0 %vm265_vm3, %v10971_v56  ;;  %v1262_v56 = vld [vmem:[%s13764_s0 + $0xa2] sm:$0xff] }
 0x2d9   :  { %7549 = vmatprep.mubr.msk.bf16.mxu1 %vm9911_vm2, %v9909_v0  ;;  %8293 = vmatprep.mubr.msk.bf16.mxu0 %vm9911_vm2, %v9909_v0  ;;  %v11639_v35 = vpack.c.bf16 %v1263_v43, %v1262_v56  ;;  %v4701_v56 = vld [vmem:[%s13764_s0 + $0x45] sm:$0xff]  ;;  %v4702_v43 = vld [vmem:[%s13764_s0 + $0x4d] sm:$0xff] }
 0x2e0   :  { %7550 = vmatmul.mubr.msk.bf16.gmra.mrb[36].mxu1 %vm265_vm3, %v11623_v34  ;;  %8294 = vmatmul.mubr.msk.bf16.gmra.mrb[116].mxu0 %vm265_vm3, %v10992_v4  ;;  %v1264_v4 = vld [vmem:[%s13764_s0 + $0xb2] sm:$0xff] }
 0x2e1   :  { %7553 = vmatprep.mubr.msk.bf16.mxu1 %vm9911_vm2, %v9909_v0  ;;  %8297 = vmatprep.mubr.msk.bf16.mxu0 %vm9911_vm2, %v9909_v0  ;;  %v11655_v50 = vpack.c.bf16 %v1265_v38, %v1264_v4  ;;  %v11872_v4 = vpack.c.bf16 %v1289_v32, %v1288_v46  ;;  %v4780_v38 = vpack.c.bf16 %v4702_v43, %v4701_v56  ;;  %v1302_v56 = vld [vmem:[%s13764_s0 + $0x1e2] sm:$0xff]  ;;  %v1303_v43 = vld [vmem:[%s13764_s0 + $0x1ea] sm:$0xff] }
 0x2e2   :  { %v11998_v46 = vpack.c.bf16 %v1301_v5, %v1300_v26 }
 0x2e8   :  { %7554 = vmatmul.mubr.msk.bf16.gmra.mrb[40].mxu1 %vm265_vm3, %v11639_v35  ;;  %8298 = vmatmul.mubr.msk.bf16.gmra.mrb[120].mxu0 %vm265_vm3, %v11013_v15  ;;  %v1266_v15 = vld [vmem:[%s13764_s0 + $0xc2] sm:$0xff] }
 0x2e9   :  { %7557 = vmatprep.mubr.msk.bf16.mxu1 %vm9911_vm2, %v9909_v0  ;;  %8301 = vmatprep.mubr.msk.bf16.mxu0 %vm9911_vm2, %v9909_v0  ;;  %v11671_v41 = vpack.c.bf16 %v1267_v40, %v1266_v15  ;;  %v1290_v15 = vld [vmem:[%s13764_s0 + $0x182] sm:$0xff]  ;;  %v1291_v40 = vld [vmem:[%s13764_s0 + $0x18a] sm:$0xff] }
 0x2f0   :  { %7558 = vmatmul.mubr.msk.bf16.gmra.mrb[44].mxu1 %vm265_vm3, %v11655_v50  ;;  %8302 = vmatmul.mubr.msk.bf16.gmra.mrb[124].mxu0 %vm265_vm3, %v11034_v27  ;;  %v1268_v27 = vld [vmem:[%s13764_s0 + $0xd2] sm:$0xff] }
 0x2f1   :  { %7561 = vmatprep.mubr.msk.bf16.mxu1 %vm9911_vm2, %v9909_v0  ;;  %8305 = vmatprep.mubr.msk.bf16.mxu0 %vm9911_vm2, %v9909_v0  ;;  %v11687_v45 = vpack.c.bf16 %v1269_v57, %v1268_v27  ;;  %v4703_v27 = vld [vmem:[%s13764_s0 + $0x55] sm:$0xff]  ;;  %v4704_v57 = vld [vmem:[%s13764_s0 + $0x5d] sm:$0xff] }
 0x2f8   :  { %7562 = vmatmul.mubr.msk.bf16.gmra.mrb[48].mxu1 %vm265_vm3, %v11671_v41  ;;  %8306 = vmatmul.mubr.msk.bf16.gmra.mrb[128].mxu0 %vm265_vm3, %v11055_v39  ;;  %v1270_v39 = vld [vmem:[%s13764_s0 + $0xe2] sm:$0xff] }
 0x2f9   :  { %7565 = vmatprep.mubr.msk.bf16.mxu1 %vm9911_vm2, %v9909_v0  ;;  %8309 = vmatprep.mubr.msk.bf16.mxu0 %vm9911_vm2, %v9909_v0  ;;  %v11703_v1 = vpack.c.bf16 %v1271_v48, %v1270_v39  ;;  %v11893_v39 = vpack.c.bf16 %v1291_v40, %v1290_v15  ;;  %v4781_v48 = vpack.c.bf16 %v4704_v57, %v4703_v27  ;;  %v4716_v15 = vld [vmem:[%s13764_s0 + $0xbd] sm:$0xff]  ;;  %v1304_v57 = vld [vmem:[%s13764_s0 + $0x1f2] sm:$0xff] }
 0x2fa   :  { %v12019_v40 = vpack.c.bf16 %v1303_v43, %v1302_v56  ;;  %v4726_v56 = vld [vmem:[%s13764_s0 + $0x10d] sm:$0xff] }
 0x300   :  { %7566 = vmatmul.mubr.msk.bf16.gmra.mrb[52].mxu1 %vm265_vm3, %v11687_v45  ;;  %8310 = vmatmul.mubr.msk.bf16.gmra.mrb[132].mxu0 %vm265_vm3, %v11076_v51  ;;  %v1272_v51 = vld [vmem:[%s13764_s0 + $0xf2] sm:$0xff] }
 0x301   :  { %7569 = vmatprep.mubr.msk.bf16.mxu1 %vm9911_vm2, %v9909_v0  ;;  %8313 = vmatprep.mubr.msk.bf16.mxu0 %vm9911_vm2, %v9909_v0  ;;  %v11719_v49 = vpack.c.bf16 %v1273_v47, %v1272_v51  ;;  %v1292_v51 = vld [vmem:[%s13764_s0 + $0x192] sm:$0xff]  ;;  %v1293_v47 = vld [vmem:[%s13764_s0 + $0x19a] sm:$0xff] }
 0x308   :  { %7570 = vmatmul.mubr.msk.bf16.gmra.mrb[56].mxu1 %vm265_vm3, %v11703_v1  ;;  %8314 = vmatmul.mubr.msk.bf16.gmra.mrb[136].mxu0 %vm265_vm3, %v11097_v63  ;;  %v1274_v63 = vld [vmem:[%s13764_s0 + $0x102] sm:$0xff] }
 0x309   :  { %7573 = vmatprep.mubr.msk.bf16.mxu1 %vm9911_vm2, %v9909_v0  ;;  %8317 = vmatprep.mubr.msk.bf16.mxu0 %vm9911_vm2, %v9909_v0  ;;  %v11735_v54 = vpack.c.bf16 %v1275_v11, %v1274_v63  ;;  %v4705_v63 = vld [vmem:[%s13764_s0 + $0x65] sm:$0xff]  ;;  %v4706_v11 = vld [vmem:[%s13764_s0 + $0x6d] sm:$0xff] }
 0x310   :  { %7574 = vmatmul.mubr.msk.bf16.gmra.mrb[60].mxu1 %vm265_vm3, %v11719_v49  ;;  %8318 = vmatmul.mubr.msk.bf16.gmra.mrb[140].mxu0 %vm265_vm3, %v11118_v14  ;;  %v1276_v14 = vld [vmem:[%s13764_s0 + $0x112] sm:$0xff] }
 0x311   :  { %7577 = vmatprep.mubr.msk.bf16.mxu1 %vm9911_vm2, %v9909_v0  ;;  %8321 = vmatprep.mubr.msk.bf16.mxu0 %vm9911_vm2, %v9909_v0  ;;  %v11751_v18 = vpack.c.bf16 %v1277_v53, %v1276_v14  ;;  %v11914_v14 = vpack.c.bf16 %v1293_v47, %v1292_v51  ;;  %v4782_v53 = vpack.c.bf16 %v4706_v11, %v4705_v63  ;;  %v4717_v51 = vld [vmem:[%s13764_s0 + $0xc5] sm:$0xff]  ;;  %v4718_v47 = vld [vmem:[%s13764_s0 + $0xcd] sm:$0xff] }
 0x312   :  { %v4788_v11 = vpack.c.bf16 %v4718_v47, %v4717_v51 }
 0x318   :  { %7578 = vmatmul.mubr.msk.bf16.gmra.mrb[64].mxu1 %vm265_vm3, %v11735_v54  ;;  %8322 = vmatmul.mubr.msk.bf16.gmra.mrb[144].mxu0 %vm265_vm3, %v11139_v30  ;;  %v1278_v30 = vld [vmem:[%s13764_s0 + $0x122] sm:$0xff] }
 0x319   :  { %7581 = vmatprep.mubr.msk.bf16.mxu1 %vm9911_vm2, %v9909_v0  ;;  %8325 = vmatprep.mubr.msk.bf16.mxu0 %vm9911_vm2, %v9909_v0  ;;  %v11767_v24 = vpack.c.bf16 %v1279_v55, %v1278_v30  ;;  %v1294_v30 = vld [vmem:[%s13764_s0 + $0x1a2] sm:$0xff]  ;;  %v1295_v55 = vld [vmem:[%s13764_s0 + $0x1aa] sm:$0xff] }
 0x320   :  { %7582 = vmatmul.mubr.msk.bf16.gmra.mrb[68].mxu1 %vm265_vm3, %v11751_v18  ;;  %8326 = vmatmul.mubr.msk.bf16.gmra.mrb[148].mxu0 %vm265_vm3, %v11160_v42  ;;  %v1280_v42 = vld [vmem:[%s13764_s0 + $0x132] sm:$0xff] }
 0x321   :  { %7585 = vmatprep.mubr.msk.bf16.mxu1 %vm9911_vm2, %v9909_v0  ;;  %8329 = vmatprep.mubr.msk.bf16.mxu0 %vm9911_vm2, %v9909_v0  ;;  %v11786_v62 = vpack.c.bf16 %v1281_v60, %v1280_v42  ;;  %v4707_v42 = vld [vmem:[%s13764_s0 + $0x75] sm:$0xff]  ;;  %v4708_v60 = vld [vmem:[%s13764_s0 + $0x7d] sm:$0xff] }
 0x328   :  { %7586 = vmatmul.mubr.msk.bf16.gmra.mrb[72].mxu1 %vm265_vm3, %v11767_v24  ;;  %8330 = vmatmul.mubr.msk.bf16.gmra.mrb[152].mxu0 %vm265_vm3, %v11181_v58  ;;  %v4126_v58 = vpack.c.bf16 %v4085_v59, %v11199_v3  ;;  %v4086_v3 = vld [vmem:[%s13764_s0 + $0x2a4] sm:$0xff]  ;;  %v11935_v59 = vpack.c.bf16 %v1295_v55, %v1294_v30  ;;  %v4719_v55 = vld [vmem:[%s13764_s0 + $0xd5] sm:$0xff] }
 0x329   :  { %7589 = vmatprep.mubr.msk.bf16.mxu1 %vm9911_vm2, %v9909_v0  ;;  %8333 = vmatprep.mubr.msk.bf16.mxu0 %vm9911_vm2, %v9909_v0  ;;  %v4127_v44 = vpack.c.bf16 %v4086_v3, %v4086_v3  ;;  %v4709_v3 = vld [vmem:[%s13764_s0 + $0x85] sm:$0xff] }
 0x32a   :  { %v1307_v30 = vld [vmem:[%s13764_s0 + $0x20a] sm:$0xff] }
 0x330   :  { %7590 = vmatmul.mubr.msk.bf16.gmra.mrb[76].mxu1 %vm265_vm3, %v11786_v62  ;;  %8334 = vmatmul.mubr.msk.bf16.gmra.mrb[156].mxu0 %vm265_vm3, %v4126_v58  ;;  %v4783_v58 = vpack.c.bf16 %v4708_v60, %v4707_v42  ;;  %v4720_v42 = vld [vmem:[%s13764_s0 + $0xdd] sm:$0xff] }
 0x331   :  { %7593 = vmatprep.mubr.msk.bf16.mxu1 %vm9911_vm2, %v9909_v0  ;;  %8337 = vmatprep.mubr.msk.bf16.mxu0 %vm9911_vm2, %v9909_v0 }
 0x338   :  { %7594 = vmatmul.mubr.msk.bf16.gmra.mrb[80].mxu1 %vm265_vm3, %v11805_v2  ;;  %8338 = vmatmul.mubr.msk.bf16.gmra.mrb[160].mxu0 %vm265_vm3, %v4127_v44  ;;  %v4710_v44 = vld [vmem:[%s13764_s0 + $0x8d] sm:$0xff] }
 0x339   :  { %7597 = vmatprep.mubr.msk.bf16.mxu1 %vm9911_vm2, %v9909_v0  ;;  %8343 = vmatprep.mubr.msk.bf16.mxu0 %vm9911_vm2, %v9909_v0  ;;  %v4784_v52 = vpack.c.bf16 %v4710_v44, %v4709_v3  ;;  %v4721_v3 = vld [vmem:[%s13764_s0 + $0xe5] sm:$0xff]  ;;  %v4722_v44 = vld [vmem:[%s13764_s0 + $0xed] sm:$0xff] }
 0x340   :  { %7598 = vmatmul.mubr.msk.bf16.gmra.mrb[84].mxu1 %vm265_vm3, %v11829_v7  ;;  %8344 = vmatmul.mubr.msk.bf16.vlgmr.msra.gmra.mrb[0].mxu0 %vm265_vm3, %v4778_v21  ;;  %v4712_v21 = vld [vmem:[%s13764_s0 + $0x9d] sm:$0xff] }
 0x341   :  { %8508 = vmatpush3.bf16.msra.mxu0 %v5636_v17  ;;  %7601 = vmatprep.mubr.msk.bf16.mxu1 %vm9911_vm2, %v9909_v0  ;;  %v11977_v17 = vpack.c.bf16 %v1299_v61, %v1298_v13  ;;  %v4785_v23 = vpack.c.bf16 %v4712_v21, %v4711_v16  ;;  %v4790_v13 = vpack.c.bf16 %v4722_v44, %v4721_v3  ;;  %v1310_v61 = vld [vmem:[%s13764_s0 + $0x222] sm:$0xff]  ;;  %v1311_v16 = vld [vmem:[%s13764_s0 + $0x22a] sm:$0xff]  ;;  %v4723_v21 = vld [vmem:[%s13764_s0 + $0xf5] sm:$0xff] }
 0x342   :  { %8347 = vmatprep.mubr.msk.bf16.mxu0 %vm9911_vm2, %v9909_v0  ;;  %v12103_v26 = vpack.c.bf16 %v1311_v16, %v1310_v61  ;;  %v4731_v3 = vld [vmem:[%s13764_s0 + $0x135] sm:$0xff]  ;;  %v4732_v44 = vld [vmem:[%s13764_s0 + $0x13d] sm:$0xff] }
 0x343   :  { %v4795_v61 = vpack.c.bf16 %v4732_v44, %v4731_v3  ;;  %v1320_v16 = vld [vmem:[%s13764_s0 + $0x272] sm:$0xff]  ;;  %v4748_v44 = vld [vmem:[%s13764_s0 + $0x1bd] sm:$0xff] }
 0x348   :  { %7602 = vmatmul.mubr.msk.bf16.gmra.mrb[88].mxu1 %vm265_vm3, %v11851_v37  ;;  %8348 = vmatmul.mubr.msk.bf16.gmra.mrb[4].mxu0 %vm265_vm3, %v4779_v29  ;;  %v4714_v29 = vld [vmem:[%s13764_s0 + $0xad] sm:$0xff] }
 0x349   :  { %7605 = vmatprep.mubr.msk.bf16.mxu1 %vm9911_vm2, %v9909_v0  ;;  %8351 = vmatprep.mubr.msk.bf16.mxu0 %vm9911_vm2, %v9909_v0  ;;  %v4786_v32 = vpack.c.bf16 %v4714_v29, %v4713_v28  ;;  %v1312_v28 = vld [vmem:[%s13764_s0 + $0x232] sm:$0xff]  ;;  %v1313_v29 = vld [vmem:[%s13764_s0 + $0x23a] sm:$0xff] }
 0x34a   :  { %v12124_v43 = vpack.c.bf16 %v1313_v29, %v1312_v28 }
 0x350   :  { %7606 = vmatmul.mubr.msk.bf16.gmra.mrb[92].mxu1 %vm265_vm3, %v11872_v4  ;;  %8352 = vmatmul.mubr.msk.bf16.gmra.mrb[8].mxu0 %vm265_vm3, %v4780_v38  ;;  %v4715_v38 = vld [vmem:[%s13764_s0 + $0xb5] sm:$0xff] }
 0x351   :  { %7609 = vmatprep.mubr.msk.bf16.mxu1 %vm9911_vm2, %v9909_v0  ;;  %8355 = vmatprep.mubr.msk.bf16.mxu0 %vm9911_vm2, %v9909_v0  ;;  %v4787_v27 = vpack.c.bf16 %v4716_v15, %v4715_v38  ;;  %v1314_v15 = vld [vmem:[%s13764_s0 + $0x242] sm:$0xff] }
 0x358   :  { %7610 = vmatmul.mubr.msk.bf16.gmra.mrb[96].mxu1 %vm265_vm3, %v11893_v39  ;;  %8356 = vmatmul.mubr.msk.bf16.gmra.mrb[12].mxu0 %vm265_vm3, %v4781_v48  ;;  %v1305_v48 = vld [vmem:[%s13764_s0 + $0x1fa] sm:$0xff] }
 0x359   :  { %7613 = vmatprep.mubr.msk.bf16.mxu1 %vm9911_vm2, %v9909_v0  ;;  %8359 = vmatprep.mubr.msk.bf16.mxu0 %vm9911_vm2, %v9909_v0  ;;  %v12040_v63 = vpack.c.bf16 %v1305_v48, %v1304_v57  ;;  %v4727_v57 = vld [vmem:[%s13764_s0 + $0x115] sm:$0xff]  ;;  %v4728_v48 = vld [vmem:[%s13764_s0 + $0x11d] sm:$0xff] }
 0x35a   :  { %v4793_v47 = vpack.c.bf16 %v4728_v48, %v4727_v57  ;;  %v4737_v57 = vld [vmem:[%s13764_s0 + $0x165] sm:$0xff]  ;;  %v4738_v48 = vld [vmem:[%s13764_s0 + $0x16d] sm:$0xff] }
 0x360   :  { %7614 = vmatmul.mubr.msk.bf16.gmra.mrb[100].mxu1 %vm265_vm3, %v11914_v14  ;;  %8360 = vmatmul.mubr.msk.bf16.gmra.mrb[16].mxu0 %vm265_vm3, %v4782_v53  ;;  %v1306_v53 = vld [vmem:[%s13764_s0 + $0x202] sm:$0xff] }
 0x361   :  { %7617 = vmatprep.mubr.msk.bf16.mxu1 %vm9911_vm2, %v9909_v0  ;;  %8363 = vmatprep.mubr.msk.bf16.mxu0 %vm9911_vm2, %v9909_v0  ;;  %v12061_v60 = vpack.c.bf16 %v1307_v30, %v1306_v53  ;;  %v1317_v53 = vld [vmem:[%s13764_s0 + $0x25a] sm:$0xff]  ;;  %v4729_v30 = vld [vmem:[%s13764_s0 + $0x125] sm:$0xff] }
 0x368   :  { %7618 = vmatmul.mubr.msk.bf16.gmra.mrb[104].mxu1 %vm265_vm3, %v11935_v59  ;;  %8364 = vmatmul.mubr.msk.bf16.gmra.mrb[20].mxu0 %vm265_vm3, %v4783_v58  ;;  %v4789_v58 = vpack.c.bf16 %v4720_v42, %v4719_v55  ;;  %v4730_v55 = vld [vmem:[%s13764_s0 + $0x12d] sm:$0xff] }
 0x369   :  { %7621 = vmatprep.mubr.msk.bf16.mxu1 %vm9911_vm2, %v9909_v0  ;;  %8367 = vmatprep.mubr.msk.bf16.mxu0 %vm9911_vm2, %v9909_v0 }
 0x370   :  { %7622 = vmatmul.mubr.msk.bf16.gmra.mrb[108].mxu1 %vm265_vm3, %v11956_v12  ;;  %8368 = vmatmul.mubr.msk.bf16.gmra.mrb[24].mxu0 %vm265_vm3, %v4784_v52  ;;  %v12082_v52 = vpack.c.bf16 %v1309_v6, %v1308_v33  ;;  %v1318_v33 = vld [vmem:[%s13764_s0 + $0x262] sm:$0xff]  ;;  %v1319_v6 = vld [vmem:[%s13764_s0 + $0x26a] sm:$0xff] }
 0x371   :  { %7625 = vmatprep.mubr.msk.bf16.mxu1 %vm9911_vm2, %v9909_v0  ;;  %8371 = vmatprep.mubr.msk.bf16.mxu0 %vm9911_vm2, %v9909_v0 }
 0x378   :  { %7626 = vmatmul.mubr.msk.bf16.gmra.mrb[112].mxu1 %vm265_vm3, %v11977_v17  ;;  %8372 = vmatmul.mubr.msk.bf16.gmra.mrb[28].mxu0 %vm265_vm3, %v4785_v23  ;;  %v4724_v23 = vld [vmem:[%s13764_s0 + $0xfd] sm:$0xff] }
 0x379   :  { %7629 = vmatprep.mubr.msk.bf16.mxu1 %vm9911_vm2, %v9909_v0  ;;  %8375 = vmatprep.mubr.msk.bf16.mxu0 %vm9911_vm2, %v9909_v0  ;;  %v4791_v5 = vpack.c.bf16 %v4724_v23, %v4723_v21  ;;  %v1321_v21 = vld [vmem:[%s13764_s0 + $0x27a] sm:$0xff]  ;;  %v4733_v23 = vld [vmem:[%s13764_s0 + $0x145] sm:$0xff] }
 0x37a   :  { %v12208_v28 = vpack.c.bf16 %v1321_v21, %v1320_v16  ;;  %v4750_v16 = vld [vmem:[%s13764_s0 + $0x1cd] sm:$0xff] }
 0x380   :  { %7630 = vmatmul.mubr.msk.bf16.gmra.mrb[116].mxu1 %vm265_vm3, %v11998_v46  ;;  %8376 = vmatmul.mubr.msk.bf16.gmra.mrb[32].mxu0 %vm265_vm3, %v4786_v32  ;;  %v4725_v32 = vld [vmem:[%s13764_s0 + $0x105] sm:$0xff] }
 0x381   :  { %7633 = vmatprep.mubr.msk.bf16.mxu1 %vm9911_vm2, %v9909_v0  ;;  %8379 = vmatprep.mubr.msk.bf16.mxu0 %vm9911_vm2, %v9909_v0  ;;  %v4792_v38 = vpack.c.bf16 %v4726_v56, %v4725_v32  ;;  %v12220_v32 = vld [vmem:[%s13764_s0 + $0x282] sm:$0xff]  ;;  %v4735_v56 = vld [vmem:[%s13764_s0 + $0x155] sm:$0xff] }
 0x388   :  { %7634 = vmatmul.mubr.msk.bf16.gmra.mrb[120].mxu1 %vm265_vm3, %v12019_v40  ;;  %8380 = vmatmul.mubr.msk.bf16.gmra.mrb[36].mxu0 %vm265_vm3, %v4787_v27  ;;  %v1315_v27 = vld [vmem:[%s13764_s0 + $0x24a] sm:$0xff] }
 0x389   :  { %7637 = vmatprep.mubr.msk.bf16.mxu1 %vm9911_vm2, %v9909_v0  ;;  %8383 = vmatprep.mubr.msk.bf16.mxu0 %vm9911_vm2, %v9909_v0  ;;  %v12145_v51 = vpack.c.bf16 %v1315_v27, %v1314_v15  ;;  %v1363_v15 = vpack.c.bf16 %v12220_v32, %v12220_v32 }
 0x390   :  { %7638 = vmatmul.mubr.msk.bf16.gmra.mrb[124].mxu1 %vm265_vm3, %v12040_v63  ;;  %8384 = vmatmul.mubr.msk.bf16.gmra.mrb[40].mxu0 %vm265_vm3, %v4788_v11  ;;  %v1316_v11 = vld [vmem:[%s13764_s0 + $0x252] sm:$0xff] }
 0x391   :  { %7641 = vmatprep.mubr.msk.bf16.mxu1 %vm9911_vm2, %v9909_v0  ;;  %8387 = vmatprep.mubr.msk.bf16.mxu0 %vm9911_vm2, %v9909_v0  ;;  %v12166_v42 = vpack.c.bf16 %v1317_v53, %v1316_v11  ;;  %v4739_v11 = vld [vmem:[%s13764_s0 + $0x175] sm:$0xff]  ;;  %v4740_v53 = vld [vmem:[%s13764_s0 + $0x17d] sm:$0xff] }
 0x398   :  { %7642 = vmatmul.mubr.msk.bf16.gmra.mrb[128].mxu1 %vm265_vm3, %v12061_v60  ;;  %8388 = vmatmul.mubr.msk.bf16.gmra.mrb[44].mxu0 %vm265_vm3, %v4789_v58  ;;  %v4794_v58 = vpack.c.bf16 %v4730_v55, %v4729_v30  ;;  %v4799_v30 = vpack.c.bf16 %v4740_v53, %v4739_v11  ;;  %v4762_v11 = vld [vmem:[%s13764_s0 + $0x22d] sm:$0xff] }
 0x399   :  { %7645 = vmatprep.mubr.msk.bf16.mxu1 %vm9911_vm2, %v9909_v0  ;;  %8391 = vmatprep.mubr.msk.bf16.mxu0 %vm9911_vm2, %v9909_v0 }
 0x3a0   :  { %7646 = vmatmul.mubr.msk.bf16.gmra.mrb[132].mxu1 %vm265_vm3, %v12082_v52  ;;  %8392 = vmatmul.mubr.msk.bf16.gmra.mrb[48].mxu0 %vm265_vm3, %v4790_v13  ;;  %v12187_v13 = vpack.c.bf16 %v1319_v6, %v1318_v33  ;;  %v4746_v6 = vld [vmem:[%s13764_s0 + $0x1ad] sm:$0xff] }
 0x3a1   :  { %7649 = vmatprep.mubr.msk.bf16.mxu1 %vm9911_vm2, %v9909_v0  ;;  %8395 = vmatprep.mubr.msk.bf16.mxu0 %vm9911_vm2, %v9909_v0 }
 0x3a8   :  { %7650 = vmatmul.mubr.msk.bf16.gmra.mrb[136].mxu1 %vm265_vm3, %v12103_v26  ;;  %8396 = vmatmul.mubr.msk.bf16.gmra.mrb[52].mxu0 %vm265_vm3, %v4791_v5  ;;  %v4734_v5 = vld [vmem:[%s13764_s0 + $0x14d] sm:$0xff] }
 0x3a9   :  { %7653 = vmatprep.mubr.msk.bf16.mxu1 %vm9911_vm2, %v9909_v0  ;;  %8399 = vmatprep.mubr.msk.bf16.mxu0 %vm9911_vm2, %v9909_v0  ;;  %v4796_v29 = vpack.c.bf16 %v4734_v5, %v4733_v23  ;;  %v4752_v23 = vld [vmem:[%s13764_s0 + $0x1dd] sm:$0xff] }
 0x3b0   :  { %7654 = vmatmul.mubr.msk.bf16.gmra.mrb[140].mxu1 %vm265_vm3, %v12124_v43  ;;  %8400 = vmatmul.mubr.msk.bf16.gmra.mrb[56].mxu0 %vm265_vm3, %v4792_v38  ;;  %v4736_v38 = vld [vmem:[%s13764_s0 + $0x15d] sm:$0xff] }
 0x3b1   :  { %7657 = vmatprep.mubr.msk.bf16.mxu1 %vm9911_vm2, %v9909_v0  ;;  %8403 = vmatprep.mubr.msk.bf16.mxu0 %vm9911_vm2, %v9909_v0  ;;  %v4797_v27 = vpack.c.bf16 %v4736_v38, %v4735_v56  ;;  %v4756_v38 = vld [vmem:[%s13764_s0 + $0x1fd] sm:$0xff] }
 0x3b8   :  { %7658 = vmatmul.mubr.msk.bf16.gmra.mrb[144].mxu1 %vm265_vm3, %v12145_v51  ;;  %8404 = vmatmul.mubr.msk.bf16.gmra.mrb[60].mxu0 %vm265_vm3, %v4793_v47  ;;  %v4798_v47 = vpack.c.bf16 %v4738_v48, %v4737_v57  ;;  %v4760_v48 = vld [vmem:[%s13764_s0 + $0x21d] sm:$0xff] }
 0x3b9   :  { %7661 = vmatprep.mubr.msk.bf16.mxu1 %vm9911_vm2, %v9909_v0  ;;  %8407 = vmatprep.mubr.msk.bf16.mxu0 %vm9911_vm2, %v9909_v0 }
 0x3c0   :  { %7662 = vmatmul.mubr.msk.bf16.gmra.mrb[148].mxu1 %vm265_vm3, %v12166_v42  ;;  %8408 = vmatmul.mubr.msk.bf16.gmra.mrb[64].mxu0 %vm265_vm3, %v4794_v58  ;;  %v4744_v58 = vld [vmem:[%s13764_s0 + $0x19d] sm:$0xff] }
 0x3c1   :  { %7665 = vmatprep.mubr.msk.bf16.mxu1 %vm9911_vm2, %v9909_v0  ;;  %8411 = vmatprep.mubr.msk.bf16.mxu0 %vm9911_vm2, %v9909_v0 }
 0x3c8   :  { %7666 = vmatmul.mubr.msk.bf16.gmra.mrb[152].mxu1 %vm265_vm3, %v12187_v13  ;;  %8412 = vmatmul.mubr.msk.bf16.gmra.mrb[68].mxu0 %vm265_vm3, %v4795_v61 }
 0x3c9   :  { %7669 = vmatprep.mubr.msk.bf16.mxu1 %vm9911_vm2, %v9909_v0  ;;  %8415 = vmatprep.mubr.msk.bf16.mxu0 %vm9911_vm2, %v9909_v0 }
 0x3d0   :  { %7670 = vmatmul.mubr.msk.bf16.gmra.mrb[156].mxu1 %vm265_vm3, %v12208_v28  ;;  %8416 = vmatmul.mubr.msk.bf16.gmra.mrb[72].mxu0 %vm265_vm3, %v4796_v29  ;;  %v4754_v29 = vld [vmem:[%s13764_s0 + $0x1ed] sm:$0xff] }
 0x3d1   :  { %7673 = vmatprep.mubr.msk.bf16.mxu1 %vm9911_vm2, %v9909_v0  ;;  %8419 = vmatprep.mubr.msk.bf16.mxu0 %vm9911_vm2, %v9909_v0 }
 0x3d8   :  { %7674 = vmatmul.mubr.msk.bf16.gmra.mrb[160].mxu1 %vm265_vm3, %v1363_v15  ;;  %8420 = vmatmul.mubr.msk.bf16.gmra.mrb[76].mxu0 %vm265_vm3, %v4797_v27  ;;  %v4758_v27 = vld [vmem:[%s13764_s0 + $0x20d] sm:$0xff] }
 0x3d9   :  { %7679 = vmatprep.mubr.msk.bf16.mxu1 %vm9911_vm2, %v9909_v0  ;;  %8423 = vmatprep.mubr.msk.bf16.mxu0 %vm9911_vm2, %v9909_v0 }
 0x3e0   :  { %7680 = vmatmul.mubr.msk.bf16.vlgmr.msra.gmra.mrb[0].mxu1 %vm265_vm3, %v11495_v8  ;;  %8424 = vmatmul.mubr.msk.bf16.gmra.mrb[80].mxu0 %vm265_vm3, %v4798_v47  ;;  %v4741_v8 = vld [vmem:[%s13764_s0 + $0x185] sm:$0xff] }
 0x3e1   :  { %7683 = vmatprep.mubr.msk.bf16.mxu1 %vm9911_vm2, %v9909_v0  ;;  %8427 = vmatprep.mubr.msk.bf16.mxu0 %vm9911_vm2, %v9909_v0 }
 0x3e2   :  { %8674 = vmatpush3.bf16.msra.mxu1 %v9962_v10  ;;  %v4742_v10 = vld [vmem:[%s13764_s0 + $0x18d] sm:$0xff] }
 0x3e3   :  { %v4800_v55 = vpack.c.bf16 %v4742_v10, %v4741_v8  ;;  %v4766_v10 = vld [vmem:[%s13764_s0 + $0x24d] sm:$0xff] }
 0x3e8   :  { %7684 = vmatmul.mubr.msk.bf16.gmra.mrb[4].mxu1 %vm265_vm3, %v11511_v9  ;;  %8428 = vmatmul.mubr.msk.bf16.gmra.mrb[84].mxu0 %vm265_vm3, %v4799_v30  ;;  %v4743_v9 = vld [vmem:[%s13764_s0 + $0x195] sm:$0xff]  ;;  %v4764_v30 = vld [vmem:[%s13764_s0 + $0x23d] sm:$0xff] }
 0x3e9   :  { %7687 = vmatprep.mubr.msk.bf16.mxu1 %vm9911_vm2, %v9909_v0  ;;  %8431 = vmatprep.mubr.msk.bf16.mxu0 %vm9911_vm2, %v9909_v0  ;;  %v4801_v33 = vpack.c.bf16 %v4744_v58, %v4743_v9  ;;  %v4768_v9 = vld [vmem:[%s13764_s0 + $0x25d] sm:$0xff] }
 0x3f0   :  { %7688 = vmatmul.mubr.msk.bf16.gmra.mrb[8].mxu1 %vm265_vm3, %v11527_v19  ;;  %8432 = vmatmul.mubr.msk.bf16.gmra.mrb[88].mxu0 %vm265_vm3, %v4800_v55  ;;  %v4745_v19 = vld [vmem:[%s13764_s0 + $0x1a5] sm:$0xff] }
 0x3f1   :  { %7691 = vmatprep.mubr.msk.bf16.mxu1 %vm9911_vm2, %v9909_v0  ;;  %8435 = vmatprep.mubr.msk.bf16.mxu0 %vm9911_vm2, %v9909_v0  ;;  %v4802_v3 = vpack.c.bf16 %v4746_v6, %v4745_v19  ;;  %v4772_v6 = vld [vmem:[%s13764_s0 + $0x27d] sm:$0xff] }
 0x3f8   :  { %7692 = vmatmul.mubr.msk.bf16.gmra.mrb[12].mxu1 %vm265_vm3, %v11543_v20  ;;  %8436 = vmatmul.mubr.msk.bf16.gmra.mrb[92].mxu0 %vm265_vm3, %v4801_v33  ;;  %v4747_v20 = vld [vmem:[%s13764_s0 + $0x1b5] sm:$0xff]  ;;  %v4770_v33 = vld [vmem:[%s13764_s0 + $0x26d] sm:$0xff] }
 0x3f9   :  { %7695 = vmatprep.mubr.msk.bf16.mxu1 %vm9911_vm2, %v9909_v0  ;;  %8439 = vmatprep.mubr.msk.bf16.mxu0 %vm9911_vm2, %v9909_v0  ;;  %v4803_v61 = vpack.c.bf16 %v4748_v44, %v4747_v20  ;;  %v4774_v20 = vld [vmem:[%s13764_s0 + $0x28d] sm:$0xff] }
 0x400   :  { %7696 = vmatmul.mubr.msk.bf16.gmra.mrb[16].mxu1 %vm265_vm3, %v11559_v22  ;;  %8440 = vmatmul.mubr.msk.bf16.gmra.mrb[96].mxu0 %vm265_vm3, %v4802_v3  ;;  %v4749_v22 = vld [vmem:[%s13764_s0 + $0x1c5] sm:$0xff] }
 0x401   :  { %7699 = vmatprep.mubr.msk.bf16.mxu1 %vm9911_vm2, %v9909_v0  ;;  %8443 = vmatprep.mubr.msk.bf16.mxu0 %vm9911_vm2, %v9909_v0  ;;  %v4804_v21 = vpack.c.bf16 %v4750_v16, %v4749_v22 }
 0x408   :  { %7700 = vmatmul.mubr.msk.bf16.gmra.mrb[20].mxu1 %vm265_vm3, %v11575_v25  ;;  %8444 = vmatmul.mubr.msk.bf16.gmra.mrb[100].mxu0 %vm265_vm3, %v4803_v61  ;;  %v4751_v25 = vld [vmem:[%s13764_s0 + $0x1d5] sm:$0xff]  ;;  %v4776_v61 = vld [vmem:[%s13764_s0 + $0x29d] sm:$0xff] }
 0x409   :  { %7703 = vmatprep.mubr.msk.bf16.mxu1 %vm9911_vm2, %v9909_v0  ;;  %8447 = vmatprep.mubr.msk.bf16.mxu0 %vm9911_vm2, %v9909_v0  ;;  %v4805_v5 = vpack.c.bf16 %v4752_v23, %v4751_v25  ;;  %v5391_v23 = vld [vmem:[%s13764_s0 + $0x3e] sm:$0xff] }
 0x410   :  { %7704 = vmatmul.mubr.msk.bf16.gmra.mrb[24].mxu1 %vm265_vm3, %v11591_v31  ;;  %8448 = vmatmul.mubr.msk.bf16.gmra.mrb[104].mxu0 %vm265_vm3, %v4804_v21  ;;  %v4753_v31 = vld [vmem:[%s13764_s0 + $0x1e5] sm:$0xff]  ;;  %v5389_v21 = vld [vmem:[%s13764_s0 + $0x2e] sm:$0xff] }
 0x411   :  { %7707 = vmatprep.mubr.msk.bf16.mxu1 %vm9911_vm2, %v9909_v0  ;;  %8451 = vmatprep.mubr.msk.bf16.mxu0 %vm9911_vm2, %v9909_v0  ;;  %v4806_v56 = vpack.c.bf16 %v4754_v29, %v4753_v31  ;;  %v5393_v31 = vld [vmem:[%s13764_s0 + $0x4e] sm:$0xff] }
 0x418   :  { %7708 = vmatmul.mubr.msk.bf16.gmra.mrb[28].mxu1 %vm265_vm3, %v11607_v36  ;;  %8452 = vmatmul.mubr.msk.bf16.gmra.mrb[108].mxu0 %vm265_vm3, %v4805_v5  ;;  %v4755_v36 = vld [vmem:[%s13764_s0 + $0x1f5] sm:$0xff] }
 0x419   :  { %7711 = vmatprep.mubr.msk.bf16.mxu1 %vm9911_vm2, %v9909_v0  ;;  %8455 = vmatprep.mubr.msk.bf16.mxu0 %vm9911_vm2, %v9909_v0  ;;  %v4807_v15 = vpack.c.bf16 %v4756_v38, %v4755_v36  ;;  %v5397_v38 = vld [vmem:[%s13764_s0 + $0x6e] sm:$0xff] }
 0x420   :  { %7712 = vmatmul.mubr.msk.bf16.gmra.mrb[32].mxu1 %vm265_vm3, %v11623_v34  ;;  %8456 = vmatmul.mubr.msk.bf16.gmra.mrb[112].mxu0 %vm265_vm3, %v4806_v56  ;;  %v4757_v34 = vld [vmem:[%s13764_s0 + $0x205] sm:$0xff] }
 0x421   :  { %7715 = vmatprep.mubr.msk.bf16.mxu1 %vm9911_vm2, %v9909_v0  ;;  %8459 = vmatprep.mubr.msk.bf16.mxu0 %vm9911_vm2, %v9909_v0  ;;  %v4808_v57 = vpack.c.bf16 %v4758_v27, %v4757_v34  ;;  %v5395_v56 = vld [vmem:[%s13764_s0 + $0x5e] sm:$0xff] }
 0x422   :  { %v5399_v34 = vld [vmem:[%s13764_s0 + $0x7e] sm:$0xff] }
 0x428   :  { %7716 = vmatmul.mubr.msk.bf16.gmra.mrb[36].mxu1 %vm265_vm3, %v11639_v35  ;;  %8460 = vmatmul.mubr.msk.bf16.gmra.mrb[116].mxu0 %vm265_vm3, %v4807_v15  ;;  %v4759_v35 = vld [vmem:[%s13764_s0 + $0x215] sm:$0xff] }
 0x429   :  { %7719 = vmatprep.mubr.msk.bf16.mxu1 %vm9911_vm2, %v9909_v0  ;;  %8463 = vmatprep.mubr.msk.bf16.mxu0 %vm9911_vm2, %v9909_v0  ;;  %v4809_v47 = vpack.c.bf16 %v4760_v48, %v4759_v35 }
 0x430   :  { %7720 = vmatmul.mubr.msk.bf16.gmra.mrb[40].mxu1 %vm265_vm3, %v11655_v50  ;;  %8464 = vmatmul.mubr.msk.bf16.gmra.mrb[120].mxu0 %vm265_vm3, %v4808_v57  ;;  %v4761_v50 = vld [vmem:[%s13764_s0 + $0x225] sm:$0xff]  ;;  %v5401_v57 = vld [vmem:[%s13764_s0 + $0x8e] sm:$0xff] }
 0x431   :  { %7723 = vmatprep.mubr.msk.bf16.mxu1 %vm9911_vm2, %v9909_v0  ;;  %8467 = vmatprep.mubr.msk.bf16.mxu0 %vm9911_vm2, %v9909_v0  ;;  %v4810_v53 = vpack.c.bf16 %v4762_v11, %v4761_v50  ;;  %v5402_v11 = vld [vmem:[%s13764_s0 + $0x96] sm:$0xff] }
 0x438   :  { %7724 = vmatmul.mubr.msk.bf16.gmra.mrb[44].mxu1 %vm265_vm3, %v11671_v41  ;;  %8468 = vmatmul.mubr.msk.bf16.gmra.mrb[124].mxu0 %vm265_vm3, %v4809_v47  ;;  %v4763_v41 = vld [vmem:[%s13764_s0 + $0x235] sm:$0xff] }
 0x439   :  { %7727 = vmatprep.mubr.msk.bf16.mxu1 %vm9911_vm2, %v9909_v0  ;;  %8471 = vmatprep.mubr.msk.bf16.mxu0 %vm9911_vm2, %v9909_v0  ;;  %v4811_v8 = vpack.c.bf16 %v4764_v30, %v4763_v41 }
 0x440   :  { %7728 = vmatmul.mubr.msk.bf16.gmra.mrb[48].mxu1 %vm265_vm3, %v11687_v45  ;;  %8472 = vmatmul.mubr.msk.bf16.gmra.mrb[128].mxu0 %vm265_vm3, %v4810_v53  ;;  %v4765_v45 = vld [vmem:[%s13764_s0 + $0x245] sm:$0xff] }
 0x441   :  { %7731 = vmatprep.mubr.msk.bf16.mxu1 %vm9911_vm2, %v9909_v0  ;;  %8475 = vmatprep.mubr.msk.bf16.mxu0 %vm9911_vm2, %v9909_v0  ;;  %v4812_v55 = vpack.c.bf16 %v4766_v10, %v4765_v45  ;;  %v5403_v53 = vld [vmem:[%s13764_s0 + $0x9e] sm:$0xff]  ;;  %v5404_v10 = vld [vmem:[%s13764_s0 + $0xa6] sm:$0xff] }
 0x448   :  { %7732 = vmatmul.mubr.msk.bf16.gmra.mrb[52].mxu1 %vm265_vm3, %v11703_v1  ;;  %8476 = vmatmul.mubr.msk.bf16.gmra.mrb[132].mxu0 %vm265_vm3, %v4811_v8  ;;  %v4767_v1 = vld [vmem:[%s13764_s0 + $0x255] sm:$0xff] }
 0x449   :  { %7735 = vmatprep.mubr.msk.bf16.mxu1 %vm9911_vm2, %v9909_v0  ;;  %8479 = vmatprep.mubr.msk.bf16.mxu0 %vm9911_vm2, %v9909_v0  ;;  %v4813_v58 = vpack.c.bf16 %v4768_v9, %v4767_v1 }
 0x450   :  { %7736 = vmatmul.mubr.msk.bf16.gmra.mrb[56].mxu1 %vm265_vm3, %v11719_v49  ;;  %8480 = vmatmul.mubr.msk.bf16.gmra.mrb[136].mxu0 %vm265_vm3, %v4812_v55  ;;  %v4769_v49 = vld [vmem:[%s13764_s0 + $0x265] sm:$0xff]  ;;  %v5405_v55 = vld [vmem:[%s13764_s0 + $0xae] sm:$0xff] }
 0x451   :  { %7739 = vmatprep.mubr.msk.bf16.mxu1 %vm9911_vm2, %v9909_v0  ;;  %8483 = vmatprep.mubr.msk.bf16.mxu0 %vm9911_vm2, %v9909_v0  ;;  %v4814_v19 = vpack.c.bf16 %v4770_v33, %v4769_v49  ;;  %v5406_v33 = vld [vmem:[%s13764_s0 + $0xb6] sm:$0xff] }
 0x458   :  { %7740 = vmatmul.mubr.msk.bf16.gmra.mrb[60].mxu1 %vm265_vm3, %v11735_v54  ;;  %8484 = vmatmul.mubr.msk.bf16.gmra.mrb[140].mxu0 %vm265_vm3, %v4813_v58  ;;  %v4771_v54 = vld [vmem:[%s13764_s0 + $0x275] sm:$0xff] }
 0x459   :  { %7743 = vmatprep.mubr.msk.bf16.mxu1 %vm9911_vm2, %v9909_v0  ;;  %8487 = vmatprep.mubr.msk.bf16.mxu0 %vm9911_vm2, %v9909_v0  ;;  %v4815_v3 = vpack.c.bf16 %v4772_v6, %v4771_v54 }
 0x460   :  { %7744 = vmatmul.mubr.msk.bf16.gmra.mrb[64].mxu1 %vm265_vm3, %v11751_v18  ;;  %8488 = vmatmul.mubr.msk.bf16.gmra.mrb[144].mxu0 %vm265_vm3, %v4814_v19  ;;  %v4773_v18 = vld [vmem:[%s13764_s0 + $0x285] sm:$0xff] }
 0x461   :  { %7747 = vmatprep.mubr.msk.bf16.mxu1 %vm9911_vm2, %v9909_v0  ;;  %8491 = vmatprep.mubr.msk.bf16.mxu0 %vm9911_vm2, %v9909_v0  ;;  %v4816_v44 = vpack.c.bf16 %v4774_v20, %v4773_v18  ;;  %v5407_v19 = vld [vmem:[%s13764_s0 + $0xbe] sm:$0xff]  ;;  %v5408_v20 = vld [vmem:[%s13764_s0 + $0xc6] sm:$0xff] }
 0x468   :  { %7748 = vmatmul.mubr.msk.bf16.gmra.mrb[68].mxu1 %vm265_vm3, %v11767_v24  ;;  %8492 = vmatmul.mubr.msk.bf16.gmra.mrb[148].mxu0 %vm265_vm3, %v4815_v3  ;;  %v4775_v24 = vld [vmem:[%s13764_s0 + $0x295] sm:$0xff] }
 0x469   :  { %7751 = vmatprep.mubr.msk.bf16.mxu1 %vm9911_vm2, %v9909_v0  ;;  %8495 = vmatprep.mubr.msk.bf16.mxu0 %vm9911_vm2, %v9909_v0  ;;  %v4817_v22 = vpack.c.bf16 %v4776_v61, %v4775_v24 }
 0x470   :  { %7752 = vmatmul.mubr.msk.bf16.gmra.mrb[72].mxu1 %vm265_vm3, %v11786_v62  ;;  %8496 = vmatmul.mubr.msk.bf16.gmra.mrb[152].mxu0 %vm265_vm3, %v4816_v44  ;;  %v4777_v62 = vld [vmem:[%s13764_s0 + $0x2a5] sm:$0xff]  ;;  %v5409_v44 = vld [vmem:[%s13764_s0 + $0xce] sm:$0xff] }
 0x471   :  { %7755 = vmatprep.mubr.msk.bf16.mxu1 %vm9911_vm2, %v9909_v0  ;;  %8499 = vmatprep.mubr.msk.bf16.mxu0 %vm9911_vm2, %v9909_v0  ;;  %v4818_v16 = vpack.c.bf16 %v4777_v62, %v4777_v62 }
 0x478   :  { %7756 = vmatmul.mubr.msk.bf16.gmra.mrb[76].mxu1 %vm265_vm3, %v11805_v2  ;;  %8500 = vmatmul.mubr.msk.bf16.gmra.mrb[156].mxu0 %vm265_vm3, %v4817_v22  ;;  %v5388_v2 = vld [vmem:[%s13764_s0 + $0x26] sm:$0xff] }
 0x479   :  { %7759 = vmatprep.mubr.msk.bf16.mxu1 %vm9911_vm2, %v9909_v0  ;;  %8503 = vmatprep.mubr.msk.bf16.mxu0 %vm9911_vm2, %v9909_v0  ;;  %v5469_v25 = vpack.c.bf16 %v5389_v21, %v5388_v2  ;;  %v5411_v2 = vld [vmem:[%s13764_s0 + $0xde] sm:$0xff] }
 0x480   :  { %7760 = vmatmul.mubr.msk.bf16.gmra.mrb[80].mxu1 %vm265_vm3, %v11829_v7  ;;  %8504 = vmatmul.mubr.msk.bf16.gmra.mrb[160].mxu0 %vm265_vm3, %v4818_v16  ;;  %v5390_v7 = vld [vmem:[%s13764_s0 + $0x36] sm:$0xff] }
 0x481   :  { %7763 = vmatprep.mubr.msk.bf16.mxu1 %vm9911_vm2, %v9909_v0  ;;  %8509 = vmatprep.mubr.msk.bf16.mxu0 %vm9911_vm2, %v9909_v0  ;;  %v5470_v5 = vpack.c.bf16 %v5391_v23, %v5390_v7  ;;  %v5410_v16 = vld [vmem:[%s13764_s0 + $0xd6] sm:$0xff] }
 0x488   :  { %7764 = vmatmul.mubr.msk.bf16.gmra.mrb[84].mxu1 %vm265_vm3, %v11851_v37  ;;  %8510 = vmatmul.mubr.msk.bf16.vlgmr.msra.gmra.mrb[0].mxu0 %vm265_vm3, %v5469_v25  ;;  %v5392_v37 = vld [vmem:[%s13764_s0 + $0x46] sm:$0xff] }
 0x489   :  { %7767 = vmatprep.mubr.msk.bf16.mxu1 %vm9911_vm2, %v9909_v0  ;;  %8513 = vmatprep.mubr.msk.bf16.mxu0 %vm9911_vm2, %v9909_v0  ;;  %v5471_v29 = vpack.c.bf16 %v5393_v31, %v5392_v37  ;;  %v5413_v37 = vld [vmem:[%s13764_s0 + $0xee] sm:$0xff] }
 0x490   :  { %7768 = vmatmul.mubr.msk.bf16.gmra.mrb[88].mxu1 %vm265_vm3, %v11872_v4  ;;  %8514 = vmatmul.mubr.msk.bf16.gmra.mrb[4].mxu0 %vm265_vm3, %v5470_v5  ;;  %v5394_v4 = vld [vmem:[%s13764_s0 + $0x56] sm:$0xff]  ;;  %v5412_v5 = vld [vmem:[%s13764_s0 + $0xe6] sm:$0xff] }
 0x491   :  { %7771 = vmatprep.mubr.msk.bf16.mxu1 %vm9911_vm2, %v9909_v0  ;;  %8517 = vmatprep.mubr.msk.bf16.mxu0 %vm9911_vm2, %v9909_v0  ;;  %v5472_v36 = vpack.c.bf16 %v5395_v56, %v5394_v4 }
 0x498   :  { %7772 = vmatmul.mubr.msk.bf16.gmra.mrb[92].mxu1 %vm265_vm3, %v11893_v39  ;;  %8518 = vmatmul.mubr.msk.bf16.gmra.mrb[8].mxu0 %vm265_vm3, %v5471_v29  ;;  %v5396_v39 = vld [vmem:[%s13764_s0 + $0x66] sm:$0xff] }
 0x499   :  { %7775 = vmatprep.mubr.msk.bf16.mxu1 %vm9911_vm2, %v9909_v0  ;;  %8521 = vmatprep.mubr.msk.bf16.mxu0 %vm9911_vm2, %v9909_v0  ;;  %v5473_v15 = vpack.c.bf16 %v5397_v38, %v5396_v39  ;;  %v5415_v39 = vld [vmem:[%s13764_s0 + $0xfe] sm:$0xff] }
 0x4a0   :  { %7776 = vmatmul.mubr.msk.bf16.gmra.mrb[96].mxu1 %vm265_vm3, %v11914_v14  ;;  %8522 = vmatmul.mubr.msk.bf16.gmra.mrb[12].mxu0 %vm265_vm3, %v5472_v36  ;;  %v5398_v14 = vld [vmem:[%s13764_s0 + $0x76] sm:$0xff] }
 0x4a1   :  { %7779 = vmatprep.mubr.msk.bf16.mxu1 %vm9911_vm2, %v9909_v0  ;;  %8525 = vmatprep.mubr.msk.bf16.mxu0 %vm9911_vm2, %v9909_v0  ;;  %v5474_v27 = vpack.c.bf16 %v5399_v34, %v5398_v14  ;;  %v5414_v36 = vld [vmem:[%s13764_s0 + $0xf6] sm:$0xff] }
 0x4a8   :  { %7780 = vmatmul.mubr.msk.bf16.gmra.mrb[100].mxu1 %vm265_vm3, %v11935_v59  ;;  %8526 = vmatmul.mubr.msk.bf16.gmra.mrb[16].mxu0 %vm265_vm3, %v5473_v15  ;;  %v5400_v59 = vld [vmem:[%s13764_s0 + $0x86] sm:$0xff] }
 0x4a9   :  { %7783 = vmatprep.mubr.msk.bf16.mxu1 %vm9911_vm2, %v9909_v0  ;;  %8529 = vmatprep.mubr.msk.bf16.mxu0 %vm9911_vm2, %v9909_v0 }
 0x4b0   :  { %7784 = vmatmul.mubr.msk.bf16.gmra.mrb[104].mxu1 %vm265_vm3, %v11956_v12  ;;  %8530 = vmatmul.mubr.msk.bf16.gmra.mrb[20].mxu0 %vm265_vm3, %v5474_v27  ;;  %v5475_v12 = vpack.c.bf16 %v5401_v57, %v5400_v59  ;;  %v5416_v27 = vld [vmem:[%s13764_s0 + $0x106] sm:$0xff]  ;;  %v5417_v59 = vld [vmem:[%s13764_s0 + $0x10e] sm:$0xff] }
 0x4b1   :  { %7787 = vmatprep.mubr.msk.bf16.mxu1 %vm9911_vm2, %v9909_v0  ;;  %8533 = vmatprep.mubr.msk.bf16.mxu0 %vm9911_vm2, %v9909_v0 }
 0x4b3   :  { %v12591_v35 = vpop.f32.mrb[0].mxu1 }
 0x4b4   :  { %v7681_v48 = vpop.f32.mrb[1].mxu1 }
 0x4b5   :  { %v12593_v47 = vpop.f32.mrb[2].mxu1 }
 0x4b6   :  { %v7682_v50 = vpop.f32.mrb[3].mxu1 }
 0x4b8   :  { %7788 = vmatmul.mubr.msk.bf16.gmra.mrb[108].mxu1 %vm265_vm3, %v11977_v17  ;;  %8534 = vmatmul.mubr.msk.bf16.gmra.mrb[24].mxu0 %vm265_vm3, %v5475_v12  ;;  %v5476_v17 = vpack.c.bf16 %v5403_v53, %v5402_v11  ;;  %v5418_v11 = vld [vmem:[%s13764_s0 + $0x116] sm:$0xff]  ;;  %v5419_v53 = vld [vmem:[%s13764_s0 + $0x11e] sm:$0xff] }
 0x4b9   :  { %7791 = vmatprep.mubr.msk.bf16.mxu1 %vm9911_vm2, %v9909_v0  ;;  %8537 = vmatprep.mubr.msk.bf16.mxu0 %vm9911_vm2, %v9909_v0 }
 0x4bb   :  { %v12608_v41 = vpop.f32.mrb[4].mxu1 }
 0x4bc   :  { %v7685_v30 = vpop.f32.mrb[5].mxu1 }
 0x4bd   :  { %v12610_v8 = vpop.f32.mrb[6].mxu1 }
 0x4be   :  { %v7686_v45 = vpop.f32.mrb[7].mxu1 }
 0x4c0   :  { %7792 = vmatmul.mubr.msk.bf16.gmra.mrb[112].mxu1 %vm265_vm3, %v11998_v46  ;;  %8538 = vmatmul.mubr.msk.bf16.gmra.mrb[28].mxu0 %vm265_vm3, %v5476_v17  ;;  %v5477_v46 = vpack.c.bf16 %v5405_v55, %v5404_v10  ;;  %v5420_v55 = vld [vmem:[%s13764_s0 + $0x126] sm:$0xff] }
 0x4c1   :  { %7795 = vmatprep.mubr.msk.bf16.mxu1 %vm9911_vm2, %v9909_v0  ;;  %8541 = vmatprep.mubr.msk.bf16.mxu0 %vm9911_vm2, %v9909_v0 }
 0x4c3   :  { %v12625_v1 = vpop.f32.mrb[8].mxu1 }
 0x4c4   :  { %v7689_v9 = vpop.f32.mrb[9].mxu1 }
 0x4c5   :  { %v12627_v58 = vpop.f32.mrb[10].mxu1  ;;  %v5421_v9 = vld [vmem:[%s13764_s0 + $0x12e] sm:$0xff] }
 0x4c6   :  { %v7690_v49 = vpop.f32.mrb[11].mxu1 }
 0x4c8   :  { %7796 = vmatmul.mubr.msk.bf16.gmra.mrb[116].mxu1 %vm265_vm3, %v12019_v40  ;;  %8542 = vmatmul.mubr.msk.bf16.gmra.mrb[32].mxu0 %vm265_vm3, %v5477_v46  ;;  %v5478_v40 = vpack.c.bf16 %v5407_v19, %v5406_v33 }
 0x4c9   :  { %7799 = vmatprep.mubr.msk.bf16.mxu1 %vm9911_vm2, %v9909_v0  ;;  %8545 = vmatprep.mubr.msk.bf16.mxu0 %vm9911_vm2, %v9909_v0 }
 0x4cb   :  { %v12642_v54 = vpop.f32.mrb[12].mxu1 }
 0x4cc   :  { %v7693_v6 = vpop.f32.mrb[13].mxu1 }
 0x4cd   :  { %v12644_v3 = vpop.f32.mrb[14].mxu1  ;;  %v5422_v6 = vld [vmem:[%s13764_s0 + $0x136] sm:$0xff] }
 0x4ce   :  { %v7694_v18 = vpop.f32.mrb[15].mxu1 }
 0x4d0   :  { %7800 = vmatmul.mubr.msk.bf16.gmra.mrb[120].mxu1 %vm265_vm3, %v12040_v63  ;;  %8546 = vmatmul.mubr.msk.bf16.gmra.mrb[36].mxu0 %vm265_vm3, %v5478_v40  ;;  %v5479_v63 = vpack.c.bf16 %v5409_v44, %v5408_v20  ;;  %v5423_v40 = vld [vmem:[%s13764_s0 + $0x13e] sm:$0xff] }
 0x4d1   :  { %7803 = vmatprep.mubr.msk.bf16.mxu1 %vm9911_vm2, %v9909_v0  ;;  %8549 = vmatprep.mubr.msk.bf16.mxu0 %vm9911_vm2, %v9909_v0 }
 0x4d3   :  { %v12659_v24 = vpop.f32.mrb[16].mxu1 }
 0x4d4   :  { %v7697_v61 = vpop.f32.mrb[17].mxu1 }
 0x4d5   :  { %v12661_v22 = vpop.f32.mrb[18].mxu1 }
 0x4d6   :  { %v7698_v62 = vpop.f32.mrb[19].mxu1 }
 0x4d7   :  { %v5424_v62 = vld [vmem:[%s13764_s0 + $0x146] sm:$0xff] }
 0x4d8   :  { %7804 = vmatmul.mubr.msk.bf16.gmra.mrb[124].mxu1 %vm265_vm3, %v12061_v60  ;;  %8550 = vmatmul.mubr.msk.bf16.gmra.mrb[40].mxu0 %vm265_vm3, %v5479_v63  ;;  %v5480_v60 = vpack.c.bf16 %v5411_v2, %v5410_v16  ;;  %v2012_v63 = vld [vmem:[%s13764_s0 + $0x28a] sm:$0xff] }
 0x4d9   :  { %7807 = vmatprep.mubr.msk.bf16.mxu1 %vm9911_vm2, %v9909_v0  ;;  %8553 = vmatprep.mubr.msk.bf16.mxu0 %vm9911_vm2, %v9909_v0 }
 0x4db   :  { %v12676_v21 = vpop.f32.mrb[20].mxu1 }
 0x4dc   :  { %v7701_v25 = vpop.f32.mrb[21].mxu1 }
 0x4dd   :  { %v12678_v7 = vpop.f32.mrb[22].mxu1  ;;  %v2053_v25 = vpack.c.bf16 %v2012_v63, %v12220_v32  ;;  %v5426_v32 = vld [vmem:[%s13764_s0 + $0x156] sm:$0xff]  ;;  %v2671_v63 = vld [vmem:[%s13764_s0 + $0x18b] sm:$0xff] }
 0x4de   :  { %v7702_v23 = vpop.f32.mrb[23].mxu1 }
 0x4e0   :  { %7808 = vmatmul.mubr.msk.bf16.gmra.mrb[128].mxu1 %vm265_vm3, %v12082_v52  ;;  %8554 = vmatmul.mubr.msk.bf16.gmra.mrb[44].mxu0 %vm265_vm3, %v5480_v60  ;;  %v5481_v52 = vpack.c.bf16 %v5413_v37, %v5412_v5  ;;  %v2013_v37 = vld [vmem:[%s13764_s0 + $0x292] sm:$0xff] }
 0x4e1   :  { %7811 = vmatprep.mubr.msk.bf16.mxu1 %vm9911_vm2, %v9909_v0  ;;  %8557 = vmatprep.mubr.msk.bf16.mxu0 %vm9911_vm2, %v9909_v0 }
 0x4e3   :  { %v12693_v31 = vpop.f32.mrb[24].mxu1 }
 0x4e4   :  { %v7705_v29 = vpop.f32.mrb[25].mxu1 }
 0x4e5   :  { %v12695_v4 = vpop.f32.mrb[26].mxu1  ;;  %v5427_v29 = vld [vmem:[%s13764_s0 + $0x15e] sm:$0xff] }
 0x4e6   :  { %v7706_v56 = vpop.f32.mrb[27].mxu1 }
 0x4e8   :  { %7812 = vmatmul.mubr.msk.bf16.gmra.mrb[132].mxu1 %vm265_vm3, %v12103_v26  ;;  %8558 = vmatmul.mubr.msk.bf16.gmra.mrb[48].mxu0 %vm265_vm3, %v5481_v52  ;;  %v5482_v26 = vpack.c.bf16 %v5415_v39, %v5414_v36  ;;  %v2054_v36 = vpack.c.bf16 %v2013_v37, %v2013_v37  ;;  %v5488_v39 = vpack.c.bf16 %v5427_v29, %v5426_v32  ;;  %v2672_v29 = vld [vmem:[%s13764_s0 + $0x193] sm:$0xff] }
 0x4e9   :  { %7815 = vmatprep.mubr.msk.bf16.mxu1 %vm9911_vm2, %v9909_v0  ;;  %8561 = vmatprep.mubr.msk.bf16.mxu0 %vm9911_vm2, %v9909_v0 }
 0x4eb   :  { %v12710_v38 = vpop.f32.mrb[28].mxu1 }
 0x4ec   :  { %v7709_v15 = vpop.f32.mrb[29].mxu1 }
 0x4ed   :  { %v12712_v14 = vpop.f32.mrb[30].mxu1 }
 0x4ee   :  { %v7710_v34 = vpop.f32.mrb[31].mxu1 }
 0x4ef   :  { %v2666_v34 = vld [vmem:[%s13764_s0 + $0x163] sm:$0xff] }
 0x4f0   :  { %7816 = vmatmul.mubr.msk.bf16.gmra.mrb[136].mxu1 %vm265_vm3, %v12124_v43  ;;  %8562 = vmatmul.mubr.msk.bf16.gmra.mrb[52].mxu0 %vm265_vm3, %v5482_v26  ;;  %v5483_v43 = vpack.c.bf16 %v5417_v59, %v5416_v27  ;;  %v2667_v27 = vld [vmem:[%s13764_s0 + $0x16b] sm:$0xff] }
 0x4f1   :  { %7819 = vmatprep.mubr.msk.bf16.mxu1 %vm9911_vm2, %v9909_v0  ;;  %8565 = vmatprep.mubr.msk.bf16.mxu0 %vm9911_vm2, %v9909_v0  ;;  %v5428_v59 = vld [vmem:[%s13764_s0 + $0x166] sm:$0xff] }
 0x4f3   :  { %v12727_v57 = vpop.f32.mrb[32].mxu1 }
 0x4f4   :  { %v7713_v48 = vpop.f32.mrb[33].mxu1 }
 0x4f5   :  { %v12729_v12 = vpop.f32.mrb[34].mxu1  ;;  %v5429_v48 = vld [vmem:[%s13764_s0 + $0x16e] sm:$0xff] }
 0x4f6   :  { %v7714_v50 = vpop.f32.mrb[35].mxu1 }
 0x4f8   :  { %7820 = vmatmul.mubr.msk.bf16.gmra.mrb[140].mxu1 %vm265_vm3, %v12145_v51  ;;  %8566 = vmatmul.mubr.msk.bf16.gmra.mrb[56].mxu0 %vm265_vm3, %v5483_v43  ;;  %v5484_v51 = vpack.c.bf16 %v5419_v53, %v5418_v11  ;;  %v2726_v11 = vpack.c.bf16 %v2667_v27, %v2666_v34  ;;  %v5489_v53 = vpack.c.bf16 %v5429_v48, %v5428_v59 }
 0x4f9   :  { %7823 = vmatprep.mubr.msk.bf16.mxu1 %vm9911_vm2, %v9909_v0  ;;  %8569 = vmatprep.mubr.msk.bf16.mxu0 %vm9911_vm2, %v9909_v0 }
 0x4fb   :  { %v12744_v30 = vpop.f32.mrb[36].mxu1 }
 0x4fc   :  { %v7717_v17 = vpop.f32.mrb[37].mxu1 }
 0x4fd   :  { %v12746_v45 = vpop.f32.mrb[38].mxu1 }
 0x4fe   :  { %v7718_v10 = vpop.f32.mrb[39].mxu1 }
 0x4ff   :  { %v2668_v10 = vld [vmem:[%s13764_s0 + $0x173] sm:$0xff] }
 0x500   :  { %7824 = vmatmul.mubr.msk.bf16.gmra.mrb[144].mxu1 %vm265_vm3, %v12166_v42  ;;  %8570 = vmatmul.mubr.msk.bf16.gmra.mrb[60].mxu0 %vm265_vm3, %v5484_v51  ;;  %v5485_v42 = vpack.c.bf16 %v5421_v9, %v5420_v55  ;;  %v2669_v55 = vld [vmem:[%s13764_s0 + $0x17b] sm:$0xff] }
 0x501   :  { %7827 = vmatprep.mubr.msk.bf16.mxu1 %vm9911_vm2, %v9909_v0  ;;  %8573 = vmatprep.mubr.msk.bf16.mxu0 %vm9911_vm2, %v9909_v0  ;;  %v5430_v9 = vld [vmem:[%s13764_s0 + $0x176] sm:$0xff] }
 0x503   :  { %v12761_v46 = vpop.f32.mrb[40].mxu1 }
 0x504   :  { %v7721_v49 = vpop.f32.mrb[41].mxu1 }
 0x505   :  { %v12763_v33 = vpop.f32.mrb[42].mxu1  ;;  %v5431_v49 = vld [vmem:[%s13764_s0 + $0x17e] sm:$0xff] }
 0x506   :  { %v7722_v19 = vpop.f32.mrb[43].mxu1 }
 0x508   :  { %7828 = vmatmul.mubr.msk.bf16.gmra.mrb[148].mxu1 %vm265_vm3, %v12187_v13  ;;  %8574 = vmatmul.mubr.msk.bf16.gmra.mrb[64].mxu0 %vm265_vm3, %v5485_v42  ;;  %v5486_v13 = vpack.c.bf16 %v5423_v40, %v5422_v6  ;;  %v2727_v6 = vpack.c.bf16 %v2669_v55, %v2668_v10  ;;  %v5490_v40 = vpack.c.bf16 %v5431_v49, %v5430_v9  ;;  %v5437_v10 = vld [vmem:[%s13764_s0 + $0x1ae] sm:$0xff] }
 0x509   :  { %7831 = vmatprep.mubr.msk.bf16.mxu1 %vm9911_vm2, %v9909_v0  ;;  %8577 = vmatprep.mubr.msk.bf16.mxu0 %vm9911_vm2, %v9909_v0 }
 0x50b   :  { %v12778_v18 = vpop.f32.mrb[44].mxu1 }
 0x50c   :  { %v7725_v20 = vpop.f32.mrb[45].mxu1 }
 0x50d   :  { %v12780_v44 = vpop.f32.mrb[46].mxu1 }
 0x50e   :  { %v7726_v61 = vpop.f32.mrb[47].mxu1 }
 0x50f   :  { %v2670_v61 = vld [vmem:[%s13764_s0 + $0x183] sm:$0xff] }
 0x510   :  { %7832 = vmatmul.mubr.msk.bf16.gmra.mrb[152].mxu1 %vm265_vm3, %v12208_v28  ;;  %8578 = vmatmul.mubr.msk.bf16.gmra.mrb[68].mxu0 %vm265_vm3, %v5486_v13  ;;  %v5425_v28 = vld [vmem:[%s13764_s0 + $0x14e] sm:$0xff] }
 0x511   :  { %7835 = vmatprep.mubr.msk.bf16.mxu1 %vm9911_vm2, %v9909_v0  ;;  %8581 = vmatprep.mubr.msk.bf16.mxu0 %vm9911_vm2, %v9909_v0  ;;  %v5487_v60 = vpack.c.bf16 %v5425_v28, %v5424_v62  ;;  %v5432_v62 = vld [vmem:[%s13764_s0 + $0x186] sm:$0xff]  ;;  %v5433_v28 = vld [vmem:[%s13764_s0 + $0x18e] sm:$0xff] }
 0x513   :  { %v12798_v16 = vpop.f32.mrb[48].mxu1 }
 0x514   :  { %v7729_v2 = vpop.f32.mrb[49].mxu1 }
 0x515   :  { %v12801_v23 = vpop.f32.mrb[50].mxu1 }
 0x516   :  { %v7730_v5 = vpop.f32.mrb[51].mxu1 }
 0x517   :  { %v5491_v5 = vpack.c.bf16 %v5433_v28, %v5432_v62  ;;  %v5439_v62 = vld [vmem:[%s13764_s0 + $0x1be] sm:$0xff] }
 0x518   :  { %7836 = vmatmul.mubr.msk.bf16.gmra.mrb[156].mxu1 %vm265_vm3, %v2053_v25  ;;  %8582 = vmatmul.mubr.msk.bf16.gmra.mrb[72].mxu0 %vm265_vm3, %v5487_v60  ;;  %v2728_v60 = vpack.c.bf16 %v2671_v63, %v2670_v61  ;;  %v2677_v61 = vld [vmem:[%s13764_s0 + $0x1bb] sm:$0xff] }
 0x519   :  { %7839 = vmatprep.mubr.msk.bf16.mxu1 %vm9911_vm2, %v9909_v0  ;;  %8585 = vmatprep.mubr.msk.bf16.mxu0 %vm9911_vm2, %v9909_v0  ;;  %v5438_v63 = vld [vmem:[%s13764_s0 + $0x1b6] sm:$0xff] }
 0x51b   :  { %v12818_v52 = vpop.f32.mrb[52].mxu1 }
 0x51c   :  { %v7733_v56 = vpop.f32.mrb[53].mxu1 }
 0x51d   :  { %v12820_v15 = vpop.f32.mrb[54].mxu1  ;;  %v2673_v56 = vld [vmem:[%s13764_s0 + $0x19b] sm:$0xff] }
 0x51e   :  { %v7734_v26 = vpop.f32.mrb[55].mxu1  ;;  %v2729_v27 = vpack.c.bf16 %v2673_v56, %v2672_v29  ;;  %v2678_v56 = vld [vmem:[%s13764_s0 + $0x1c3] sm:$0xff] }
 0x520   :  { %7840 = vmatmul.mubr.msk.bf16.gmra.mrb[160].mxu1 %vm265_vm3, %v2054_v36  ;;  %8586 = vmatmul.mubr.msk.bf16.gmra.mrb[76].mxu0 %vm265_vm3, %v5488_v39  ;;  %v5434_v36 = vld [vmem:[%s13764_s0 + $0x196] sm:$0xff]  ;;  %v5435_v39 = vld [vmem:[%s13764_s0 + $0x19e] sm:$0xff] }
 0x521   :  { %7929 = vmatprep.mubr.msk.bf16.mxu1 %vm9911_vm2, %v9909_v0  ;;  %8589 = vmatprep.mubr.msk.bf16.mxu0 %vm9911_vm2, %v9909_v0  ;;  %v5492_v59 = vpack.c.bf16 %v5435_v39, %v5434_v36  ;;  %v2679_v36 = vld [vmem:[%s13764_s0 + $0x1cb] sm:$0xff] }
 0x522   :  { %v5440_v39 = vld [vmem:[%s13764_s0 + $0x1c6] sm:$0xff] }
 0x523   :  { %v12840_v43 = vpop.f32.mrb[56].mxu1 }
 0x524   :  { %v7737_v50 = vpop.f32.mrb[57].mxu1 }
 0x525   :  { %v12842_v17 = vpop.f32.mrb[58].mxu1 }
 0x526   :  { %v7738_v51 = vpop.f32.mrb[59].mxu1 }
 0x527   :  { %v5436_v51 = vld [vmem:[%s13764_s0 + $0x1a6] sm:$0xff] }
 0x528   :  { %7930 = vmatmul.mubr.msk.bf16.vlgmr.msra.gmra.mrb[84].mxu1 %vm265_vm3, %v2726_v11  ;;  %8590 = vmatmul.mubr.msk.bf16.gmra.mrb[80].mxu0 %vm265_vm3, %v5489_v53  ;;  %v2674_v11 = vld [vmem:[%s13764_s0 + $0x1a3] sm:$0xff]  ;;  %v2675_v53 = vld [vmem:[%s13764_s0 + $0x1ab] sm:$0xff] }
 0x529   :  { %7933 = vmatprep.mubr.msk.bf16.mxu1 %vm9911_vm2, %v9909_v0  ;;  %8593 = vmatprep.mubr.msk.bf16.mxu0 %vm9911_vm2, %v9909_v0  ;;  %v2730_v49 = vpack.c.bf16 %v2675_v53, %v2674_v11 }
 0x52b   :  { %v12862_v42 = vpop.f32.mrb[60].mxu1 }
 0x52c   :  { %v7741_v19 = vpop.f32.mrb[61].mxu1 }
 0x52d   :  { %v12864_v20 = vpop.f32.mrb[62].mxu1  ;;  %v5493_v19 = vpack.c.bf16 %v5437_v10, %v5436_v51  ;;  %v2680_v10 = vld [vmem:[%s13764_s0 + $0x1d3] sm:$0xff] }
 0x52e   :  { %v7742_v13 = vpop.f32.mrb[63].mxu1 }
 0x52f   :  { %v2676_v13 = vld [vmem:[%s13764_s0 + $0x1b3] sm:$0xff] }
 0x530   :  { %7934 = vmatmul.mubr.msk.bf16.gmra.mrb[88].mxu1 %vm265_vm3, %v2727_v6  ;;  %8594 = vmatmul.mubr.msk.bf16.gmra.mrb[84].mxu0 %vm265_vm3, %v5490_v40 }
 0x531   :  { %7937 = vmatprep.mubr.msk.bf16.mxu1 %vm9911_vm2, %v9909_v0  ;;  %8597 = vmatprep.mubr.msk.bf16.mxu0 %vm9911_vm2, %v9909_v0 }
 0x533   :  { %v12884_v2 = vpop.f32.mrb[64].mxu1 }
 0x534   :  { %v7745_v25 = vpop.f32.mrb[65].mxu1 }
 0x535   :  { %v12886_v37 = vpop.f32.mrb[66].mxu1 }
 0x536   :  { %v7746_v32 = vpop.f32.mrb[67].mxu1 }
 0x538   :  { %7938 = vmatmul.mubr.msk.bf16.gmra.mrb[92].mxu1 %vm265_vm3, %v2728_v60  ;;  %8598 = vmatmul.mubr.msk.bf16.gmra.mrb[88].mxu0 %vm265_vm3, %v5491_v5  ;;  %v2731_v60 = vpack.c.bf16 %v2677_v61, %v2676_v13  ;;  %v5494_v5 = vpack.c.bf16 %v5439_v62, %v5438_v63  ;;  %v12997_v13 = vld [vmem:[%s13765_s2] ss:$0 sm:$0xff] }
 0x539   :  { %7941 = vmatprep.mubr.msk.bf16.mxu1 %vm9911_vm2, %v9909_v0  ;;  %8601 = vmatprep.mubr.msk.bf16.mxu0 %vm9911_vm2, %v9909_v0 }
 0x53b   :  { %v12906_v26 = vpop.f32.mrb[68].mxu1 }
 0x53c   :  { %v7749_v34 = vpop.f32.mrb[69].mxu1 }
 0x53d   :  { %v12908_v48 = vpop.f32.mrb[70].mxu1  ;;  %v5441_v34 = vld [vmem:[%s13764_s0 + $0x1ce] sm:$0xff] }
 0x53e   :  { %v7750_v50 = vpop.f32.mrb[71].mxu1  ;;  %v5495_v11 = vpack.c.bf16 %v5441_v34, %v5440_v39 }
 0x53f   :  { %v2732_v50 = vpack.c.bf16 %v2679_v36, %v2678_v56 }
 0x540   :  { %7942 = vmatmul.mubr.msk.bf16.gmra.mrb[96].mxu1 %vm265_vm3, %v2729_v27  ;;  %8602 = vmatmul.mubr.msk.bf16.gmra.mrb[92].mxu0 %vm265_vm3, %v5492_v59 }
 0x541   :  { %7945 = vmatprep.mubr.msk.bf16.mxu1 %vm9911_vm2, %v9909_v0  ;;  %8605 = vmatprep.mubr.msk.bf16.mxu0 %vm9911_vm2, %v9909_v0 }
 0x543   :  { %v12928_v55 = vpop.f32.mrb[72].mxu1 }
 0x544   :  { %v7753_v9 = vpop.f32.mrb[73].mxu1 }
 0x545   :  { %v12930_v6 = vpop.f32.mrb[74].mxu1  ;;  %v2681_v9 = vld [vmem:[%s13764_s0 + $0x1db] sm:$0xff] }
 0x546   :  { %v7754_v40 = vpop.f32.mrb[75].mxu1  ;;  %v2733_v62 = vpack.c.bf16 %v2681_v9, %v2680_v10 }
 0x548   :  { %7946 = vmatmul.mubr.msk.bf16.gmra.mrb[100].mxu1 %vm265_vm3, %v2730_v49  ;;  %8606 = vmatmul.mubr.msk.bf16.gmra.mrb[96].mxu0 %vm265_vm3, %v5493_v19  ;;  %v5442_v49 = vld [vmem:[%s13764_s0 + $0x1d6] sm:$0xff]  ;;  %v5443_v19 = vld [vmem:[%s13764_s0 + $0x1de] sm:$0xff] }
 0x549   :  { %7949 = vmatprep.mubr.msk.bf16.mxu1 %vm9911_vm2, %v9909_v0  ;;  %8609 = vmatprep.mubr.msk.bf16.mxu0 %vm9911_vm2, %v9909_v0 }
 0x54b   :  { %v12950_v28 = vpop.f32.mrb[76].mxu1 }
 0x54c   :  { %v7757_v25 = vpop.f32.mrb[77].mxu1 }
 0x54d   :  { %v12952_v32 = vpop.f32.mrb[78].mxu1  ;;  %v5496_v25 = vpack.c.bf16 %v5443_v19, %v5442_v49 }
 0x54e   :  { %v7758_v29 = vpop.f32.mrb[79].mxu1 }
 0x550   :  { %7950 = vmatmul.mubr.msk.bf16.gmra.mrb[104].mxu1 %vm265_vm3, %v2731_v60  ;;  %8610 = vmatmul.mubr.msk.bf16.gmra.mrb[100].mxu0 %vm265_vm3, %v5494_v5  ;;  %v13003_v60 = vld [vmem:[%s13766_s3] ss:$0 sm:$0xff] }
 0x551   :  { %7953 = vmatprep.mubr.msk.bf16.mxu1 %vm9911_vm2, %v9909_v0  ;;  %8613 = vmatprep.mubr.msk.bf16.mxu0 %vm9911_vm2, %v9909_v0 }
 0x553   :  { %v12972_v27 = vpop.f32.mrb[80].mxu1 }
 0x554   :  { %v7761_v59 = vpop.f32.mrb[81].mxu1 }
 0x555   :  { %v12974_v53 = vpop.f32.mrb[82].mxu1  ;;  %v5444_v59 = vld [vmem:[%s13764_s0 + $0x1e6] sm:$0xff] }
 0x556   :  { %v7762_v51 = vpop.f32.mrb[83].mxu1 }
 0x558   :  { %7954 = vmatmul.mubr.msk.bf16.gmra.mrb[108].mxu1 %vm265_vm3, %v2732_v50  ;;  %8614 = vmatmul.mubr.msk.bf16.gmra.mrb[104].mxu0 %vm265_vm3, %v5495_v11  ;;  %v5445_v50 = vld [vmem:[%s13764_s0 + $0x1ee] sm:$0xff] }
 0x559   :  { %7957 = vmatprep.mubr.msk.bf16.mxu1 %vm9911_vm2, %v9909_v0  ;;  %8617 = vmatprep.mubr.msk.bf16.mxu0 %vm9911_vm2, %v9909_v0 }
 0x55b   :  { %v5672_v40 = vpop.f32.mrb[0].mxu0 }
 0x55c   :  { %v8675_v61 = vadd.f32 %v5672_v40, %v12591_v35  ;;  %v8511_v63 = vpop.f32.mrb[1].mxu0  ;;  %v2682_v35 = vld [vmem:[%s13764_s0 + $0x1e3] sm:$0xff] }
 0x55d   :  { %v5675_v5 = vpop.f32.mrb[2].mxu0 }
 0x55e   :  { %v6086_v29 = vmul.f32 %v8675_v61, %v12997_v13  ;;  %v8676_v56 = vadd.f32 %v5675_v5, %v12593_v47  ;;  %v8512_v36 = vpop.f32.mrb[3].mxu0  ;;  %v2683_v47 = vld [vmem:[%s13764_s0 + $0x1eb] sm:$0xff]  ;;  %v5497_v61 = vpack.c.bf16 %v5445_v50, %v5444_v59 }
 0x55f   :  { %v2734_v40 = vpack.c.bf16 %v2683_v47, %v2682_v35  ;;  %v5446_v36 = vld [vmem:[%s13764_s0 + $0x1f6] sm:$0xff] }
 0x560   :  { %v6174_v39 = vadd.f32 %v13003_v60, %v6086_v29  ;;  %v6087_v34 = vmul.f32 %v8676_v56, %v12997_v13  ;;  %7958 = vmatmul.mubr.msk.bf16.gmra.mrb[112].mxu1 %vm265_vm3, %v2733_v62  ;;  %8618 = vmatmul.mubr.msk.bf16.gmra.mrb[108].mxu0 %vm265_vm3, %v5496_v25 }
 0x561   :  { %7961 = vmatprep.mubr.msk.bf16.mxu1 %vm9911_vm2, %v9909_v0  ;;  %8621 = vmatprep.mubr.msk.bf16.mxu0 %vm9911_vm2, %v9909_v0 }
 0x562   :  { %v6255_v11 = vmax.f32 %v6174_v39, 0.0  ;;  %v6175_v51 = vadd.f32 %v13003_v60, %v6087_v34  ;;  %v5447_v39 = vld [vmem:[%s13764_s0 + $0x1fe] sm:$0xff] }
 0x563   :  { %v5680_v10 = vpop.f32.mrb[4].mxu0 }
 0x564   :  { %6337 = vst.msk [vmem:[%s13767_s4] sm:$0xff] %vm6336_vm4, %v6255_v11  ;;  %v6256_v9 = vmax.f32 %v6175_v51, 0.0  ;;  %v8677_v49 = vadd.f32 %v5680_v10, %v12608_v41  ;;  %v8515_v19 = vpop.f32.mrb[5].mxu0  ;;  %v2684_v41 = vld [vmem:[%s13764_s0 + $0x1f3] sm:$0xff]  ;;  %v5498_v10 = vpack.c.bf16 %v5447_v39, %v5446_v36 }
 0x565   :  { %v5683_v63 = vpop.f32.mrb[6].mxu0 }
 0x566   :  { %6338 = vst.msk [vmem:[%s13767_s4 + $0x8] sm:$0xff] %vm6336_vm4, %v6256_v9  ;;  %v6088_v62 = vmul.f32 %v8677_v49, %v12997_v13  ;;  %v8678_v25 = vadd.f32 %v5683_v63, %v12610_v8  ;;  %v8516_v5 = vpop.f32.mrb[7].mxu0  ;;  %v2685_v8 = vld [vmem:[%s13764_s0 + $0x1fb] sm:$0xff] }
 0x567   :  { %v2735_v51 = vpack.c.bf16 %v2685_v8, %v2684_v41 }
 0x568   :  { %v6176_v29 = vadd.f32 %v13003_v60, %v6088_v62  ;;  %v6089_v56 = vmul.f32 %v8678_v25, %v12997_v13  ;;  %7962 = vmatmul.mubr.msk.bf16.gmra.mrb[116].mxu1 %vm265_vm3, %v2734_v40  ;;  %8622 = vmatmul.mubr.msk.bf16.gmra.mrb[112].mxu0 %vm265_vm3, %v5497_v61  ;;  %v5448_v62 = vld [vmem:[%s13764_s0 + $0x206] sm:$0xff]  ;;  %v5449_v25 = vld [vmem:[%s13764_s0 + $0x20e] sm:$0xff] }
 0x569   :  { %7965 = vmatprep.mubr.msk.bf16.mxu1 %vm9911_vm2, %v9909_v0  ;;  %8625 = vmatprep.mubr.msk.bf16.mxu0 %vm9911_vm2, %v9909_v0 }
 0x56a   :  { %v6257_v34 = vmax.f32 %v6176_v29, 0.0  ;;  %v6177_v35 = vadd.f32 %v13003_v60, %v6089_v56 }
 0x56b   :  { %v5688_v47 = vpop.f32.mrb[8].mxu0 }
 0x56c   :  { %6339 = vst.msk [vmem:[%s13767_s4 + $0x10] sm:$0xff] %vm6336_vm4, %v6257_v34  ;;  %v6258_v59 = vmax.f32 %v6177_v35, 0.0  ;;  %v8679_v50 = vadd.f32 %v5688_v47, %v12625_v1  ;;  %v8519_v11 = vpop.f32.mrb[9].mxu0  ;;  %v2686_v1 = vld [vmem:[%s13764_s0 + $0x203] sm:$0xff]  ;;  %v5499_v34 = vpack.c.bf16 %v5449_v25, %v5448_v62 }
 0x56d   :  { %v5691_v9 = vpop.f32.mrb[10].mxu0 }
 0x56e   :  { %6340 = vst.msk [vmem:[%s13767_s4 + $0x18] sm:$0xff] %vm6336_vm4, %v6258_v59  ;;  %v6090_v49 = vmul.f32 %v8679_v50, %v12997_v13  ;;  %v8680_v19 = vadd.f32 %v5691_v9, %v12627_v58  ;;  %v8520_v40 = vpop.f32.mrb[11].mxu0  ;;  %v2687_v58 = vld [vmem:[%s13764_s0 + $0x20b] sm:$0xff]  ;;  %v5451_v9 = vld [vmem:[%s13764_s0 + $0x21e] sm:$0xff] }
 0x56f   :  { %v2736_v39 = vpack.c.bf16 %v2687_v58, %v2686_v1 }
 0x570   :  { %v6178_v61 = vadd.f32 %v13003_v60, %v6090_v49  ;;  %v6091_v63 = vmul.f32 %v8680_v19, %v12997_v13  ;;  %7966 = vmatmul.mubr.msk.bf16.gmra.mrb[120].mxu1 %vm265_vm3, %v2735_v51  ;;  %8626 = vmatmul.mubr.msk.bf16.gmra.mrb[116].mxu0 %vm265_vm3, %v5498_v10  ;;  %v5450_v10 = vld [vmem:[%s13764_s0 + $0x216] sm:$0xff] }
 0x571   :  { %7969 = vmatprep.mubr.msk.bf16.mxu1 %vm9911_vm2, %v9909_v0  ;;  %8629 = vmatprep.mubr.msk.bf16.mxu0 %vm9911_vm2, %v9909_v0  ;;  %v5500_v62 = vpack.c.bf16 %v5451_v9, %v5450_v10 }
 0x572   :  { %v6259_v5 = vmax.f32 %v6178_v61, 0.0  ;;  %v6179_v29 = vadd.f32 %v13003_v60, %v6091_v63 }
 0x573   :  { %v5696_v56 = vpop.f32.mrb[12].mxu0 }
 0x574   :  { %6341 = vst.msk [vmem:[%s13767_s4 + $0x20] sm:$0xff] %vm6336_vm4, %v6259_v5  ;;  %v6260_v41 = vmax.f32 %v6179_v29, 0.0  ;;  %v8681_v8 = vadd.f32 %v5696_v56, %v12642_v54  ;;  %v8523_v36 = vpop.f32.mrb[13].mxu0  ;;  %v2688_v54 = vld [vmem:[%s13764_s0 + $0x213] sm:$0xff] }
 0x575   :  { %v5699_v35 = vpop.f32.mrb[14].mxu0  ;;  %v5452_v36 = vld [vmem:[%s13764_s0 + $0x226] sm:$0xff] }
 0x576   :  { %6342 = vst.msk [vmem:[%s13767_s4 + $0x28] sm:$0xff] %vm6336_vm4, %v6260_v41  ;;  %v6092_v47 = vmul.f32 %v8681_v8, %v12997_v13  ;;  %v8682_v59 = vadd.f32 %v5699_v35, %v12644_v3  ;;  %v8524_v50 = vpop.f32.mrb[15].mxu0  ;;  %v2689_v3 = vld [vmem:[%s13764_s0 + $0x21b] sm:$0xff] }
 0x577   :  { %v2737_v58 = vpack.c.bf16 %v2689_v3, %v2688_v54 }
 0x578   :  { %v6180_v11 = vadd.f32 %v13003_v60, %v6092_v47  ;;  %v6093_v51 = vmul.f32 %v8682_v59, %v12997_v13  ;;  %7970 = vmatmul.mubr.msk.bf16.gmra.mrb[124].mxu1 %vm265_vm3, %v2736_v39  ;;  %8630 = vmatmul.mubr.msk.bf16.gmra.mrb[120].mxu0 %vm265_vm3, %v5499_v34  ;;  %v5453_v39 = vld [vmem:[%s13764_s0 + $0x22e] sm:$0xff] }
 0x579   :  { %7973 = vmatprep.mubr.msk.bf16.mxu1 %vm9911_vm2, %v9909_v0  ;;  %8633 = vmatprep.mubr.msk.bf16.mxu0 %vm9911_vm2, %v9909_v0  ;;  %v5501_v54 = vpack.c.bf16 %v5453_v39, %v5452_v36 }
 0x57a   :  { %v6261_v49 = vmax.f32 %v6180_v11, 0.0  ;;  %v6181_v19 = vadd.f32 %v13003_v60, %v6093_v51 }
 0x57b   :  { %v5704_v40 = vpop.f32.mrb[16].mxu0 }
 0x57c   :  { %6343 = vst.msk [vmem:[%s13767_s4 + $0x30] sm:$0xff] %vm6336_vm4, %v6261_v49  ;;  %v6262_v61 = vmax.f32 %v6181_v19, 0.0  ;;  %v8683_v63 = vadd.f32 %v5704_v40, %v12659_v24  ;;  %v8527_v1 = vpop.f32.mrb[17].mxu0  ;;  %v2690_v24 = vld [vmem:[%s13764_s0 + $0x223] sm:$0xff] }
 0x57d   :  { %v5707_v25 = vpop.f32.mrb[18].mxu0 }
 0x57e   :  { %6344 = vst.msk [vmem:[%s13767_s4 + $0x38] sm:$0xff] %vm6336_vm4, %v6262_v61  ;;  %v6094_v5 = vmul.f32 %v8683_v63, %v12997_v13  ;;  %v8684_v29 = vadd.f32 %v5707_v25, %v12661_v22  ;;  %v8528_v56 = vpop.f32.mrb[19].mxu0  ;;  %v2691_v22 = vld [vmem:[%s13764_s0 + $0x22b] sm:$0xff]  ;;  %v5454_v61 = vld [vmem:[%s13764_s0 + $0x236] sm:$0xff]  ;;  %v5455_v63 = vld [vmem:[%s13764_s0 + $0x23e] sm:$0xff] }
 0x57f   :  { %v2738_v51 = vpack.c.bf16 %v2691_v22, %v2690_v24 }
 0x580   :  { %v6182_v41 = vadd.f32 %v13003_v60, %v6094_v5  ;;  %v6095_v8 = vmul.f32 %v8684_v29, %v12997_v13  ;;  %7974 = vmatmul.mubr.msk.bf16.gmra.mrb[128].mxu1 %vm265_vm3, %v2737_v58  ;;  %8634 = vmatmul.mubr.msk.bf16.gmra.mrb[124].mxu0 %vm265_vm3, %v5500_v62 }
 0x581   :  { %7977 = vmatprep.mubr.msk.bf16.mxu1 %vm9911_vm2, %v9909_v0  ;;  %8637 = vmatprep.mubr.msk.bf16.mxu0 %vm9911_vm2, %v9909_v0 }
 0x582   :  { %v6263_v34 = vmax.f32 %v6182_v41, 0.0  ;;  %v6183_v35 = vadd.f32 %v13003_v60, %v6095_v8  ;;  %v5502_v41 = vpack.c.bf16 %v5455_v63, %v5454_v61  ;;  %v5458_v63 = vld [vmem:[%s13764_s0 + $0x256] sm:$0xff] }
 0x583   :  { %v5712_v47 = vpop.f32.mrb[20].mxu0 }
 0x584   :  { %6345 = vst.msk [vmem:[%s13767_s4 + $0x40] sm:$0xff] %vm6336_vm4, %v6263_v34  ;;  %v6264_v59 = vmax.f32 %v6183_v35, 0.0  ;;  %v8685_v50 = vadd.f32 %v5712_v47, %v12676_v21  ;;  %v8531_v11 = vpop.f32.mrb[21].mxu0  ;;  %v2692_v21 = vld [vmem:[%s13764_s0 + $0x233] sm:$0xff]  ;;  %v5456_v35 = vld [vmem:[%s13764_s0 + $0x246] sm:$0xff] }
 0x585   :  { %v5715_v3 = vpop.f32.mrb[22].mxu0  ;;  %v5457_v47 = vld [vmem:[%s13764_s0 + $0x24e] sm:$0xff] }
 0x586   :  { %6346 = vst.msk [vmem:[%s13767_s4 + $0x48] sm:$0xff] %vm6336_vm4, %v6264_v59  ;;  %v6096_v10 = vmul.f32 %v8685_v50, %v12997_v13  ;;  %v8686_v9 = vadd.f32 %v5715_v3, %v12678_v7  ;;  %v8532_v49 = vpop.f32.mrb[23].mxu0  ;;  %v2693_v7 = vld [vmem:[%s13764_s0 + $0x23b] sm:$0xff] }
 0x587   :  { %v2739_v56 = vpack.c.bf16 %v2693_v7, %v2692_v21 }
 0x588   :  { %v6184_v19 = vadd.f32 %v13003_v60, %v6096_v10  ;;  %v6097_v40 = vmul.f32 %v8686_v9, %v12997_v13  ;;  %7978 = vmatmul.mubr.msk.bf16.gmra.mrb[132].mxu1 %vm265_vm3, %v2738_v51  ;;  %8638 = vmatmul.mubr.msk.bf16.gmra.mrb[128].mxu0 %vm265_vm3, %v5501_v54  ;;  %v5503_v9 = vpack.c.bf16 %v5457_v47, %v5456_v35  ;;  %v5461_v35 = vld [vmem:[%s13764_s0 + $0x26e] sm:$0xff] }
 0x589   :  { %7981 = vmatprep.mubr.msk.bf16.mxu1 %vm9911_vm2, %v9909_v0  ;;  %8641 = vmatprep.mubr.msk.bf16.mxu0 %vm9911_vm2, %v9909_v0 }
 0x58a   :  { %v6265_v1 = vmax.f32 %v6184_v19, 0.0  ;;  %v6185_v58 = vadd.f32 %v13003_v60, %v6097_v40 }
 0x58b   :  { %v5720_v62 = vpop.f32.mrb[24].mxu0 }
 0x58c   :  { %6347 = vst.msk [vmem:[%s13767_s4 + $0x50] sm:$0xff] %vm6336_vm4, %v6265_v1  ;;  %v6266_v25 = vmax.f32 %v6185_v58, 0.0  ;;  %v8687_v5 = vadd.f32 %v5720_v62, %v12693_v31  ;;  %v8535_v29 = vpop.f32.mrb[25].mxu0  ;;  %v2694_v31 = vld [vmem:[%s13764_s0 + $0x243] sm:$0xff] }
 0x58d   :  { %v5723_v8 = vpop.f32.mrb[26].mxu0  ;;  %v5459_v1 = vld [vmem:[%s13764_s0 + $0x25e] sm:$0xff] }
 0x58e   :  { %6348 = vst.msk [vmem:[%s13767_s4 + $0x58] sm:$0xff] %vm6336_vm4, %v6266_v25  ;;  %v6098_v24 = vmul.f32 %v8687_v5, %v12997_v13  ;;  %v8688_v22 = vadd.f32 %v5723_v8, %v12695_v4  ;;  %v8536_v36 = vpop.f32.mrb[27].mxu0  ;;  %v2695_v4 = vld [vmem:[%s13764_s0 + $0x24b] sm:$0xff]  ;;  %v5504_v8 = vpack.c.bf16 %v5459_v1, %v5458_v63 }
 0x58f   :  { %v2740_v10 = vpack.c.bf16 %v2695_v4, %v2694_v31  ;;  %v5460_v4 = vld [vmem:[%s13764_s0 + $0x266] sm:$0xff] }
 0x590   :  { %v6186_v39 = vadd.f32 %v13003_v60, %v6098_v24  ;;  %v6099_v34 = vmul.f32 %v8688_v22, %v12997_v13  ;;  %7982 = vmatmul.mubr.msk.bf16.gmra.mrb[136].mxu1 %vm265_vm3, %v2739_v56  ;;  %8642 = vmatmul.mubr.msk.bf16.gmra.mrb[132].mxu0 %vm265_vm3, %v5502_v41 }
 0x591   :  { %7985 = vmatprep.mubr.msk.bf16.mxu1 %vm9911_vm2, %v9909_v0  ;;  %8645 = vmatprep.mubr.msk.bf16.mxu0 %vm9911_vm2, %v9909_v0 }
 0x592   :  { %v6267_v59 = vmax.f32 %v6186_v39, 0.0  ;;  %v6187_v50 = vadd.f32 %v13003_v60, %v6099_v34 }
 0x593   :  { %v5728_v11 = vpop.f32.mrb[28].mxu0 }
 0x594   :  { %6349 = vst.msk [vmem:[%s13767_s4 + $0x60] sm:$0xff] %vm6336_vm4, %v6267_v59  ;;  %v6268_v51 = vmax.f32 %v6187_v50, 0.0  ;;  %v8689_v54 = vadd.f32 %v5728_v11, %v12710_v38  ;;  %v8539_v3 = vpop.f32.mrb[29].mxu0  ;;  %v2696_v38 = vld [vmem:[%s13764_s0 + $0x253] sm:$0xff] }
 0x595   :  { %v5731_v49 = vpop.f32.mrb[30].mxu0 }
 0x596   :  { %6350 = vst.msk [vmem:[%s13767_s4 + $0x68] sm:$0xff] %vm6336_vm4, %v6268_v51  ;;  %v6100_v19 = vmul.f32 %v8689_v54, %v12997_v13  ;;  %v8690_v40 = vadd.f32 %v5731_v49, %v12712_v14  ;;  %v8540_v21 = vpop.f32.mrb[31].mxu0  ;;  %v2697_v14 = vld [vmem:[%s13764_s0 + $0x25b] sm:$0xff] }
 0x597   :  { %v2741_v41 = vpack.c.bf16 %v2697_v14, %v2696_v38  ;;  %v5463_v38 = vld [vmem:[%s13764_s0 + $0x27e] sm:$0xff] }
 0x598   :  { %v6188_v7 = vadd.f32 %v13003_v60, %v6100_v19  ;;  %v6101_v61 = vmul.f32 %v8690_v40, %v12997_v13  ;;  %7986 = vmatmul.mubr.msk.bf16.gmra.mrb[140].mxu1 %vm265_vm3, %v2740_v10  ;;  %8646 = vmatmul.mubr.msk.bf16.gmra.mrb[136].mxu0 %vm265_vm3, %v5503_v9  ;;  %v5505_v10 = vpack.c.bf16 %v5461_v35, %v5460_v4 }
 0x599   :  { %7989 = vmatprep.mubr.msk.bf16.mxu1 %vm9911_vm2, %v9909_v0  ;;  %8649 = vmatprep.mubr.msk.bf16.mxu0 %vm9911_vm2, %v9909_v0 }
 0x59a   :  { %v6269_v58 = vmax.f32 %v6188_v7, 0.0  ;;  %v6189_v62 = vadd.f32 %v13003_v60, %v6101_v61  ;;  %v5462_v61 = vld [vmem:[%s13764_s0 + $0x276] sm:$0xff] }
 0x59b   :  { %v5736_v25 = vpop.f32.mrb[32].mxu0 }
 0x59c   :  { %6351 = vst.msk [vmem:[%s13767_s4 + $0x70] sm:$0xff] %vm6336_vm4, %v6269_v58  ;;  %v6270_v5 = vmax.f32 %v6189_v62, 0.0  ;;  %v8691_v29 = vadd.f32 %v5736_v25, %v12727_v57  ;;  %v8543_v56 = vpop.f32.mrb[33].mxu0  ;;  %v2698_v57 = vld [vmem:[%s13764_s0 + $0x263] sm:$0xff] }
 0x59d   :  { %v5739_v24 = vpop.f32.mrb[34].mxu0 }
 0x59e   :  { %6352 = vst.msk [vmem:[%s13767_s4 + $0x78] sm:$0xff] %vm6336_vm4, %v6270_v5  ;;  %v6102_v22 = vmul.f32 %v8691_v29, %v12997_v13  ;;  %v8692_v36 = vadd.f32 %v5739_v24, %v12729_v12  ;;  %v8544_v39 = vpop.f32.mrb[35].mxu0  ;;  %v2699_v12 = vld [vmem:[%s13764_s0 + $0x26b] sm:$0xff]  ;;  %v5506_v29 = vpack.c.bf16 %v5463_v38, %v5462_v61 }
 0x59f   :  { %v2742_v3 = vpack.c.bf16 %v2699_v12, %v2698_v57  ;;  %v5464_v39 = vld [vmem:[%s13764_s0 + $0x286] sm:$0xff] }
 0x5a0   :  { %v6190_v34 = vadd.f32 %v13003_v60, %v6102_v22  ;;  %v6103_v31 = vmul.f32 %v8692_v36, %v12997_v13  ;;  %7990 = vmatmul.mubr.msk.bf16.gmra.mrb[144].mxu1 %vm265_vm3, %v2741_v41  ;;  %8650 = vmatmul.mubr.msk.bf16.gmra.mrb[140].mxu0 %vm265_vm3, %v5504_v8 }
 0x5a1   :  { %7993 = vmatprep.mubr.msk.bf16.mxu1 %vm9911_vm2, %v9909_v0  ;;  %8653 = vmatprep.mubr.msk.bf16.mxu0 %vm9911_vm2, %v9909_v0 }
 0x5a2   :  { %v6271_v47 = vmax.f32 %v6190_v34, 0.0  ;;  %v6191_v59 = vadd.f32 %v13003_v60, %v6103_v31  ;;  %v5465_v34 = vld [vmem:[%s13764_s0 + $0x28e] sm:$0xff] }
 0x5a3   :  { %v5744_v50 = vpop.f32.mrb[36].mxu0 }
 0x5a4   :  { %6353 = vst.msk [vmem:[%s13767_s4 + $0x80] sm:$0xff] %vm6336_vm4, %v6271_v47  ;;  %v6272_v11 = vmax.f32 %v6191_v59, 0.0  ;;  %v8693_v51 = vadd.f32 %v5744_v50, %v12744_v30  ;;  %v8547_v54 = vpop.f32.mrb[37].mxu0  ;;  %v2700_v30 = vld [vmem:[%s13764_s0 + $0x273] sm:$0xff]  ;;  %v5507_v50 = vpack.c.bf16 %v5465_v34, %v5464_v39 }
 0x5a5   :  { %v5747_v9 = vpop.f32.mrb[38].mxu0 }
 0x5a6   :  { %6354 = vst.msk [vmem:[%s13767_s4 + $0x88] sm:$0xff] %vm6336_vm4, %v6272_v11  ;;  %v6104_v49 = vmul.f32 %v8693_v51, %v12997_v13  ;;  %v8694_v19 = vadd.f32 %v5747_v9, %v12746_v45  ;;  %v8548_v40 = vpop.f32.mrb[39].mxu0  ;;  %v2701_v45 = vld [vmem:[%s13764_s0 + $0x27b] sm:$0xff] }
 0x5a7   :  { %v2743_v5 = vpack.c.bf16 %v2701_v45, %v2700_v30 }
 0x5a8   :  { %v6192_v21 = vadd.f32 %v13003_v60, %v6104_v49  ;;  %v6105_v7 = vmul.f32 %v8694_v19, %v12997_v13  ;;  %7994 = vmatmul.mubr.msk.bf16.gmra.mrb[148].mxu1 %vm265_vm3, %v2742_v3  ;;  %8654 = vmatmul.mubr.msk.bf16.gmra.mrb[144].mxu0 %vm265_vm3, %v5505_v10  ;;  %v5467_v49 = vld [vmem:[%s13764_s0 + $0x29e] sm:$0xff] }
 0x5a9   :  { %7997 = vmatprep.mubr.msk.bf16.mxu1 %vm9911_vm2, %v9909_v0  ;;  %8657 = vmatprep.mubr.msk.bf16.mxu0 %vm9911_vm2, %v9909_v0 }
 0x5aa   :  { %v6273_v14 = vmax.f32 %v6192_v21, 0.0  ;;  %v6193_v63 = vadd.f32 %v13003_v60, %v6105_v7 }
 0x5ab   :  { %v5752_v1 = vpop.f32.mrb[40].mxu0 }
 0x5ac   :  { %6355 = vst.msk [vmem:[%s13767_s4 + $0x90] sm:$0xff] %vm6336_vm4, %v6273_v14  ;;  %v6274_v58 = vmax.f32 %v6193_v63, 0.0  ;;  %v8695_v62 = vadd.f32 %v5752_v1, %v12761_v46  ;;  %v8551_v25 = vpop.f32.mrb[41].mxu0  ;;  %v2702_v46 = vld [vmem:[%s13764_s0 + $0x283] sm:$0xff] }
 0x5ad   :  { %v5755_v56 = vpop.f32.mrb[42].mxu0 }
 0x5ae   :  { %6356 = vst.msk [vmem:[%s13767_s4 + $0x98] sm:$0xff] %vm6336_vm4, %v6274_v58  ;;  %v6106_v41 = vmul.f32 %v8695_v62, %v12997_v13  ;;  %v8696_v8 = vadd.f32 %v5755_v56, %v12763_v33  ;;  %v8552_v24 = vpop.f32.mrb[43].mxu0  ;;  %v2703_v33 = vld [vmem:[%s13764_s0 + $0x28b] sm:$0xff] }
 0x5af   :  { %v2744_v59 = vpack.c.bf16 %v2703_v33, %v2702_v46 }
 0x5b0   :  { %v6194_v22 = vadd.f32 %v13003_v60, %v6106_v41  ;;  %v6107_v36 = vmul.f32 %v8696_v8, %v12997_v13  ;;  %7998 = vmatmul.mubr.msk.bf16.gmra.mrb[152].mxu1 %vm265_vm3, %v2743_v5  ;;  %8658 = vmatmul.mubr.msk.bf16.gmra.mrb[148].mxu0 %vm265_vm3, %v5506_v29 }
 0x5b1   :  { %8001 = vmatprep.mubr.msk.bf16.mxu1 %vm9911_vm2, %v9909_v0  ;;  %8661 = vmatprep.mubr.msk.bf16.mxu0 %vm9911_vm2, %v9909_v0 }
 0x5b2   :  { %v6275_v31 = vmax.f32 %v6194_v22, 0.0  ;;  %v6195_v57 = vadd.f32 %v13003_v60, %v6107_v36 }
 0x5b3   :  { %v5760_v12 = vpop.f32.mrb[44].mxu0 }
 0x5b4   :  { %6357 = vst.msk [vmem:[%s13767_s4 + $0xa0] sm:$0xff] %vm6336_vm4, %v6275_v31  ;;  %v6276_v4 = vmax.f32 %v6195_v57, 0.0  ;;  %v8697_v35 = vadd.f32 %v5760_v12, %v12778_v18  ;;  %v8555_v47 = vpop.f32.mrb[45].mxu0  ;;  %v2704_v18 = vld [vmem:[%s13764_s0 + $0x293] sm:$0xff] }
 0x5b5   :  { %v5763_v11 = vpop.f32.mrb[46].mxu0  ;;  %v2745_v61 = vpack.c.bf16 %v2704_v18, %v2704_v18 }
 0x5b6   :  { %6358 = vst.msk [vmem:[%s13767_s4 + $0xa8] sm:$0xff] %vm6336_vm4, %v6276_v4  ;;  %v6108_v51 = vmul.f32 %v8697_v35, %v12997_v13  ;;  %v8698_v54 = vadd.f32 %v5763_v11, %v12780_v44  ;;  %v8556_v3 = vpop.f32.mrb[47].mxu0  ;;  %v5466_v44 = vld [vmem:[%s13764_s0 + $0x296] sm:$0xff] }
 0x5b7   :  { %v5508_v38 = vpack.c.bf16 %v5467_v49, %v5466_v44 }
 0x5b8   :  { %v6196_v10 = vadd.f32 %v13003_v60, %v6108_v51  ;;  %v6109_v9 = vmul.f32 %v8698_v54, %v12997_v13  ;;  %8002 = vmatmul.mubr.msk.bf16.gmra.mrb[156].mxu1 %vm265_vm3, %v2744_v59  ;;  %8662 = vmatmul.mubr.msk.bf16.gmra.mrb[152].mxu0 %vm265_vm3, %v5507_v50 }
 0x5b9   :  { %8005 = vmatprep.mubr.msk.bf16.mxu1 %vm9911_vm2, %v9909_v0  ;;  %8665 = vmatprep.mubr.msk.bf16.mxu0 %vm9911_vm2, %v9909_v0 }
 0x5ba   :  { %v6277_v19 = vmax.f32 %v6196_v10, 0.0  ;;  %v6197_v40 = vadd.f32 %v13003_v60, %v6109_v9 }
 0x5bb   :  { %v5768_v21 = vpop.f32.mrb[48].mxu0 }
 0x5bc   :  { %6359 = vst.msk [vmem:[%s13767_s4 + $0xb0] sm:$0xff] %vm6336_vm4, %v6277_v19  ;;  %v6278_v7 = vmax.f32 %v6197_v40, 0.0  ;;  %v8699_v30 = vadd.f32 %v5768_v21, %v12798_v16  ;;  %v8559_v45 = vpop.f32.mrb[49].mxu0  ;;  %v5468_v16 = vld [vmem:[%s13764_s0 + $0x2a6] sm:$0xff] }
 0x5bd   :  { %v5771_v14 = vpop.f32.mrb[50].mxu0  ;;  %v5509_v24 = vpack.c.bf16 %v5468_v16, %v5468_v16 }
 0x5be   :  { %6360 = vst.msk [vmem:[%s13767_s4 + $0xb8] sm:$0xff] %vm6336_vm4, %v6278_v7  ;;  %v6110_v63 = vmul.f32 %v8699_v30, %v12997_v13  ;;  %v8700_v1 = vadd.f32 %v5771_v14, %v12801_v23  ;;  %v8560_v58 = vpop.f32.mrb[51].mxu0 }
 0x5c0   :  { %v6198_v62 = vadd.f32 %v13003_v60, %v6110_v63  ;;  %v6111_v25 = vmul.f32 %v8700_v1, %v12997_v13  ;;  %8006 = vmatmul.mubr.msk.bf16.gmra.mrb[160].mxu1 %vm265_vm3, %v2745_v61  ;;  %8666 = vmatmul.mubr.msk.bf16.gmra.mrb[156].mxu0 %vm265_vm3, %v5508_v38 }
 0x5c1   :  { %8669 = vmatprep.mubr.msk.bf16.mxu0 %vm9911_vm2, %v9909_v0 }
 0x5c2   :  { %v6279_v5 = vmax.f32 %v6198_v62, 0.0  ;;  %v6199_v29 = vadd.f32 %v13003_v60, %v6111_v25 }
 0x5c3   :  { %v5776_v23 = vpop.f32.mrb[52].mxu0 }
 0x5c4   :  { %6361 = vst.msk [vmem:[%s13767_s4 + $0xc0] sm:$0xff] %vm6336_vm4, %v6279_v5  ;;  %v6280_v56 = vmax.f32 %v6199_v29, 0.0  ;;  %v8701_v41 = vadd.f32 %v5776_v23, %v12818_v52  ;;  %v8563_v8 = vpop.f32.mrb[53].mxu0 }
 0x5c5   :  { %v5779_v22 = vpop.f32.mrb[54].mxu0 }
 0x5c6   :  { %6362 = vst.msk [vmem:[%s13767_s4 + $0xc8] sm:$0xff] %vm6336_vm4, %v6280_v56  ;;  %v6112_v0 = vmul.f32 %v8701_v41, %v12997_v13  ;;  %v8702_v36 = vadd.f32 %v5779_v22, %v12820_v15  ;;  %v8564_v46 = vpop.f32.mrb[55].mxu0 }
 0x5c8   :  { %v6200_v33 = vadd.f32 %v13003_v60, %v6112_v0  ;;  %v6113_v39 = vmul.f32 %v8702_v36, %v12997_v13  ;;  %8670 = vmatmul.mubr.msk.bf16.gmra.mrb[160].mxu0 %vm265_vm3, %v5509_v24 }
 0x5ca   :  { %v6281_v52 = vmax.f32 %v6200_v33, 0.0  ;;  %v6201_v34 = vadd.f32 %v13003_v60, %v6113_v39 }
 0x5cb   :  { %v5784_v31 = vpop.f32.mrb[56].mxu0 }
 0x5cc   :  { %6363 = vst.msk [vmem:[%s13767_s4 + $0xd0] sm:$0xff] %vm6336_vm4, %v6281_v52  ;;  %v6282_v57 = vmax.f32 %v6201_v34, 0.0  ;;  %v8703_v12 = vadd.f32 %v5784_v31, %v12840_v43  ;;  %v8567_v15 = vpop.f32.mrb[57].mxu0 }
 0x5cd   :  { %v5787_v4 = vpop.f32.mrb[58].mxu0 }
 0x5ce   :  { %6364 = vst.msk [vmem:[%s13767_s4 + $0xd8] sm:$0xff] %vm6336_vm4, %v6282_v57  ;;  %v6114_v35 = vmul.f32 %v8703_v12, %v12997_v13  ;;  %v8704_v47 = vadd.f32 %v5787_v4, %v12842_v17  ;;  %v8568_v59 = vpop.f32.mrb[59].mxu0 }
 0x5d0   :  { %v6202_v50 = vadd.f32 %v13003_v60, %v6114_v35  ;;  %v6115_v11 = vmul.f32 %v8704_v47, %v12997_v13 }
 0x5d2   :  { %v6283_v51 = vmax.f32 %v6202_v50, 0.0  ;;  %v6203_v54 = vadd.f32 %v13003_v60, %v6115_v11 }
 0x5d3   :  { %v5792_v43 = vpop.f32.mrb[60].mxu0 }
 0x5d4   :  { %6365 = vst.msk [vmem:[%s13767_s4 + $0xe0] sm:$0xff] %vm6336_vm4, %v6283_v51  ;;  %v6284_v3 = vmax.f32 %v6203_v54, 0.0  ;;  %v8705_v10 = vadd.f32 %v5792_v43, %v12862_v42  ;;  %v8571_v9 = vpop.f32.mrb[61].mxu0 }
 0x5d5   :  { %v5795_v18 = vpop.f32.mrb[62].mxu0 }
 0x5d6   :  { %6366 = vst.msk [vmem:[%s13767_s4 + $0xe8] sm:$0xff] %vm6336_vm4, %v6284_v3  ;;  %v6116_v17 = vmul.f32 %v8705_v10, %v12997_v13  ;;  %v8706_v44 = vadd.f32 %v5795_v18, %v12864_v20  ;;  %v8572_v49 = vpop.f32.mrb[63].mxu0 }
 0x5d8   :  { %v6204_v19 = vadd.f32 %v13003_v60, %v6116_v17  ;;  %v6117_v40 = vmul.f32 %v8706_v44, %v12997_v13 }
 0x5da   :  { %v6285_v21 = vmax.f32 %v6204_v19, 0.0  ;;  %v6205_v7 = vadd.f32 %v13003_v60, %v6117_v40 }
 0x5db   :  { %v5800_v42 = vpop.f32.mrb[64].mxu0 }
 0x5dc   :  { %6367 = vst.msk [vmem:[%s13767_s4 + $0xf0] sm:$0xff] %vm6336_vm4, %v6285_v21  ;;  %v6286_v30 = vmax.f32 %v6205_v7, 0.0  ;;  %v8707_v45 = vadd.f32 %v5800_v42, %v12884_v2  ;;  %v8575_v61 = vpop.f32.mrb[65].mxu0 }
 0x5dd   :  { %v5803_v38 = vpop.f32.mrb[66].mxu0 }
 0x5de   :  { %6368 = vst.msk [vmem:[%s13767_s4 + $0xf8] sm:$0xff] %vm6336_vm4, %v6286_v30  ;;  %v6118_v20 = vmul.f32 %v8707_v45, %v12997_v13  ;;  %v8708_v14 = vadd.f32 %v5803_v38, %v12886_v37  ;;  %v8576_v63 = vpop.f32.mrb[67].mxu0 }
 0x5e0   :  { %v6206_v1 = vadd.f32 %v13003_v60, %v6118_v20  ;;  %v6119_v58 = vmul.f32 %v8708_v14, %v12997_v13 }
 0x5e2   :  { %v6287_v62 = vmax.f32 %v6206_v1, 0.0  ;;  %v6207_v25 = vadd.f32 %v13003_v60, %v6119_v58 }
 0x5e3   :  { %v5808_v2 = vpop.f32.mrb[68].mxu0 }
 0x5e4   :  { %6369 = vst.msk [vmem:[%s13767_s4 + $0x100] sm:$0xff] %vm6336_vm4, %v6287_v62  ;;  %v6288_v16 = vmax.f32 %v6207_v25, 0.0  ;;  %v8709_v5 = vadd.f32 %v5808_v2, %v12906_v26  ;;  %v8579_v29 = vpop.f32.mrb[69].mxu0 }
 0x5e5   :  { %v5811_v23 = vpop.f32.mrb[70].mxu0 }
 0x5e6   :  { %6370 = vst.msk [vmem:[%s13767_s4 + $0x108] sm:$0xff] %vm6336_vm4, %v6288_v16  ;;  %v6120_v37 = vmul.f32 %v8709_v5, %v12997_v13  ;;  %v8710_v56 = vadd.f32 %v5811_v23, %v12908_v48  ;;  %v8580_v41 = vpop.f32.mrb[71].mxu0 }
 0x5e8   :  { %v6208_v8 = vadd.f32 %v13003_v60, %v6120_v37  ;;  %v6121_v24 = vmul.f32 %v8710_v56, %v12997_v13 }
 0x5ea   :  { %v6289_v22 = vmax.f32 %v6208_v8, 0.0  ;;  %v6209_v0 = vadd.f32 %v13003_v60, %v6121_v24 }
 0x5eb   :  { %v5816_v26 = vpop.f32.mrb[72].mxu0 }
 0x5ec   :  { %6371 = vst.msk [vmem:[%s13767_s4 + $0x110] sm:$0xff] %vm6336_vm4, %v6289_v22  ;;  %v6290_v36 = vmax.f32 %v6209_v0, 0.0  ;;  %v8711_v46 = vadd.f32 %v5816_v26, %v12928_v55  ;;  %v8583_v33 = vpop.f32.mrb[73].mxu0 }
 0x5ed   :  { %v5819_v39 = vpop.f32.mrb[74].mxu0 }
 0x5ee   :  { %6372 = vst.msk [vmem:[%s13767_s4 + $0x118] sm:$0xff] %vm6336_vm4, %v6290_v36  ;;  %v6122_v48 = vmul.f32 %v8711_v46, %v12997_v13  ;;  %v8712_v52 = vadd.f32 %v5819_v39, %v12930_v6  ;;  %v8584_v34 = vpop.f32.mrb[75].mxu0 }
 0x5f0   :  { %v6210_v31 = vadd.f32 %v13003_v60, %v6122_v48  ;;  %v6123_v57 = vmul.f32 %v8712_v52, %v12997_v13 }
 0x5f2   :  { %v6291_v12 = vmax.f32 %v6210_v31, 0.0  ;;  %v6211_v15 = vadd.f32 %v13003_v60, %v6123_v57 }
 0x5f3   :  { %v5824_v55 = vpop.f32.mrb[76].mxu0 }
 0x5f4   :  { %6373 = vst.msk [vmem:[%s13767_s4 + $0x120] sm:$0xff] %vm6336_vm4, %v6291_v12  ;;  %v6292_v4 = vmax.f32 %v6211_v15, 0.0  ;;  %v8713_v35 = vadd.f32 %v5824_v55, %v12950_v28  ;;  %v8587_v47 = vpop.f32.mrb[77].mxu0 }
 0x5f5   :  { %v5827_v59 = vpop.f32.mrb[78].mxu0 }
 0x5f6   :  { %6374 = vst.msk [vmem:[%s13767_s4 + $0x128] sm:$0xff] %vm6336_vm4, %v6292_v4  ;;  %v6124_v6 = vmul.f32 %v8713_v35, %v12997_v13  ;;  %v8714_v50 = vadd.f32 %v5827_v59, %v12952_v32  ;;  %v8588_v11 = vpop.f32.mrb[79].mxu0 }
 0x5f8   :  { %v6212_v51 = vadd.f32 %v13003_v60, %v6124_v6  ;;  %v6125_v54 = vmul.f32 %v8714_v50, %v12997_v13 }
 0x5fa   :  { %v6293_v43 = vmax.f32 %v6212_v51, 0.0  ;;  %v6213_v3 = vadd.f32 %v13003_v60, %v6125_v54 }
 0x5fb   :  { %v3076_v28 = vpop.f32.mrb[84].mxu1  ;;  %v5832_v10 = vpop.f32.mrb[80].mxu0 }
 0x5fc   :  { %6375 = vst.msk [vmem:[%s13767_s4 + $0x130] sm:$0xff] %vm6336_vm4, %v6293_v43  ;;  %v6294_v9 = vmax.f32 %v6213_v3, 0.0  ;;  %v8715_v18 = vadd.f32 %v5832_v10, %v12972_v27  ;;  %v7931_v17 = vpop.f32.mrb[85].mxu1  ;;  %v8591_v32 = vpop.f32.mrb[81].mxu0 }
 0x5fd   :  { %v3079_v44 = vpop.f32.mrb[86].mxu1  ;;  %v5835_v49 = vpop.f32.mrb[82].mxu0 }
 0x5fe   :  { %6376 = vst.msk [vmem:[%s13767_s4 + $0x138] sm:$0xff] %vm6336_vm4, %v6294_v9  ;;  %v6126_v19 = vmul.f32 %v8715_v18, %v12997_v13  ;;  %v8716_v40 = vadd.f32 %v5835_v49, %v12974_v53  ;;  %v7932_v21 = vpop.f32.mrb[87].mxu1  ;;  %v8592_v7 = vpop.f32.mrb[83].mxu0 }
 0x600   :  { %v6214_v42 = vadd.f32 %v13003_v60, %v6126_v19  ;;  %v6127_v30 = vmul.f32 %v8716_v40, %v12997_v13 }
 0x602   :  { %v6295_v27 = vmax.f32 %v6214_v42, 0.0  ;;  %v6215_v45 = vadd.f32 %v13003_v60, %v6127_v30 }
 0x603   :  { %v3084_v61 = vpop.f32.mrb[88].mxu1  ;;  %v5840_v38 = vpop.f32.mrb[84].mxu0 }
 0x604   :  { %6377 = vst.msk [vmem:[%s13767_s4 + $0x140] sm:$0xff] %vm6336_vm4, %v6295_v27  ;;  %v6296_v20 = vmax.f32 %v6215_v45, 0.0  ;;  %v8717_v14 = vadd.f32 %v5840_v38, %v3076_v28  ;;  %v7935_v63 = vpop.f32.mrb[89].mxu1  ;;  %v8595_v53 = vpop.f32.mrb[85].mxu0 }
 0x605   :  { %v3087_v1 = vpop.f32.mrb[90].mxu1  ;;  %v5843_v58 = vpop.f32.mrb[86].mxu0 }
 0x606   :  { %6378 = vst.msk [vmem:[%s13767_s4 + $0x148] sm:$0xff] %vm6336_vm4, %v6296_v20  ;;  %v6128_v62 = vmul.f32 %v8717_v14, %v12997_v13  ;;  %v8718_v25 = vadd.f32 %v5843_v58, %v3079_v44  ;;  %v7936_v2 = vpop.f32.mrb[91].mxu1  ;;  %v8596_v16 = vpop.f32.mrb[87].mxu0 }
 0x608   :  { %v6216_v5 = vadd.f32 %v13003_v60, %v6128_v62  ;;  %v6129_v29 = vmul.f32 %v8718_v25, %v12997_v13 }
 0x60a   :  { %v6297_v23 = vmax.f32 %v6216_v5, 0.0  ;;  %v6217_v37 = vadd.f32 %v13003_v60, %v6129_v29 }
 0x60b   :  { %v3092_v56 = vpop.f32.mrb[92].mxu1  ;;  %v5848_v41 = vpop.f32.mrb[88].mxu0 }
 0x60c   :  { %6379 = vst.msk [vmem:[%s13767_s4 + $0x150] sm:$0xff] %vm6336_vm4, %v6297_v23  ;;  %v6298_v8 = vmax.f32 %v6217_v37, 0.0  ;;  %v8719_v24 = vadd.f32 %v5848_v41, %v3084_v61  ;;  %v7939_v22 = vpop.f32.mrb[93].mxu1  ;;  %v8599_v0 = vpop.f32.mrb[89].mxu0  ;;  %v13572_v37 = vld [vmem:[%s13765_s2] ss:$0 sm:$0xff] }
 0x60d   :  { %v3095_v26 = vpop.f32.mrb[94].mxu1  ;;  %v5851_v36 = vpop.f32.mrb[90].mxu0 }
 0x60e   :  { %6380 = vst.msk [vmem:[%s13767_s4 + $0x158] sm:$0xff] %vm6336_vm4, %v6298_v8  ;;  %v6130_v46 = vmul.f32 %v8719_v24, %v12997_v13  ;;  %v8720_v33 = vadd.f32 %v5851_v36, %v3087_v1  ;;  %v7940_v39 = vpop.f32.mrb[95].mxu1  ;;  %v8600_v48 = vpop.f32.mrb[91].mxu0 }
 0x610   :  { %v6218_v52 = vadd.f32 %v13003_v60, %v6130_v46  ;;  %v6131_v34 = vmul.f32 %v8720_v33, %v12997_v13 }
 0x612   :  { %v6299_v31 = vmax.f32 %v6218_v52, 0.0  ;;  %v6219_v57 = vadd.f32 %v13003_v60, %v6131_v34  ;;  %v13588_v34 = vld [vmem:[%s13766_s3] ss:$0 sm:$0xff] }
 0x613   :  { %v3100_v12 = vpop.f32.mrb[96].mxu1  ;;  %v5856_v15 = vpop.f32.mrb[92].mxu0 }
 0x614   :  { %6381 = vst.msk [vmem:[%s13767_s4 + $0x160] sm:$0xff] %vm6336_vm4, %v6299_v31  ;;  %v6300_v55 = vmax.f32 %v6219_v57, 0.0  ;;  %v8721_v4 = vadd.f32 %v5856_v15, %v3092_v56  ;;  %v7943_v35 = vpop.f32.mrb[97].mxu1  ;;  %v8603_v47 = vpop.f32.mrb[93].mxu0 }
 0x615   :  { %v3103_v59 = vpop.f32.mrb[98].mxu1  ;;  %v5859_v6 = vpop.f32.mrb[94].mxu0 }
 0x616   :  { %6382 = vst.msk [vmem:[%s13767_s4 + $0x168] sm:$0xff] %vm6336_vm4, %v6300_v55  ;;  %v6132_v50 = vmul.f32 %v8721_v4, %v12997_v13  ;;  %v8722_v11 = vadd.f32 %v5859_v6, %v3095_v26  ;;  %v7944_v51 = vpop.f32.mrb[99].mxu1  ;;  %v8604_v54 = vpop.f32.mrb[95].mxu0 }
 0x618   :  { %v6220_v43 = vadd.f32 %v13003_v60, %v6132_v50  ;;  %v6133_v3 = vmul.f32 %v8722_v11, %v12997_v13 }
 0x61a   :  { %v6301_v28 = vmax.f32 %v6220_v43, 0.0  ;;  %v6221_v10 = vadd.f32 %v13003_v60, %v6133_v3 }
 0x61b   :  { %v3108_v9 = vpop.f32.mrb[100].mxu1  ;;  %v5864_v18 = vpop.f32.mrb[96].mxu0 }
 0x61c   :  { %6383 = vst.msk [vmem:[%s13767_s4 + $0x170] sm:$0xff] %vm6336_vm4, %v6301_v28  ;;  %v6302_v17 = vmax.f32 %v6221_v10, 0.0  ;;  %v8723_v32 = vadd.f32 %v5864_v18, %v3100_v12  ;;  %v7947_v44 = vpop.f32.mrb[101].mxu1  ;;  %v8607_v49 = vpop.f32.mrb[97].mxu0 }
 0x61d   :  { %v3111_v19 = vpop.f32.mrb[102].mxu1  ;;  %v5867_v40 = vpop.f32.mrb[98].mxu0 }
 0x61e   :  { %6384 = vst.msk [vmem:[%s13767_s4 + $0x178] sm:$0xff] %vm6336_vm4, %v6302_v17  ;;  %v6134_v21 = vmul.f32 %v8723_v32, %v12997_v13  ;;  %v8724_v7 = vadd.f32 %v5867_v40, %v3103_v59  ;;  %v7948_v42 = vpop.f32.mrb[103].mxu1  ;;  %v8608_v30 = vpop.f32.mrb[99].mxu0 }
 0x620   :  { %v6222_v27 = vadd.f32 %v13003_v60, %v6134_v21  ;;  %v6135_v45 = vmul.f32 %v8724_v7, %v12997_v13 }
 0x622   :  { %v6303_v61 = vmax.f32 %v6222_v27, 0.0  ;;  %v6223_v38 = vadd.f32 %v13003_v60, %v6135_v45 }
 0x623   :  { %v3116_v20 = vpop.f32.mrb[104].mxu1  ;;  %v5872_v14 = vpop.f32.mrb[100].mxu0 }
 0x624   :  { %6385 = vst.msk [vmem:[%s13767_s4 + $0x180] sm:$0xff] %vm6336_vm4, %v6303_v61  ;;  %v6304_v63 = vmax.f32 %v6223_v38, 0.0  ;;  %v8725_v53 = vadd.f32 %v5872_v14, %v3108_v9  ;;  %v7951_v1 = vpop.f32.mrb[105].mxu1  ;;  %v8611_v58 = vpop.f32.mrb[101].mxu0 }
 0x625   :  { %v3119_v62 = vpop.f32.mrb[106].mxu1  ;;  %v5875_v25 = vpop.f32.mrb[102].mxu0 }
 0x626   :  { %6386 = vst.msk [vmem:[%s13767_s4 + $0x188] sm:$0xff] %vm6336_vm4, %v6304_v63  ;;  %v6136_v2 = vmul.f32 %v8725_v53, %v12997_v13  ;;  %v8726_v16 = vadd.f32 %v5875_v25, %v3111_v19  ;;  %v7952_v5 = vpop.f32.mrb[107].mxu1  ;;  %v8612_v29 = vpop.f32.mrb[103].mxu0 }
 0x628   :  { %v6224_v23 = vadd.f32 %v13003_v60, %v6136_v2  ;;  %v6137_v56 = vmul.f32 %v13572_v37, %v8726_v16 }
 0x62a   :  { %v6305_v41 = vmax.f32 %v6224_v23, 0.0  ;;  %v6225_v8 = vadd.f32 %v13003_v60, %v6137_v56 }
 0x62b   :  { %v3124_v24 = vpop.f32.mrb[108].mxu1  ;;  %v5880_v22 = vpop.f32.mrb[104].mxu0 }
 0x62c   :  { %6387 = vst.msk [vmem:[%s13767_s4 + $0x190] sm:$0xff] %vm6336_vm4, %v6305_v41  ;;  %v6306_v13 = vmax.f32 %v6225_v8, 0.0  ;;  %v8727_v0 = vadd.f32 %v5880_v22, %v3116_v20  ;;  %v7955_v26 = vpop.f32.mrb[109].mxu1  ;;  %v8615_v36 = vpop.f32.mrb[105].mxu0 }
 0x62d   :  { %v3127_v46 = vpop.f32.mrb[110].mxu1  ;;  %v5883_v33 = vpop.f32.mrb[106].mxu0 }
 0x62e   :  { %6388 = vst.msk [vmem:[%s13767_s4 + $0x198] sm:$0xff] %vm6336_vm4, %v6306_v13  ;;  %v6138_v60 = vmul.f32 %v13572_v37, %v8727_v0  ;;  %v8728_v39 = vadd.f32 %v5883_v33, %v3119_v62  ;;  %v7956_v48 = vpop.f32.mrb[111].mxu1  ;;  %v8616_v52 = vpop.f32.mrb[107].mxu0 }
 0x630   :  { %v6226_v31 = vadd.f32 %v13588_v34, %v6138_v60  ;;  %v6139_v57 = vmul.f32 %v13572_v37, %v8728_v39 }
 0x632   :  { %v6307_v12 = vmax.f32 %v6226_v31, 0.0  ;;  %v6227_v15 = vadd.f32 %v13588_v34, %v6139_v57 }
 0x633   :  { %v3132_v55 = vpop.f32.mrb[112].mxu1  ;;  %v5888_v4 = vpop.f32.mrb[108].mxu0 }
 0x634   :  { %6389 = vst.msk [vmem:[%s13767_s4 + $0x1a0] sm:$0xff] %vm6336_vm4, %v6307_v12  ;;  %v6308_v35 = vmax.f32 %v6227_v15, 0.0  ;;  %v8729_v47 = vadd.f32 %v5888_v4, %v3124_v24  ;;  %v7959_v59 = vpop.f32.mrb[113].mxu1  ;;  %v8619_v6 = vpop.f32.mrb[109].mxu0 }
 0x635   :  { %v3135_v50 = vpop.f32.mrb[114].mxu1  ;;  %v5891_v11 = vpop.f32.mrb[110].mxu0 }
 0x636   :  { %6390 = vst.msk [vmem:[%s13767_s4 + $0x1a8] sm:$0xff] %vm6336_vm4, %v6308_v35  ;;  %v6140_v51 = vmul.f32 %v13572_v37, %v8729_v47  ;;  %v8730_v54 = vadd.f32 %v5891_v11, %v3127_v46  ;;  %v7960_v43 = vpop.f32.mrb[115].mxu1  ;;  %v8620_v3 = vpop.f32.mrb[111].mxu0 }
 0x638   :  { %v6228_v28 = vadd.f32 %v13588_v34, %v6140_v51  ;;  %v6141_v10 = vmul.f32 %v13572_v37, %v8730_v54 }
 0x63a   :  { %v6309_v9 = vmax.f32 %v6228_v28, 0.0  ;;  %v6229_v18 = vadd.f32 %v13588_v34, %v6141_v10 }
 0x63b   :  { %v3140_v17 = vpop.f32.mrb[116].mxu1  ;;  %v5896_v32 = vpop.f32.mrb[112].mxu0 }
 0x63c   :  { %6391 = vst.msk [vmem:[%s13767_s4 + $0x1b0] sm:$0xff] %vm6336_vm4, %v6309_v9  ;;  %v6310_v44 = vmax.f32 %v6229_v18, 0.0  ;;  %v8731_v49 = vadd.f32 %v5896_v32, %v3132_v55  ;;  %v7963_v19 = vpop.f32.mrb[117].mxu1  ;;  %v8623_v40 = vpop.f32.mrb[113].mxu0 }
 0x63d   :  { %v3143_v21 = vpop.f32.mrb[118].mxu1  ;;  %v5899_v7 = vpop.f32.mrb[114].mxu0 }
 0x63e   :  { %6392 = vst.msk [vmem:[%s13767_s4 + $0x1b8] sm:$0xff] %vm6336_vm4, %v6310_v44  ;;  %v6142_v42 = vmul.f32 %v13572_v37, %v8731_v49  ;;  %v8732_v30 = vadd.f32 %v5899_v7, %v3135_v50  ;;  %v7964_v27 = vpop.f32.mrb[119].mxu1  ;;  %v8624_v45 = vpop.f32.mrb[115].mxu0 }
 0x640   :  { %v6230_v61 = vadd.f32 %v13588_v34, %v6142_v42  ;;  %v6143_v38 = vmul.f32 %v13572_v37, %v8732_v30 }
 0x642   :  { %v6311_v20 = vmax.f32 %v6230_v61, 0.0  ;;  %v6231_v14 = vadd.f32 %v13588_v34, %v6143_v38 }
 0x643   :  { %v3148_v63 = vpop.f32.mrb[120].mxu1  ;;  %v5904_v53 = vpop.f32.mrb[116].mxu0 }
 0x644   :  { %6393 = vst.msk [vmem:[%s13767_s4 + $0x1c0] sm:$0xff] %vm6336_vm4, %v6311_v20  ;;  %v6312_v1 = vmax.f32 %v6231_v14, 0.0  ;;  %v8733_v58 = vadd.f32 %v5904_v53, %v3140_v17  ;;  %v7967_v62 = vpop.f32.mrb[121].mxu1  ;;  %v8627_v25 = vpop.f32.mrb[117].mxu0 }
 0x645   :  { %v3151_v2 = vpop.f32.mrb[122].mxu1  ;;  %v5907_v16 = vpop.f32.mrb[118].mxu0 }
 0x646   :  { %6394 = vst.msk [vmem:[%s13767_s4 + $0x1c8] sm:$0xff] %vm6336_vm4, %v6312_v1  ;;  %v6144_v5 = vmul.f32 %v13572_v37, %v8733_v58  ;;  %v8734_v29 = vadd.f32 %v5907_v16, %v3143_v21  ;;  %v7968_v23 = vpop.f32.mrb[123].mxu1  ;;  %v8628_v56 = vpop.f32.mrb[119].mxu0 }
 0x648   :  { %v6232_v41 = vadd.f32 %v13588_v34, %v6144_v5  ;;  %v6145_v8 = vmul.f32 %v13572_v37, %v8734_v29 }
 0x64a   :  { %v6313_v24 = vmax.f32 %v6232_v41, 0.0  ;;  %v6233_v22 = vadd.f32 %v13588_v34, %v6145_v8 }
 0x64b   :  { %v3156_v13 = vpop.f32.mrb[124].mxu1  ;;  %v5912_v0 = vpop.f32.mrb[120].mxu0 }
 0x64c   :  { %6395 = vst.msk [vmem:[%s13767_s4 + $0x1d0] sm:$0xff] %vm6336_vm4, %v6313_v24  ;;  %v6314_v26 = vmax.f32 %v6233_v22, 0.0  ;;  %v8735_v36 = vadd.f32 %v5912_v0, %v3148_v63  ;;  %v7971_v46 = vpop.f32.mrb[125].mxu1  ;;  %v8631_v33 = vpop.f32.mrb[121].mxu0 }
 0x64d   :  { %v3159_v60 = vpop.f32.mrb[126].mxu1  ;;  %v5915_v39 = vpop.f32.mrb[122].mxu0 }
 0x64e   :  { %6396 = vst.msk [vmem:[%s13767_s4 + $0x1d8] sm:$0xff] %vm6336_vm4, %v6314_v26  ;;  %v6146_v48 = vmul.f32 %v13572_v37, %v8735_v36  ;;  %v8736_v52 = vadd.f32 %v5915_v39, %v3151_v2  ;;  %v7972_v31 = vpop.f32.mrb[127].mxu1  ;;  %v8632_v57 = vpop.f32.mrb[123].mxu0 }
 0x650   :  { %v6234_v12 = vadd.f32 %v13588_v34, %v6146_v48  ;;  %v6147_v15 = vmul.f32 %v13572_v37, %v8736_v52 }
 0x652   :  { %v6315_v55 = vmax.f32 %v6234_v12, 0.0  ;;  %v6235_v4 = vadd.f32 %v13588_v34, %v6147_v15 }
 0x653   :  { %v3164_v35 = vpop.f32.mrb[128].mxu1  ;;  %v5920_v47 = vpop.f32.mrb[124].mxu0 }
 0x654   :  { %6397 = vst.msk [vmem:[%s13767_s4 + $0x1e0] sm:$0xff] %vm6336_vm4, %v6315_v55  ;;  %v6316_v59 = vmax.f32 %v6235_v4, 0.0  ;;  %v8737_v6 = vadd.f32 %v5920_v47, %v3156_v13  ;;  %v7975_v50 = vpop.f32.mrb[129].mxu1  ;;  %v8635_v11 = vpop.f32.mrb[125].mxu0 }
 0x655   :  { %v3167_v51 = vpop.f32.mrb[130].mxu1  ;;  %v5923_v54 = vpop.f32.mrb[126].mxu0 }
 0x656   :  { %6398 = vst.msk [vmem:[%s13767_s4 + $0x1e8] sm:$0xff] %vm6336_vm4, %v6316_v59  ;;  %v6148_v43 = vmul.f32 %v13572_v37, %v8737_v6  ;;  %v8738_v3 = vadd.f32 %v5923_v54, %v3159_v60  ;;  %v7976_v28 = vpop.f32.mrb[131].mxu1  ;;  %v8636_v10 = vpop.f32.mrb[127].mxu0 }
 0x658   :  { %v6236_v9 = vadd.f32 %v13588_v34, %v6148_v43  ;;  %v6149_v18 = vmul.f32 %v13572_v37, %v8738_v3 }
 0x65a   :  { %v6317_v17 = vmax.f32 %v6236_v9, 0.0  ;;  %v6237_v32 = vadd.f32 %v13588_v34, %v6149_v18 }
 0x65b   :  { %v3172_v44 = vpop.f32.mrb[132].mxu1  ;;  %v5928_v49 = vpop.f32.mrb[128].mxu0 }
 0x65c   :  { %6399 = vst.msk [vmem:[%s13767_s4 + $0x1f0] sm:$0xff] %vm6336_vm4, %v6317_v17  ;;  %v6318_v19 = vmax.f32 %v6237_v32, 0.0  ;;  %v8739_v40 = vadd.f32 %v5928_v49, %v3164_v35  ;;  %v7979_v21 = vpop.f32.mrb[133].mxu1  ;;  %v8639_v7 = vpop.f32.mrb[129].mxu0 }
 0x65d   :  { %v3175_v42 = vpop.f32.mrb[134].mxu1  ;;  %v5931_v30 = vpop.f32.mrb[130].mxu0 }
 0x65e   :  { %6400 = vst.msk [vmem:[%s13767_s4 + $0x1f8] sm:$0xff] %vm6336_vm4, %v6318_v19  ;;  %v6150_v27 = vmul.f32 %v13572_v37, %v8739_v40  ;;  %v8740_v45 = vadd.f32 %v5931_v30, %v3167_v51  ;;  %v7980_v61 = vpop.f32.mrb[135].mxu1  ;;  %v8640_v38 = vpop.f32.mrb[131].mxu0 }
 0x660   :  { %v6238_v20 = vadd.f32 %v13588_v34, %v6150_v27  ;;  %v6151_v14 = vmul.f32 %v13572_v37, %v8740_v45 }
 0x662   :  { %v6319_v63 = vmax.f32 %v6238_v20, 0.0  ;;  %v6239_v53 = vadd.f32 %v13588_v34, %v6151_v14 }
 0x663   :  { %v3180_v1 = vpop.f32.mrb[136].mxu1  ;;  %v5936_v58 = vpop.f32.mrb[132].mxu0 }
 0x664   :  { %6401 = vst.msk [vmem:[%s13767_s4 + $0x200] sm:$0xff] %vm6336_vm4, %v6319_v63  ;;  %v6320_v62 = vmax.f32 %v6239_v53, 0.0  ;;  %v8741_v25 = vadd.f32 %v5936_v58, %v3172_v44  ;;  %v7983_v2 = vpop.f32.mrb[137].mxu1  ;;  %v8643_v16 = vpop.f32.mrb[133].mxu0 }
 0x665   :  { %v3183_v5 = vpop.f32.mrb[138].mxu1  ;;  %v5939_v29 = vpop.f32.mrb[134].mxu0 }
 0x666   :  { %6402 = vst.msk [vmem:[%s13767_s4 + $0x208] sm:$0xff] %vm6336_vm4, %v6320_v62  ;;  %v6152_v23 = vmul.f32 %v13572_v37, %v8741_v25  ;;  %v8742_v56 = vadd.f32 %v5939_v29, %v3175_v42  ;;  %v7984_v41 = vpop.f32.mrb[139].mxu1  ;;  %v8644_v8 = vpop.f32.mrb[135].mxu0 }
 0x668   :  { %v6240_v24 = vadd.f32 %v13588_v34, %v6152_v23  ;;  %v6153_v22 = vmul.f32 %v13572_v37, %v8742_v56 }
 0x66a   :  { %v6321_v13 = vmax.f32 %v6240_v24, 0.0  ;;  %v6241_v0 = vadd.f32 %v13588_v34, %v6153_v22 }
 0x66b   :  { %v3188_v26 = vpop.f32.mrb[140].mxu1  ;;  %v5944_v36 = vpop.f32.mrb[136].mxu0 }
 0x66c   :  { %6403 = vst.msk [vmem:[%s13767_s4 + $0x210] sm:$0xff] %vm6336_vm4, %v6321_v13  ;;  %v6322_v46 = vmax.f32 %v6241_v0, 0.0  ;;  %v8743_v33 = vadd.f32 %v5944_v36, %v3180_v1  ;;  %v7987_v60 = vpop.f32.mrb[141].mxu1  ;;  %v8647_v39 = vpop.f32.mrb[137].mxu0 }
 0x66d   :  { %v3191_v48 = vpop.f32.mrb[142].mxu1  ;;  %v5947_v52 = vpop.f32.mrb[138].mxu0 }
 0x66e   :  { %6404 = vst.msk [vmem:[%s13767_s4 + $0x218] sm:$0xff] %vm6336_vm4, %v6322_v46  ;;  %v6154_v31 = vmul.f32 %v13572_v37, %v8743_v33  ;;  %v8744_v57 = vadd.f32 %v5947_v52, %v3183_v5  ;;  %v7988_v12 = vpop.f32.mrb[143].mxu1  ;;  %v8648_v15 = vpop.f32.mrb[139].mxu0 }
 0x670   :  { %v6242_v55 = vadd.f32 %v13588_v34, %v6154_v31  ;;  %v6155_v4 = vmul.f32 %v13572_v37, %v8744_v57 }
 0x672   :  { %v6323_v35 = vmax.f32 %v6242_v55, 0.0  ;;  %v6243_v47 = vadd.f32 %v13588_v34, %v6155_v4 }
 0x673   :  { %v3196_v59 = vpop.f32.mrb[144].mxu1  ;;  %v5952_v6 = vpop.f32.mrb[140].mxu0 }
 0x674   :  { %6405 = vst.msk [vmem:[%s13767_s4 + $0x220] sm:$0xff] %vm6336_vm4, %v6323_v35  ;;  %v6324_v50 = vmax.f32 %v6243_v47, 0.0  ;;  %v8745_v11 = vadd.f32 %v5952_v6, %v3188_v26  ;;  %v7991_v51 = vpop.f32.mrb[145].mxu1  ;;  %v8651_v54 = vpop.f32.mrb[141].mxu0 }
 0x675   :  { %v3199_v43 = vpop.f32.mrb[146].mxu1  ;;  %v5955_v3 = vpop.f32.mrb[142].mxu0 }
 0x676   :  { %6406 = vst.msk [vmem:[%s13767_s4 + $0x228] sm:$0xff] %vm6336_vm4, %v6324_v50  ;;  %v6156_v28 = vmul.f32 %v13572_v37, %v8745_v11  ;;  %v8746_v10 = vadd.f32 %v5955_v3, %v3191_v48  ;;  %v7992_v9 = vpop.f32.mrb[147].mxu1  ;;  %v8652_v18 = vpop.f32.mrb[143].mxu0 }
 0x678   :  { %v6244_v17 = vadd.f32 %v13588_v34, %v6156_v28  ;;  %v6157_v32 = vmul.f32 %v13572_v37, %v8746_v10 }
 0x67a   :  { %v6325_v44 = vmax.f32 %v6244_v17, 0.0  ;;  %v6245_v49 = vadd.f32 %v13588_v34, %v6157_v32 }
 0x67b   :  { %v3204_v19 = vpop.f32.mrb[148].mxu1  ;;  %v5960_v40 = vpop.f32.mrb[144].mxu0 }
 0x67c   :  { %6407 = vst.msk [vmem:[%s13767_s4 + $0x230] sm:$0xff] %vm6336_vm4, %v6325_v44  ;;  %v6326_v21 = vmax.f32 %v6245_v49, 0.0  ;;  %v8747_v7 = vadd.f32 %v5960_v40, %v3196_v59  ;;  %v7995_v42 = vpop.f32.mrb[149].mxu1  ;;  %v8655_v30 = vpop.f32.mrb[145].mxu0 }
 0x67d   :  { %v3207_v27 = vpop.f32.mrb[150].mxu1  ;;  %v5963_v45 = vpop.f32.mrb[146].mxu0 }
 0x67e   :  { %6408 = vst.msk [vmem:[%s13767_s4 + $0x238] sm:$0xff] %vm6336_vm4, %v6326_v21  ;;  %v6158_v61 = vmul.f32 %v13572_v37, %v8747_v7  ;;  %v8748_v38 = vadd.f32 %v5963_v45, %v3199_v43  ;;  %v7996_v20 = vpop.f32.mrb[151].mxu1  ;;  %v8656_v14 = vpop.f32.mrb[147].mxu0 }
 0x680   :  { %v6246_v63 = vadd.f32 %v13588_v34, %v6158_v61  ;;  %v6159_v53 = vmul.f32 %v13572_v37, %v8748_v38 }
 0x682   :  { %v6327_v1 = vmax.f32 %v6246_v63, 0.0  ;;  %v6247_v58 = vadd.f32 %v13588_v34, %v6159_v53 }
 0x683   :  { %v3212_v62 = vpop.f32.mrb[152].mxu1  ;;  %v5968_v25 = vpop.f32.mrb[148].mxu0 }
 0x684   :  { %6409 = vst.msk [vmem:[%s13767_s4 + $0x240] sm:$0xff] %vm6336_vm4, %v6327_v1  ;;  %v6328_v2 = vmax.f32 %v6247_v58, 0.0  ;;  %v8749_v16 = vadd.f32 %v5968_v25, %v3204_v19  ;;  %v7999_v5 = vpop.f32.mrb[153].mxu1  ;;  %v8659_v29 = vpop.f32.mrb[149].mxu0 }
 0x685   :  { %v3215_v23 = vpop.f32.mrb[154].mxu1  ;;  %v5971_v56 = vpop.f32.mrb[150].mxu0 }
 0x686   :  { %6410 = vst.msk [vmem:[%s13767_s4 + $0x248] sm:$0xff] %vm6336_vm4, %v6328_v2  ;;  %v6160_v41 = vmul.f32 %v13572_v37, %v8749_v16  ;;  %v8750_v8 = vadd.f32 %v5971_v56, %v3207_v27  ;;  %v8000_v24 = vpop.f32.mrb[155].mxu1  ;;  %v8660_v22 = vpop.f32.mrb[151].mxu0 }
 0x688   :  { %v6248_v13 = vadd.f32 %v13588_v34, %v6160_v41  ;;  %v6161_v0 = vmul.f32 %v13572_v37, %v8750_v8 }
 0x68a   :  { %v6329_v26 = vmax.f32 %v6248_v13, 0.0  ;;  %v6249_v36 = vadd.f32 %v13588_v34, %v6161_v0 }
 0x68b   :  { %v3220_v46 = vpop.f32.mrb[156].mxu1  ;;  %v5976_v33 = vpop.f32.mrb[152].mxu0 }
 0x68c   :  { %6411 = vst.msk [vmem:[%s13767_s4 + $0x250] sm:$0xff] %vm6336_vm4, %v6329_v26  ;;  %v6330_v60 = vmax.f32 %v6249_v36, 0.0  ;;  %v8751_v39 = vadd.f32 %v5976_v33, %v3212_v62  ;;  %v8003_v48 = vpop.f32.mrb[157].mxu1  ;;  %v8663_v52 = vpop.f32.mrb[153].mxu0 }
 0x68d   :  { %v3223_v31 = vpop.f32.mrb[158].mxu1  ;;  %v5979_v57 = vpop.f32.mrb[154].mxu0 }
 0x68e   :  { %6412 = vst.msk [vmem:[%s13767_s4 + $0x258] sm:$0xff] %vm6336_vm4, %v6330_v60  ;;  %v6162_v12 = vmul.f32 %v13572_v37, %v8751_v39  ;;  %v8752_v15 = vadd.f32 %v5979_v57, %v3215_v23  ;;  %v8004_v55 = vpop.f32.mrb[159].mxu1  ;;  %v8664_v4 = vpop.f32.mrb[155].mxu0 }
 0x690   :  { %v6250_v35 = vadd.f32 %v13588_v34, %v6162_v12  ;;  %v6163_v47 = vmul.f32 %v13572_v37, %v8752_v15 }
 0x692   :  { %v6331_v59 = vmax.f32 %v6250_v35, 0.0  ;;  %v6251_v6 = vadd.f32 %v13588_v34, %v6163_v47 }
 0x693   :  { %v3228_v50 = vpop.f32.mrb[160].mxu1  ;;  %v5984_v11 = vpop.f32.mrb[156].mxu0 }
 0x694   :  { %6413 = vst.msk [vmem:[%s13767_s4 + $0x260] sm:$0xff] %vm6336_vm4, %v6331_v59  ;;  %v6332_v51 = vmax.f32 %v6251_v6, 0.0  ;;  %v8753_v54 = vadd.f32 %v5984_v11, %v3220_v46  ;;  %v8007_v43 = vpop.f32.mrb[161].mxu1  ;;  %v8667_v3 = vpop.f32.mrb[157].mxu0 }
 0x695   :  { %v3231_v28 = vpop.f32.mrb[162].mxu1  ;;  %v5987_v10 = vpop.f32.mrb[158].mxu0 }
 0x696   :  { %6414 = vst.msk [vmem:[%s13767_s4 + $0x268] sm:$0xff] %vm6336_vm4, %v6332_v51  ;;  %v6164_v9 = vmul.f32 %v13572_v37, %v8753_v54  ;;  %v8754_v18 = vadd.f32 %v5987_v10, %v3223_v31  ;;  %v8008_v17 = vpop.f32.mrb[163].mxu1  ;;  %v8668_v32 = vpop.f32.mrb[159].mxu0 }
 0x698   :  { %v6252_v44 = vadd.f32 %v13588_v34, %v6164_v9  ;;  %v6165_v49 = vmul.f32 %v13572_v37, %v8754_v18 }
 0x69a   :  { %v6333_v19 = vmax.f32 %v6252_v44, 0.0  ;;  %v6253_v40 = vadd.f32 %v13588_v34, %v6165_v49 }
 0x69b   :  { %v5992_v21 = vpop.f32.mrb[160].mxu0 }
 0x69c   :  { %6415 = vst.msk [vmem:[%s13767_s4 + $0x270] sm:$0xff] %vm6336_vm4, %v6333_v19  ;;  %v6334_v7 = vmax.f32 %v6253_v40, 0.0  ;;  %v8755_v42 = vadd.f32 %v5992_v21, %v3228_v50  ;;  %v8671_v30 = vpop.f32.mrb[161].mxu0 }
 0x69d   :  { %v5995_v27 = vpop.f32.mrb[162].mxu0 }
 0x69e   :  { %6416 = vst.msk [vmem:[%s13767_s4 + $0x278] sm:$0xff] %vm6336_vm4, %v6334_v7  ;;  %v6166_v45 = vmul.f32 %v13572_v37, %v8755_v42  ;;  %v8672_v61 = vpop.f32.mrb[163].mxu0 }
 0x6a0   :  { %v6254_v38 = vadd.f32 %v13588_v34, %v6166_v45 }
 0x6a2   :  { %v6335_v20 = vmax.f32 %v6254_v38, 0.0 }
 0x6a4   :  { %6417 = vst.msk [vmem:[%s13767_s4 + $0x280] sm:$0xff] %vm6336_vm4, %v6335_v20 }

</bundles_post_ra>
